<compile_context>
chip_gen: v6e
topology: v6e:2x2x1
jax: 0.10.0
libtpu: 0.0.40
codegen_flags: <defaults>
</compile_context>

<pallas_src>
import math
from functools import partial

import jax
import jax.numpy as jnp
from jax.experimental import pallas as pl
from jax.experimental.pallas import tpu as pltpu

BN_EPS = 1e-3


def _device_kind():
    try:
        return jax.devices()[0].device_kind.lower()
    except Exception:  # pragma: no cover
        return ""


_KIND = _device_kind()
# Megacore (2 TensorCores/chip): v4 / v5p / v7x.  v5e/v6e have one TC, so a
# forced >=2-way grid split there only adds per-step overhead.
_NUM_TC = 2 if any(t in _KIND for t in ("v7", "v4", "v5p")) else 1
# Scoped-VMEM ceiling: defaults are 16/32 MiB; raise it, leaving headroom on
# v7x whose physical VMEM is only 64 MiB.
_VMEM_LIMIT = (48 if "v7" in _KIND else 96) * 1024 * 1024


def _make_divisible(ch, divisor=8, min_ch=None):
    if min_ch is None:
        min_ch = divisor
    new_ch = max(min_ch, int(ch + divisor / 2) // divisor * divisor)
    if new_ch < 0.9 * ch:
        new_ch += divisor
    return new_ch


def _round_up(x, m):
    return ((x + m - 1) // m) * m


def _apply_act(y, act):
    if act == "relu":
        return jnp.maximum(y, 0.0)
    if act == "hardswish":
        return y * jnp.clip(y + 3.0, 0.0, 6.0) * (1.0 / 6.0)
    return y  # identity


def _tile_m(M, max_tm=2048):
    """Big M-tiles (>=~1-2MB/step); force >=NUM_TC steps only on megacore."""
    m8 = _round_up(max(M, 1), 8)
    steps = pl.cdiv(m8, max_tm)
    if _NUM_TC > 1:
        steps = max(steps, min(_NUM_TC, pl.cdiv(m8, 256)))
    tm = _round_up(pl.cdiv(m8, steps), 8)
    if tm >= 512:
        tm = _round_up(tm, 256)  # MXU-height alignment on v6e/v7x
    steps = pl.cdiv(m8, tm)
    return tm, tm * steps


# ------------------------- Pallas kernels -------------------------

def _mm_kernel(x_ref, w_ref, b_ref, o_ref, *, act):
    y = jnp.dot(x_ref[...], w_ref[...], preferred_element_type=jnp.float32)
    o_ref[...] = _apply_act(y + b_ref[...], act).astype(o_ref.dtype)


def _fused_ir_s1_kernel(*refs, k, act, has_expand, use_res):
    """Fused inverted-residual block, stride 1 (grid over batch).

    expand(1x1, optional) -> depthwise kxk -> project(1x1) [+ residual],
    with the expanded activation held in a padded bf16 VMEM scratch.
    """
    i = 0
    x_ref = refs[i]; i += 1
    if has_expand:
        we_ref, be_ref = refs[i], refs[i + 1]; i += 2
    wd_ref, bd_ref, wp_ref, bp_ref, o_ref, ep_ref = refs[i:i + 6]

    _, h, w, cin = x_ref.shape
    ce = ep_ref.shape[-1]
    cout = o_ref.shape[-1]
    p = (k - 1) // 2

    x2d = x_ref[0].reshape(h * w, cin)
    if has_expand:
        e = jnp.dot(x2d, we_ref[...], preferred_element_type=jnp.float32)
        e = _apply_act(e + be_ref[...], act)
    else:
        e = x2d.astype(jnp.float32)

    # Zero padding of the expanded activation lives only in VMEM.
    ep_ref[...] = jnp.zeros_like(ep_ref)
    ep_ref[p:p + h, p:p + w, :] = e.reshape(h, w, ce).astype(ep_ref.dtype)

    # Depthwise: one width-shifted slice per dx; dy shift along the cheap
    # major dim.  f32 accumulation.
    acc = jnp.zeros((h, w, ce), jnp.float32)
    for dx in range(k):
        col = ep_ref[:, dx:dx + w, :].astype(jnp.float32)  # (h+2p, w, ce)
        for dy in range(k):
            acc = acc + col[dy:dy + h] * wd_ref[dy, dx:dx + 1, :]
    y = _apply_act(acc + bd_ref[...], act)

    out = jnp.dot(y.reshape(h * w, ce).astype(jnp.bfloat16), wp_ref[...],
                  preferred_element_type=jnp.float32) + bp_ref[...]
    if use_res:
        out = out + x2d.astype(jnp.float32)
    o_ref[0] = out.reshape(h, w, cout).astype(o_ref.dtype)


def _dw_proj_s2_kernel(*refs, k, act):
    """Fused stride-2 depthwise (4 space-to-depth phases) + project 1x1."""
    phases = refs[0:4]
    wd_ref, bd_ref, wp_ref, bp_ref, o_ref = refs[4:9]
    _, ho, wo, cout = o_ref.shape
    ce = wd_ref.shape[-1]

    acc = jnp.zeros((ho, wo, ce), jnp.float32)
    for dx in range(k):
        px, ox = dx % 2, dx // 2
        cols = [phases[2 * py + px][0, :, ox:ox + wo, :].astype(jnp.float32)
                for py in range(2)]
        for dy in range(k):
            py, oy = dy % 2, dy // 2
            acc = acc + cols[py][oy:oy + ho] * wd_ref[dy, dx:dx + 1, :]
    y = _apply_act(acc + bd_ref[...], act)

    out = jnp.dot(y.reshape(ho * wo, ce).astype(jnp.bfloat16), wp_ref[...],
                  preferred_element_type=jnp.float32) + bp_ref[...]
    o_ref[0] = out.reshape(ho, wo, cout).astype(o_ref.dtype)


def _pool_kernel(x_ref, o_ref):
    # AdaptiveAvgPool2d(1) over the flattened spatial axis of one image.
    o_ref[0] = jnp.mean(x_ref[0].astype(jnp.float32), axis=0,
                        keepdims=True).astype(o_ref.dtype)


def _head_mlp_kernel(x_ref, w1_ref, b1_ref, w2_ref, b2_ref, o_ref):
    h = jnp.dot(x_ref[...], w1_ref[...], preferred_element_type=jnp.float32)
    h = _apply_act(h + b1_ref[...], "hardswish")
    # Dropout(p=0.2) is identity in eval mode.
    y = jnp.dot(h.astype(jnp.bfloat16), w2_ref[...],
                preferred_element_type=jnp.float32) + b2_ref[...]
    o_ref[...] = y.astype(o_ref.dtype)


# ------------------------- layer wrappers -------------------------

def matmul_bias_act(x, w, bias, act="none", out_dtype=jnp.bfloat16):
    """(M,K) @ (K,N) + bias + activation, tiled over M."""
    M, K = x.shape
    N = w.shape[1]
    tm, Mp = _tile_m(M)
    if Mp != M:
        x = jnp.pad(x, ((0, Mp - M), (0, 0)))
    # TODO(synk): for Cout < 128, fold an M factor into the output lane dim
    # (wrapper-side reshape) to avoid masked partial stores.
    out = pl.pallas_call(
        partial(_mm_kernel, act=act),
        out_shape=jax.ShapeDtypeStruct((Mp, N), out_dtype),
        grid=(Mp // tm,),
        in_specs=[pl.BlockSpec((tm, K), lambda i: (i, 0)),
                  pl.BlockSpec((K, N), lambda i: (0, 0)),
                  pl.BlockSpec((1, N), lambda i: (0, 0))],
        out_specs=pl.BlockSpec((tm, N), lambda i: (i, 0)),
        compiler_params=pltpu.CompilerParams(
            dimension_semantics=("parallel",),
            vmem_limit_bytes=_VMEM_LIMIT),
    )(x, w, bias.reshape(1, N))
    return out[:M]


def conv1x1_bn_act(x, w, bias, act, out_dtype=jnp.bfloat16):
    """Pointwise conv with folded BN. x: (N,H,W,Cin), w: (Cin,Cout)."""
    n, h, wd_, cin = x.shape
    cout = w.shape[1]
    y = matmul_bias_act(x.reshape(n * h * wd_, cin), w, bias, act,
                        out_dtype=out_dtype)
    return y.reshape(n, h, wd_, cout)


def stem_conv_bn_act(x, w, bias, k, stride, act):
    """Dense kxk stem conv: im2col -> single (M, k*k*cin) tiled matmul."""
    n, h, wd_, cin = x.shape
    cout = w.shape[-1]
    pad = (k - 1) // 2
    xp = jnp.pad(x, ((0, 0), (pad, pad), (pad, pad), (0, 0)))
    ho = (h + 2 * pad - k) // stride + 1
    wo = (wd_ + 2 * pad - k) // stride + 1
    slabs = [xp[:, dy::stride, dx::stride, :][:, :ho, :wo, :]
             for dy in range(k) for dx in range(k)]
    patches = jnp.concatenate(slabs, axis=-1).reshape(n * ho * wo, k * k * cin)
    y = matmul_bias_act(patches, w, bias, act=act)
    return y.reshape(n, ho, wo, cout)


def fused_inverted_residual_s1(x, blk):
    """One pallas_call per stride-1 inverted-residual block."""
    cnf = blk["cnf"]
    k = cnf["kernel"]
    act = blk["act"]
    n, h, w, cin = x.shape
    ce, cout = cnf["expanded_c"], cnf["out_c"]
    p = (k - 1) // 2
    has_expand = "expand" in blk
    use_res = cnf["input_c"] == cnf["out_c"]

    args = [x]
    in_specs = [pl.BlockSpec((1, h, w, cin), lambda b: (b, 0, 0, 0))]
    if has_expand:
        args += [blk["expand"]["w"], blk["expand"]["b"].reshape(1, ce)]
        in_specs += [pl.BlockSpec((cin, ce), lambda b: (0, 0)),
                     pl.BlockSpec((1, ce), lambda b: (0, 0))]
    args += [blk["dw"]["w"], blk["dw"]["b"].reshape(1, ce),
             blk["project"]["w"], blk["project"]["b"].reshape(1, cout)]
    in_specs += [pl.BlockSpec((k, k, ce), lambda b: (0, 0, 0)),
                 pl.BlockSpec((1, ce), lambda b: (0, 0)),
                 pl.BlockSpec((ce, cout), lambda b: (0, 0)),
                 pl.BlockSpec((1, cout), lambda b: (0, 0))]

    # TODO(synk): for very large spatial resolutions, also tile over output
    # rows (with a 2p-row halo) so the padded expanded scratch fits v7x's
    # 64 MiB VMEM and both of its TensorCores get work at batch=1.
    return pl.pallas_call(
        partial(_fused_ir_s1_kernel, k=k, act=act, has_expand=has_expand,
                use_res=use_res),
        out_shape=jax.ShapeDtypeStruct((n, h, w, cout), jnp.bfloat16),
        grid=(n,),
        in_specs=in_specs,
        out_specs=pl.BlockSpec((1, h, w, cout), lambda b: (b, 0, 0, 0)),
        scratch_shapes=[pltpu.VMEM((h + 2 * p, w + 2 * p, ce), jnp.bfloat16)],
        compiler_params=pltpu.CompilerParams(
            dimension_semantics=("parallel",),
            vmem_limit_bytes=_VMEM_LIMIT),
    )(*args)


def dwconv_project_s2(x, blk):
    """Fused stride-2 depthwise + project (no residual for strided blocks)."""
    cnf = blk["cnf"]
    k = cnf["kernel"]
    act = blk["act"]
    n, h, wd_, ce = x.shape
    cout = cnf["out_c"]
    pad = (k - 1) // 2
    ho = (h + 2 * pad - k) // 2 + 1
    wo = (wd_ + 2 * pad - k) // 2 + 1
    eh = max(0, 2 * ho - h)
    ew = max(0, 2 * wo - wd_)
    # TODO(synk): the 4-phase extraction of the expanded activation still goes
    # through HBM (XLA cannot fuse into the pallas call); move the phase split
    # in-kernel (phase-split of the pre-expand input) in a follow-up.
    xp = jnp.pad(x, ((0, 0), (pad, pad + eh), (pad, pad + ew), (0, 0)))
    hp2, wp2 = ho + pad, wo + pad
    phases = [xp[:, py::2, px::2, :][:, :hp2, :wp2, :]
              for py in range(2) for px in range(2)]
    return pl.pallas_call(
        partial(_dw_proj_s2_kernel, k=k, act=act),
        out_shape=jax.ShapeDtypeStruct((n, ho, wo, cout), jnp.bfloat16),
        grid=(n,),
        in_specs=[pl.BlockSpec((1, hp2, wp2, ce), lambda b: (b, 0, 0, 0))] * 4
        + [pl.BlockSpec((k, k, ce), lambda b: (0, 0, 0)),
           pl.BlockSpec((1, ce), lambda b: (0, 0)),
           pl.BlockSpec((ce, cout), lambda b: (0, 0)),
           pl.BlockSpec((1, cout), lambda b: (0, 0))],
        out_specs=pl.BlockSpec((1, ho, wo, cout), lambda b: (b, 0, 0, 0)),
        compiler_params=pltpu.CompilerParams(
            dimension_semantics=("parallel",),
            vmem_limit_bytes=_VMEM_LIMIT),
    )(*phases, blk["dw"]["w"], blk["dw"]["b"].reshape(1, ce),
      blk["project"]["w"], blk["project"]["b"].reshape(1, cout))


def classifier_head(x, w1, b1, w2, b2):
    """avgpool (per image) -> batched fc1 + hardswish + (dropout=id) + fc2."""
    n, h, wd_, c = x.shape
    hw = h * wd_
    pooled = pl.pallas_call(
        _pool_kernel,
        out_shape=jax.ShapeDtypeStruct((n, 1, c), jnp.bfloat16),
        grid=(n,),
        in_specs=[pl.BlockSpec((1, hw, c), lambda b: (b, 0, 0))],
        out_specs=pl.BlockSpec((1, 1, c), lambda b: (b, 0, 0)),
        compiler_params=pltpu.CompilerParams(
            dimension_semantics=("parallel",),
            vmem_limit_bytes=_VMEM_LIMIT),
    )(x.reshape(n, hw, c)).reshape(n, c)

    lc, nc = w1.shape[1], w2.shape[1]
    out = pl.pallas_call(
        _head_mlp_kernel,
        out_shape=jax.ShapeDtypeStruct((n, nc), jnp.float32),
        grid=(1,),
        in_specs=[pl.BlockSpec((n, c), lambda i: (0, 0)),
                  pl.BlockSpec((c, lc), lambda i: (0, 0)),
                  pl.BlockSpec((1, lc), lambda i: (0, 0)),
                  pl.BlockSpec((lc, nc), lambda i: (0, 0)),
                  pl.BlockSpec((1, nc), lambda i: (0, 0))],
        out_specs=pl.BlockSpec((n, nc), lambda i: (0, 0)),
        compiler_params=pltpu.CompilerParams(vmem_limit_bytes=_VMEM_LIMIT),
    )(pooled, w1, b1.reshape(1, lc), w2, b2.reshape(1, nc))
    return out


# ------------------------- parameter init -------------------------

def _bn_scale_bias(c):
    gamma = jnp.ones((c,), jnp.float32)
    beta = jnp.zeros((c,), jnp.float32)
    mean = jnp.zeros((c,), jnp.float32)
    var = jnp.ones((c,), jnp.float32)
    scale = gamma / jnp.sqrt(var + BN_EPS)
    bias = beta - mean * scale
    return scale, bias


def _conv_weight(key, k, cin, cout, groups=1):
    fan_out = max(1, cout * k * k // groups)  # kaiming_normal_(mode='fan_out')
    std = math.sqrt(2.0 / fan_out)
    return std * jax.random.normal(key, (k, k, cin // groups, cout), jnp.float32)


def init_params(key, configs, last_channel, num_classes):
    keys = iter(jax.random.split(key, 64))
    params = {}

    c0 = configs[0]["input_c"]
    s, b = _bn_scale_bias(c0)
    w = _conv_weight(next(keys), 3, 3, c0) * s  # fold BN scale into weights
    params["stem"] = dict(w=w.reshape(9 * 3, c0).astype(jnp.bfloat16), b=b)

    blocks = []
    for cnf in configs:
        act = "hardswish" if cnf["activation"] == "HS" else "relu"
        blk = dict(cnf=cnf, act=act)
        if cnf["expanded_c"] != cnf["input_c"]:
            s, b = _bn_scale_bias(cnf["expanded_c"])
            w = _conv_weight(next(keys), 1, cnf["input_c"], cnf["expanded_c"]) * s
            blk["expand"] = dict(
                w=w.reshape(cnf["input_c"], cnf["expanded_c"]).astype(jnp.bfloat16),
                b=b)
        s, b = _bn_scale_bias(cnf["expanded_c"])
        w = _conv_weight(next(keys), cnf["kernel"], cnf["expanded_c"],
                         cnf["expanded_c"], groups=cnf["expanded_c"]) * s
        blk["dw"] = dict(
            w=w.reshape(cnf["kernel"], cnf["kernel"], cnf["expanded_c"]), b=b)
        # TODO(synk): use_se path (GlobalContextBlock) is not constructible in
        # the reference (`GlobalContextBlock(cnf.expanded_c)` misses the
        # required `ratio` argument), so all configs here use use_se=False.
        s, b = _bn_scale_bias(cnf["out_c"])
        w = _conv_weight(next(keys), 1, cnf["expanded_c"], cnf["out_c"]) * s
        blk["project"] = dict(
            w=w.reshape(cnf["expanded_c"], cnf["out_c"]).astype(jnp.bfloat16), b=b)
        blocks.append(blk)
    params["blocks"] = blocks

    last_in = configs[-1]["out_c"]
    last_out = 6 * last_in
    s, b = _bn_scale_bias(last_out)
    w = _conv_weight(next(keys), 1, last_in, last_out) * s
    params["last_conv"] = dict(
        w=w.reshape(last_in, last_out).astype(jnp.bfloat16), b=b)

    params["fc1"] = dict(
        w=(0.01 * jax.random.normal(next(keys), (last_out, last_channel),
                                    jnp.float32)).astype(jnp.bfloat16),
        b=jnp.zeros((last_channel,), jnp.float32))
    params["fc2"] = dict(
        w=(0.01 * jax.random.normal(next(keys), (last_channel, num_classes),
                                    jnp.float32)).astype(jnp.bfloat16),
        b=jnp.zeros((num_classes,), jnp.float32))
    return params


# ------------------------- forward pass -------------------------

def mobilenet_v3_forward(params, x_nchw):
    x = jnp.transpose(x_nchw, (0, 2, 3, 1)).astype(jnp.bfloat16)  # NCHW->NHWC

    p = params["stem"]
    x = stem_conv_bn_act(x, p["w"], p["b"], k=3, stride=2, act="hardswish")

    for blk in params["blocks"]:
        cnf = blk["cnf"]
        if cnf["stride"] == 1:
            x = fused_inverted_residual_s1(x, blk)
        else:  # stride == 2 (no residual possible)
            y = x
            if "expand" in blk:
                e = blk["expand"]
                y = conv1x1_bn_act(y, e["w"], e["b"], act=blk["act"])
            x = dwconv_project_s2(y, blk)

    p = params["last_conv"]
    x = conv1x1_bn_act(x, p["w"], p["b"], act="hardswish")

    return classifier_head(x, params["fc1"]["w"], params["fc1"]["b"],
                           params["fc2"]["w"], params["fc2"]["b"])


if __name__ == "__main__":
    width_multi = 1.0
    raw_setting = [
        # input_c, kernel, expanded_c, out_c, use_se, activation, stride
        (16, 3, 16, 16, False, "RE", 1),
        (16, 3, 64, 24, False, "RE", 2),
        (24, 3, 72, 24, False, "RE", 1),
        (24, 5, 96, 40, False, "HS", 2),
    ]
    configs = [
        dict(input_c=_make_divisible(ic * width_multi, 8),
             kernel=k,
             expanded_c=_make_divisible(ec * width_multi, 8),
             out_c=_make_divisible(oc * width_multi, 8),
             use_se=se, activation=act, stride=s)
        for (ic, k, ec, oc, se, act, s) in raw_setting
    ]
    last_channel = 128
    num_classes = 5

    key = jax.random.PRNGKey(0)
    kp, kx = jax.random.split(key)
    params = init_params(kp, configs, last_channel, num_classes)
    x = jax.random.normal(kx, (2, 3, 16, 16), jnp.float32)  # NCHW like PyTorch

    fwd = jax.jit(partial(mobilenet_v3_forward, params))
    out = fwd(x)
    jax.block_until_ready(out)
    assert out.shape == (2, num_classes), out.shape
    print("KERNEL_OK")
</pallas_src>

<mosaic_0001>
module attributes {stable_mosaic.version = 11 : i64} {
  func.func @_mm_kernel(%arg0: i32, %arg1: memref<128x27xbf16, #tpu.memory_space<vmem>>, %arg2: memref<27x16xbf16, #tpu.memory_space<vmem>>, %arg3: memref<1x16xf32, #tpu.memory_space<vmem>>, %arg4: memref<128x16xbf16, #tpu.memory_space<vmem>>) attributes {dimension_semantics = [#tpu.dimension_semantics<parallel>], iteration_bounds = array<i64: 1>, scalar_prefetch = 0 : i64, scratch_operands = 0 : i64, tpu.core_type = #tpu.core_type<tc>, window_params = [{transform_indices = @transform_0, window_bounds = array<i64: 128, 27>}, {pipeline_mode = #tpu.pipeline_mode<synchronous>, transform_indices = @transform_1, window_bounds = array<i64: 27, 16>}, {pipeline_mode = #tpu.pipeline_mode<synchronous>, transform_indices = @transform_2, window_bounds = array<i64: 1, 16>}, {transform_indices = @transform_3, window_bounds = array<i64: 128, 16>}]} {
    %c0 = arith.constant 0 : index
    %c0_0 = arith.constant 0 : index
    %0 = vector.load %arg1[%c0, %c0_0] : memref<128x27xbf16, #tpu.memory_space<vmem>>, vector<128x27xbf16>
    %c0_1 = arith.constant 0 : index
    %c0_2 = arith.constant 0 : index
    %1 = vector.load %arg2[%c0_1, %c0_2] : memref<27x16xbf16, #tpu.memory_space<vmem>>, vector<27x16xbf16>
    %cst = arith.constant dense<0.000000e+00> : vector<128x16xf32>
    %2 = tpu.matmul %0, %1, %cst {dimension_numbers = #tpu.dot_dimension_numbers<[1], [0], [0], [1], [0, 0, 1, 1], [], []>} : vector<128x27xbf16>, vector<27x16xbf16>, vector<128x16xf32> -> vector<128x16xf32>
    %c0_3 = arith.constant 0 : index
    %c0_4 = arith.constant 0 : index
    %3 = vector.load %arg3[%c0_3, %c0_4] : memref<1x16xf32, #tpu.memory_space<vmem>>, vector<1x16xf32>
    %4 = vector.broadcast %3 : vector<1x16xf32> to vector<128x16xf32>
    %5 = arith.addf %2, %4 : vector<128x16xf32>
    %cst_5 = arith.constant 3.000000e+00 : f32
    %6 = vector.broadcast %cst_5 : f32 to vector<128x16xf32>
    %7 = arith.addf %5, %6 : vector<128x16xf32>
    %cst_6 = arith.constant 0.000000e+00 : f32
    %cst_7 = arith.constant 6.000000e+00 : f32
    %8 = vector.broadcast %cst_6 : f32 to vector<128x16xf32>
    %9 = arith.maximumf %8, %7 : vector<128x16xf32>
    %10 = vector.broadcast %cst_7 : f32 to vector<128x16xf32>
    %11 = arith.minimumf %10, %9 : vector<128x16xf32>
    %12 = arith.mulf %5, %11 : vector<128x16xf32>
    %cst_8 = arith.constant 0.166666672 : f32
    %13 = vector.broadcast %cst_8 : f32 to vector<128x16xf32>
    %14 = arith.mulf %12, %13 : vector<128x16xf32>
    %15 = arith.truncf %14 : vector<128x16xf32> to vector<128x16xbf16>
    %c0_9 = arith.constant 0 : index
    %c0_10 = arith.constant 0 : index
    %16 = vector.load %arg4[%c0_9, %c0_10] : memref<128x16xbf16, #tpu.memory_space<vmem>>, vector<128x16xbf16>
    tpu.vector_store %arg4[%c0_9, %c0_10], %15 {strides = array<i32>} : memref<128x16xbf16, #tpu.memory_space<vmem>>, vector<128x16xbf16>,
    return
  }
  func.func @transform_0(%arg0: i32) -> (i32, i32) {
    %c0_i32 = arith.constant 0 : i32
    %c0_i32_0 = arith.constant 0 : i32
    return %arg0, %c0_i32 : i32, i32
  }
  func.func @transform_1(%arg0: i32) -> (i32, i32) {
    %c0_i32 = arith.constant 0 : i32
    %c0_i32_0 = arith.constant 0 : i32
    %c0_i32_1 = arith.constant 0 : i32
    return %c0_i32, %c0_i32_0 : i32, i32
  }
  func.func @transform_2(%arg0: i32) -> (i32, i32) {
    %c0_i32 = arith.constant 0 : i32
    %c0_i32_0 = arith.constant 0 : i32
    %c0_i32_1 = arith.constant 0 : i32
    return %c0_i32, %c0_i32_0 : i32, i32
  }
  func.func @transform_3(%arg0: i32) -> (i32, i32) {
    %c0_i32 = arith.constant 0 : i32
    %c0_i32_0 = arith.constant 0 : i32
    return %arg0, %c0_i32 : i32, i32
  }
}

module attributes {stable_mosaic.version = 11 : i64} {
  func.func @_mm_kernel(%arg0: i32, %arg1: memref<128x16xbf16, #tpu.memory_space<vmem>>, %arg2: memref<16x64xbf16, #tpu.memory_space<vmem>>, %arg3: memref<1x64xf32, #tpu.memory_space<vmem>>, %arg4: memref<128x64xbf16, #tpu.memory_space<vmem>>) attributes {dimension_semantics = [#tpu.dimension_semantics<parallel>], iteration_bounds = array<i64: 1>, scalar_prefetch = 0 : i64, scratch_operands = 0 : i64, tpu.core_type = #tpu.core_type<tc>, window_params = [{transform_indices = @transform_0, window_bounds = array<i64: 128, 16>}, {pipeline_mode = #tpu.pipeline_mode<synchronous>, transform_indices = @transform_1, window_bounds = array<i64: 16, 64>}, {pipeline_mode = #tpu.pipeline_mode<synchronous>, transform_indices = @transform_2, window_bounds = array<i64: 1, 64>}, {transform_indices = @transform_3, window_bounds = array<i64: 128, 64>}]} {
    %c0 = arith.constant 0 : index
    %c0_0 = arith.constant 0 : index
    %0 = vector.load %arg1[%c0, %c0_0] : memref<128x16xbf16, #tpu.memory_space<vmem>>, vector<128x16xbf16>
    %c0_1 = arith.constant 0 : index
    %c0_2 = arith.constant 0 : index
    %1 = vector.load %arg2[%c0_1, %c0_2] : memref<16x64xbf16, #tpu.memory_space<vmem>>, vector<16x64xbf16>
    %cst = arith.constant dense<0.000000e+00> : vector<128x64xf32>
    %2 = tpu.matmul %0, %1, %cst {dimension_numbers = #tpu.dot_dimension_numbers<[1], [0], [0], [1], [0, 0, 1, 1], [], []>} : vector<128x16xbf16>, vector<16x64xbf16>, vector<128x64xf32> -> vector<128x64xf32>
    %c0_3 = arith.constant 0 : index
    %c0_4 = arith.constant 0 : index
    %3 = vector.load %arg3[%c0_3, %c0_4] : memref<1x64xf32, #tpu.memory_space<vmem>>, vector<1x64xf32>
    %4 = vector.broadcast %3 : vector<1x64xf32> to vector<128x64xf32>
    %5 = arith.addf %2, %4 : vector<128x64xf32>
    %cst_5 = arith.constant 0.000000e+00 : f32
    %6 = vector.broadcast %cst_5 : f32 to vector<128x64xf32>
    %7 = arith.maximumf %5, %6 : vector<128x64xf32>
    %8 = arith.truncf %7 : vector<128x64xf32> to vector<128x64xbf16>
    %c0_6 = arith.constant 0 : index
    %c0_7 = arith.constant 0 : index
    %9 = vector.load %arg4[%c0_6, %c0_7] : memref<128x64xbf16, #tpu.memory_space<vmem>>, vector<128x64xbf16>
    tpu.vector_store %arg4[%c0_6, %c0_7], %8 {strides = array<i32>} : memref<128x64xbf16, #tpu.memory_space<vmem>>, vector<128x64xbf16>,
    return
  }
  func.func @transform_0(%arg0: i32) -> (i32, i32) {
    %c0_i32 = arith.constant 0 : i32
    %c0_i32_0 = arith.constant 0 : i32
    return %arg0, %c0_i32 : i32, i32
  }
  func.func @transform_1(%arg0: i32) -> (i32, i32) {
    %c0_i32 = arith.constant 0 : i32
    %c0_i32_0 = arith.constant 0 : i32
    %c0_i32_1 = arith.constant 0 : i32
    return %c0_i32, %c0_i32_0 : i32, i32
  }
  func.func @transform_2(%arg0: i32) -> (i32, i32) {
    %c0_i32 = arith.constant 0 : i32
    %c0_i32_0 = arith.constant 0 : i32
    %c0_i32_1 = arith.constant 0 : i32
    return %c0_i32, %c0_i32_0 : i32, i32
  }
  func.func @transform_3(%arg0: i32) -> (i32, i32) {
    %c0_i32 = arith.constant 0 : i32
    %c0_i32_0 = arith.constant 0 : i32
    return %arg0, %c0_i32 : i32, i32
  }
}

module attributes {stable_mosaic.version = 11 : i64} {
  func.func @_fused_ir_s1_kernel(%arg0: i32, %arg1: memref<1x8x8x16xbf16, #tpu.memory_space<vmem>>, %arg2: memref<3x3x16xf32, #tpu.memory_space<vmem>>, %arg3: memref<1x16xf32, #tpu.memory_space<vmem>>, %arg4: memref<16x16xbf16, #tpu.memory_space<vmem>>, %arg5: memref<1x16xf32, #tpu.memory_space<vmem>>, %arg6: memref<1x8x8x16xbf16, #tpu.memory_space<vmem>>, %arg7: memref<10x10x16xbf16, #tpu.memory_space<vmem>>) attributes {dimension_semantics = [#tpu.dimension_semantics<parallel>], iteration_bounds = array<i64: 2>, scalar_prefetch = 0 : i64, scratch_operands = 1 : i64, tpu.core_type = #tpu.core_type<tc>, window_params = [{transform_indices = @transform_0, window_bounds = array<i64: 1, 8, 8, 16>}, {pipeline_mode = #tpu.pipeline_mode<synchronous>, transform_indices = @transform_1, window_bounds = array<i64: 3, 3, 16>}, {pipeline_mode = #tpu.pipeline_mode<synchronous>, transform_indices = @transform_2, window_bounds = array<i64: 1, 16>}, {pipeline_mode = #tpu.pipeline_mode<synchronous>, transform_indices = @transform_3, window_bounds = array<i64: 16, 16>}, {pipeline_mode = #tpu.pipeline_mode<synchronous>, transform_indices = @transform_4, window_bounds = array<i64: 1, 16>}, {transform_indices = @transform_5, window_bounds = array<i64: 1, 8, 8, 16>}]} {
    %c0 = arith.constant 0 : index
    %c0_0 = arith.constant 0 : index
    %c0_1 = arith.constant 0 : index
    %c0_2 = arith.constant 0 : index
    %0 = vector.load %arg1[%c0, %c0_0, %c0_1, %c0_2] : memref<1x8x8x16xbf16, #tpu.memory_space<vmem>>, vector<1x8x8x16xbf16>
    %1 = vector.shape_cast %0 : vector<1x8x8x16xbf16> to vector<8x8x16xbf16>
    %2 = vector.shape_cast %1 : vector<8x8x16xbf16> to vector<64x16xbf16>
    %3 = arith.extf %2 : vector<64x16xbf16> to vector<64x16xf32>
    %cst = arith.constant 0.000000e+00 : bf16
    %4 = vector.broadcast %cst : bf16 to vector<10x10x16xbf16>
    %c0_3 = arith.constant 0 : index
    %c0_4 = arith.constant 0 : index
    %c0_5 = arith.constant 0 : index
    %5 = vector.load %arg7[%c0_3, %c0_4, %c0_5] : memref<10x10x16xbf16, #tpu.memory_space<vmem>>, vector<10x10x16xbf16>
    tpu.vector_store %arg7[%c0_3, %c0_4, %c0_5], %4 {strides = array<i32>} : memref<10x10x16xbf16, #tpu.memory_space<vmem>>, vector<10x10x16xbf16>,
    %6 = vector.shape_cast %3 : vector<64x16xf32> to vector<8x8x16xf32>
    %7 = arith.truncf %6 : vector<8x8x16xf32> to vector<8x8x16xbf16>
    %c1 = arith.constant 1 : index
    %c1_6 = arith.constant 1 : index
    %c0_7 = arith.constant 0 : index
    %8 = vector.load %arg7[%c1, %c1_6, %c0_7] : memref<10x10x16xbf16, #tpu.memory_space<vmem>>, vector<8x8x16xbf16>
    tpu.vector_store %arg7[%c1, %c1_6, %c0_7], %7 {strides = array<i32>} : memref<10x10x16xbf16, #tpu.memory_space<vmem>>, vector<8x8x16xbf16>,
    %cst_8 = arith.constant 0.000000e+00 : f32
    %9 = vector.broadcast %cst_8 : f32 to vector<8x8x16xf32>
    %c0_9 = arith.constant 0 : index
    %c0_10 = arith.constant 0 : index
    %c0_11 = arith.constant 0 : index
    %10 = vector.load %arg7[%c0_9, %c0_10, %c0_11] : memref<10x10x16xbf16, #tpu.memory_space<vmem>>, vector<10x8x16xbf16>
    %11 = arith.extf %10 : vector<10x8x16xbf16> to vector<10x8x16xf32>
    %12 = vector.extract_strided_slice %11 {offsets = [0, 0, 0], sizes = [8, 8, 16], strides = [1, 1, 1]} : vector<10x8x16xf32> to vector<8x8x16xf32>
    %c0_12 = arith.constant 0 : index
    %c0_13 = arith.constant 0 : index
    %c0_14 = arith.constant 0 : index
    %13 = vector.load %arg2[%c0_12, %c0_13, %c0_14] : memref<3x3x16xf32, #tpu.memory_space<vmem>>, vector<1x1x16xf32>
    %14 = vector.shape_cast %13 : vector<1x1x16xf32> to vector<1x16xf32>
    %15 = vector.shape_cast %14 : vector<1x16xf32> to vector<1x1x16xf32>
    %16 = vector.broadcast %15 : vector<1x1x16xf32> to vector<8x8x16xf32>
    %17 = arith.mulf %12, %16 : vector<8x8x16xf32>
    %18 = arith.addf %9, %17 : vector<8x8x16xf32>
    %19 = vector.extract_strided_slice %11 {offsets = [1, 0, 0], sizes = [8, 8, 16], strides = [1, 1, 1]} : vector<10x8x16xf32> to vector<8x8x16xf32>
    %c1_15 = arith.constant 1 : index
    %c0_16 = arith.constant 0 : index
    %c0_17 = arith.constant 0 : index
    %20 = vector.load %arg2[%c1_15, %c0_16, %c0_17] : memref<3x3x16xf32, #tpu.memory_space<vmem>>, vector<1x1x16xf32>
    %21 = vector.shape_cast %20 : vector<1x1x16xf32> to vector<1x16xf32>
    %22 = vector.shape_cast %21 : vector<1x16xf32> to vector<1x1x16xf32>
    %23 = vector.broadcast %22 : vector<1x1x16xf32> to vector<8x8x16xf32>
    %24 = arith.mulf %19, %23 : vector<8x8x16xf32>
    %25 = arith.addf %18, %24 : vector<8x8x16xf32>
    %26 = vector.extract_strided_slice %11 {offsets = [2, 0, 0], sizes = [8, 8, 16], strides = [1, 1, 1]} : vector<10x8x16xf32> to vector<8x8x16xf32>
    %c2 = arith.constant 2 : index
    %c0_18 = arith.constant 0 : index
    %c0_19 = arith.constant 0 : index
    %27 = vector.load %arg2[%c2, %c0_18, %c0_19] : memref<3x3x16xf32, #tpu.memory_space<vmem>>, vector<1x1x16xf32>
    %28 = vector.shape_cast %27 : vector<1x1x16xf32> to vector<1x16xf32>
    %29 = vector.shape_cast %28 : vector<1x16xf32> to vector<1x1x16xf32>
    %30 = vector.broadcast %29 : vector<1x1x16xf32> to vector<8x8x16xf32>
    %31 = arith.mulf %26, %30 : vector<8x8x16xf32>
    %32 = arith.addf %25, %31 : vector<8x8x16xf32>
    %c0_20 = arith.constant 0 : index
    %c1_21 = arith.constant 1 : index
    %c0_22 = arith.constant 0 : index
    %33 = vector.load %arg7[%c0_20, %c1_21, %c0_22] : memref<10x10x16xbf16, #tpu.memory_space<vmem>>, vector<10x8x16xbf16>
    %34 = arith.extf %33 : vector<10x8x16xbf16> to vector<10x8x16xf32>
    %35 = vector.extract_strided_slice %34 {offsets = [0, 0, 0], sizes = [8, 8, 16], strides = [1, 1, 1]} : vector<10x8x16xf32> to vector<8x8x16xf32>
    %c0_23 = arith.constant 0 : index
    %c1_24 = arith.constant 1 : index
    %c0_25 = arith.constant 0 : index
    %36 = vector.load %arg2[%c0_23, %c1_24, %c0_25] : memref<3x3x16xf32, #tpu.memory_space<vmem>>, vector<1x1x16xf32>
    %37 = vector.shape_cast %36 : vector<1x1x16xf32> to vector<1x16xf32>
    %38 = vector.shape_cast %37 : vector<1x16xf32> to vector<1x1x16xf32>
    %39 = vector.broadcast %38 : vector<1x1x16xf32> to vector<8x8x16xf32>
    %40 = arith.mulf %35, %39 : vector<8x8x16xf32>
    %41 = arith.addf %32, %40 : vector<8x8x16xf32>
    %42 = vector.extract_strided_slice %34 {offsets = [1, 0, 0], sizes = [8, 8, 16], strides = [1, 1, 1]} : vector<10x8x16xf32> to vector<8x8x16xf32>
    %c1_26 = arith.constant 1 : index
    %c1_27 = arith.constant 1 : index
    %c0_28 = arith.constant 0 : index
    %43 = vector.load %arg2[%c1_26, %c1_27, %c0_28] : memref<3x3x16xf32, #tpu.memory_space<vmem>>, vector<1x1x16xf32>
    %44 = vector.shape_cast %43 : vector<1x1x16xf32> to vector<1x16xf32>
    %45 = vector.shape_cast %44 : vector<1x16xf32> to vector<1x1x16xf32>
    %46 = vector.broadcast %45 : vector<1x1x16xf32> to vector<8x8x16xf32>
    %47 = arith.mulf %42, %46 : vector<8x8x16xf32>
    %48 = arith.addf %41, %47 : vector<8x8x16xf32>
    %49 = vector.extract_strided_slice %34 {offsets = [2, 0, 0], sizes = [8, 8, 16], strides = [1, 1, 1]} : vector<10x8x16xf32> to vector<8x8x16xf32>
    %c2_29 = arith.constant 2 : index
    %c1_30 = arith.constant 1 : index
    %c0_31 = arith.constant 0 : index
    %50 = vector.load %arg2[%c2_29, %c1_30, %c0_31] : memref<3x3x16xf32, #tpu.memory_space<vmem>>, vector<1x1x16xf32>
    %51 = vector.shape_cast %50 : vector<1x1x16xf32> to vector<1x16xf32>
    %52 = vector.shape_cast %51 : vector<1x16xf32> to vector<1x1x16xf32>
    %53 = vector.broadcast %52 : vector<1x1x16xf32> to vector<8x8x16xf32>
    %54 = arith.mulf %49, %53 : vector<8x8x16xf32>
    %55 = arith.addf %48, %54 : vector<8x8x16xf32>
    %c0_32 = arith.constant 0 : index
    %c2_33 = arith.constant 2 : index
    %c0_34 = arith.constant 0 : index
    %56 = vector.load %arg7[%c0_32, %c2_33, %c0_34] : memref<10x10x16xbf16, #tpu.memory_space<vmem>>, vector<10x8x16xbf16>
    %57 = arith.extf %56 : vector<10x8x16xbf16> to vector<10x8x16xf32>
    %58 = vector.extract_strided_slice %57 {offsets = [0, 0, 0], sizes = [8, 8, 16], strides = [1, 1, 1]} : vector<10x8x16xf32> to vector<8x8x16xf32>
    %c0_35 = arith.constant 0 : index
    %c2_36 = arith.constant 2 : index
    %c0_37 = arith.constant 0 : index
    %59 = vector.load %arg2[%c0_35, %c2_36, %c0_37] : memref<3x3x16xf32, #tpu.memory_space<vmem>>, vector<1x1x16xf32>
    %60 = vector.shape_cast %59 : vector<1x1x16xf32> to vector<1x16xf32>
    %61 = vector.shape_cast %60 : vector<1x16xf32> to vector<1x1x16xf32>
    %62 = vector.broadcast %61 : vector<1x1x16xf32> to vector<8x8x16xf32>
    %63 = arith.mulf %58, %62 : vector<8x8x16xf32>
    %64 = arith.addf %55, %63 : vector<8x8x16xf32>
    %65 = vector.extract_strided_slice %57 {offsets = [1, 0, 0], sizes = [8, 8, 16], strides = [1, 1, 1]} : vector<10x8x16xf32> to vector<8x8x16xf32>
    %c1_38 = arith.constant 1 : index
    %c2_39 = arith.constant 2 : index
    %c0_40 = arith.constant 0 : index
    %66 = vector.load %arg2[%c1_38, %c2_39, %c0_40] : memref<3x3x16xf32, #tpu.memory_space<vmem>>, vector<1x1x16xf32>
    %67 = vector.shape_cast %66 : vector<1x1x16xf32> to vector<1x16xf32>
    %68 = vector.shape_cast %67 : vector<1x16xf32> to vector<1x1x16xf32>
    %69 = vector.broadcast %68 : vector<1x1x16xf32> to vector<8x8x16xf32>
    %70 = arith.mulf %65, %69 : vector<8x8x16xf32>
    %71 = arith.addf %64, %70 : vector<8x8x16xf32>
    %72 = vector.extract_strided_slice %57 {offsets = [2, 0, 0], sizes = [8, 8, 16], strides = [1, 1, 1]} : vector<10x8x16xf32> to vector<8x8x16xf32>
    %c2_41 = arith.constant 2 : index
    %c2_42 = arith.constant 2 : index
    %c0_43 = arith.constant 0 : index
    %73 = vector.load %arg2[%c2_41, %c2_42, %c0_43] : memref<3x3x16xf32, #tpu.memory_space<vmem>>, vector<1x1x16xf32>
    %74 = vector.shape_cast %73 : vector<1x1x16xf32> to vector<1x16xf32>
    %75 = vector.shape_cast %74 : vector<1x16xf32> to vector<1x1x16xf32>
    %76 = vector.broadcast %75 : vector<1x1x16xf32> to vector<8x8x16xf32>
    %77 = arith.mulf %72, %76 : vector<8x8x16xf32>
    %78 = arith.addf %71, %77 : vector<8x8x16xf32>
    %c0_44 = arith.constant 0 : index
    %c0_45 = arith.constant 0 : index
    %79 = vector.load %arg3[%c0_44, %c0_45] : memref<1x16xf32, #tpu.memory_space<vmem>>, vector<1x16xf32>
    %80 = vector.shape_cast %79 : vector<1x16xf32> to vector<1x1x16xf32>
    %81 = vector.broadcast %80 : vector<1x1x16xf32> to vector<8x8x16xf32>
    %82 = arith.addf %78, %81 : vector<8x8x16xf32>
    %cst_46 = arith.constant 0.000000e+00 : f32
    %83 = vector.broadcast %cst_46 : f32 to vector<8x8x16xf32>
    %84 = arith.maximumf %82, %83 : vector<8x8x16xf32>
    %85 = vector.shape_cast %84 : vector<8x8x16xf32> to vector<64x16xf32>
    %86 = arith.truncf %85 : vector<64x16xf32> to vector<64x16xbf16>
    %c0_47 = arith.constant 0 : index
    %c0_48 = arith.constant 0 : index
    %87 = vector.load %arg4[%c0_47, %c0_48] : memref<16x16xbf16, #tpu.memory_space<vmem>>, vector<16x16xbf16>
    %cst_49 = arith.constant dense<0.000000e+00> : vector<64x16xf32>
    %88 = tpu.matmul %86, %87, %cst_49 {dimension_numbers = #tpu.dot_dimension_numbers<[1], [0], [0], [1], [0, 0, 1, 1], [], []>} : vector<64x16xbf16>, vector<16x16xbf16>, vector<64x16xf32> -> vector<64x16xf32>
    %c0_50 = arith.constant 0 : index
    %c0_51 = arith.constant 0 : index
    %89 = vector.load %arg5[%c0_50, %c0_51] : memref<1x16xf32, #tpu.memory_space<vmem>>, vector<1x16xf32>
    %90 = vector.broadcast %89 : vector<1x16xf32> to vector<64x16xf32>
    %91 = arith.addf %88, %90 : vector<64x16xf32>
    %92 = arith.extf %2 : vector<64x16xbf16> to vector<64x16xf32>
    %93 = arith.addf %91, %92 : vector<64x16xf32>
    %94 = vector.shape_cast %93 : vector<64x16xf32> to vector<8x8x16xf32>
    %95 = arith.truncf %94 : vector<8x8x16xf32> to vector<8x8x16xbf16>
    %c0_52 = arith.constant 0 : index
    %c0_53 = arith.constant 0 : index
    %c0_54 = arith.constant 0 : index
    %c0_55 = arith.constant 0 : index
    %96 = vector.load %arg6[%c0_52, %c0_53, %c0_54, %c0_55] : memref<1x8x8x16xbf16, #tpu.memory_space<vmem>>, vector<1x8x8x16xbf16>
    %97 = vector.shape_cast %96 : vector<1x8x8x16xbf16> to vector<8x8x16xbf16>
    %98 = vector.shape_cast %95 : vector<8x8x16xbf16> to vector<1x8x8x16xbf16>
    tpu.vector_store %arg6[%c0_52, %c0_53, %c0_54, %c0_55], %98 {strides = array<i32>} : memref<1x8x8x16xbf16, #tpu.memory_space<vmem>>, vector<1x8x8x16xbf16>,
    return
  }
  func.func @transform_0(%arg0: i32) -> (i32, i32, i32, i32) {
    %c0_i32 = arith.constant 0 : i32
    %c0_i32_0 = arith.constant 0 : i32
    %c0_i32_1 = arith.constant 0 : i32
    %c0_i32_2 = arith.constant 0 : i32
    return %arg0, %c0_i32, %c0_i32_0, %c0_i32_1 : i32, i32, i32, i32
  }
  func.func @transform_1(%arg0: i32) -> (i32, i32, i32) {
    %c0_i32 = arith.constant 0 : i32
    %c0_i32_0 = arith.constant 0 : i32
    %c0_i32_1 = arith.constant 0 : i32
    %c0_i32_2 = arith.constant 0 : i32
    return %c0_i32, %c0_i32_0, %c0_i32_1 : i32, i32, i32
  }
  func.func @transform_2(%arg0: i32) -> (i32, i32) {
    %c0_i32 = arith.constant 0 : i32
    %c0_i32_0 = arith.constant 0 : i32
    %c0_i32_1 = arith.constant 0 : i32
    return %c0_i32, %c0_i32_0 : i32, i32
  }
  func.func @transform_3(%arg0: i32) -> (i32, i32) {
    %c0_i32 = arith.constant 0 : i32
    %c0_i32_0 = arith.constant 0 : i32
    %c0_i32_1 = arith.constant 0 : i32
    return %c0_i32, %c0_i32_0 : i32, i32
  }
  func.func @transform_4(%arg0: i32) -> (i32, i32) {
    %c0_i32 = arith.constant 0 : i32
    %c0_i32_0 = arith.constant 0 : i32
    %c0_i32_1 = arith.constant 0 : i32
    return %c0_i32, %c0_i32_0 : i32, i32
  }
  func.func @transform_5(%arg0: i32) -> (i32, i32, i32, i32) {
    %c0_i32 = arith.constant 0 : i32
    %c0_i32_0 = arith.constant 0 : i32
    %c0_i32_1 = arith.constant 0 : i32
    %c0_i32_2 = arith.constant 0 : i32
    return %arg0, %c0_i32, %c0_i32_0, %c0_i32_1 : i32, i32, i32, i32
  }
}

module attributes {stable_mosaic.version = 11 : i64} {
  func.func @_fused_ir_s1_kernel(%arg0: i32, %arg1: memref<1x4x4x24xbf16, #tpu.memory_space<vmem>>, %arg2: memref<24x72xbf16, #tpu.memory_space<vmem>>, %arg3: memref<1x72xf32, #tpu.memory_space<vmem>>, %arg4: memref<3x3x72xf32, #tpu.memory_space<vmem>>, %arg5: memref<1x72xf32, #tpu.memory_space<vmem>>, %arg6: memref<72x24xbf16, #tpu.memory_space<vmem>>, %arg7: memref<1x24xf32, #tpu.memory_space<vmem>>, %arg8: memref<1x4x4x24xbf16, #tpu.memory_space<vmem>>, %arg9: memref<6x6x72xbf16, #tpu.memory_space<vmem>>) attributes {dimension_semantics = [#tpu.dimension_semantics<parallel>], iteration_bounds = array<i64: 2>, scalar_prefetch = 0 : i64, scratch_operands = 1 : i64, tpu.core_type = #tpu.core_type<tc>, window_params = [{transform_indices = @transform_0, window_bounds = array<i64: 1, 4, 4, 24>}, {pipeline_mode = #tpu.pipeline_mode<synchronous>, transform_indices = @transform_1, window_bounds = array<i64: 24, 72>}, {pipeline_mode = #tpu.pipeline_mode<synchronous>, transform_indices = @transform_2, window_bounds = array<i64: 1, 72>}, {pipeline_mode = #tpu.pipeline_mode<synchronous>, transform_indices = @transform_3, window_bounds = array<i64: 3, 3, 72>}, {pipeline_mode = #tpu.pipeline_mode<synchronous>, transform_indices = @transform_4, window_bounds = array<i64: 1, 72>}, {pipeline_mode = #tpu.pipeline_mode<synchronous>, transform_indices = @transform_5, window_bounds = array<i64: 72, 24>}, {pipeline_mode = #tpu.pipeline_mode<synchronous>, transform_indices = @transform_6, window_bounds = array<i64: 1, 24>}, {transform_indices = @transform_7, window_bounds = array<i64: 1, 4, 4, 24>}]} {
    %c0 = arith.constant 0 : index
    %c0_0 = arith.constant 0 : index
    %c0_1 = arith.constant 0 : index
    %c0_2 = arith.constant 0 : index
    %0 = vector.load %arg1[%c0, %c0_0, %c0_1, %c0_2] : memref<1x4x4x24xbf16, #tpu.memory_space<vmem>>, vector<1x4x4x24xbf16>
    %1 = vector.shape_cast %0 : vector<1x4x4x24xbf16> to vector<4x4x24xbf16>
    %2 = vector.shape_cast %1 : vector<4x4x24xbf16> to vector<16x24xbf16>
    %c0_3 = arith.constant 0 : index
    %c0_4 = arith.constant 0 : index
    %3 = vector.load %arg2[%c0_3, %c0_4] : memref<24x72xbf16, #tpu.memory_space<vmem>>, vector<24x72xbf16>
    %cst = arith.constant dense<0.000000e+00> : vector<16x72xf32>
    %4 = tpu.matmul %2, %3, %cst {dimension_numbers = #tpu.dot_dimension_numbers<[1], [0], [0], [1], [0, 0, 1, 1], [], []>} : vector<16x24xbf16>, vector<24x72xbf16>, vector<16x72xf32> -> vector<16x72xf32>
    %c0_5 = arith.constant 0 : index
    %c0_6 = arith.constant 0 : index
    %5 = vector.load %arg3[%c0_5, %c0_6] : memref<1x72xf32, #tpu.memory_space<vmem>>, vector<1x72xf32>
    %6 = vector.broadcast %5 : vector<1x72xf32> to vector<16x72xf32>
    %7 = arith.addf %4, %6 : vector<16x72xf32>
    %cst_7 = arith.constant 0.000000e+00 : f32
    %8 = vector.broadcast %cst_7 : f32 to vector<16x72xf32>
    %9 = arith.maximumf %7, %8 : vector<16x72xf32>
    %cst_8 = arith.constant 0.000000e+00 : bf16
    %10 = vector.broadcast %cst_8 : bf16 to vector<6x6x72xbf16>
    %c0_9 = arith.constant 0 : index
    %c0_10 = arith.constant 0 : index
    %c0_11 = arith.constant 0 : index
    %11 = vector.load %arg9[%c0_9, %c0_10, %c0_11] : memref<6x6x72xbf16, #tpu.memory_space<vmem>>, vector<6x6x72xbf16>
    tpu.vector_store %arg9[%c0_9, %c0_10, %c0_11], %10 {strides = array<i32>} : memref<6x6x72xbf16, #tpu.memory_space<vmem>>, vector<6x6x72xbf16>,
    %12 = vector.shape_cast %9 : vector<16x72xf32> to vector<4x4x72xf32>
    %13 = arith.truncf %12 : vector<4x4x72xf32> to vector<4x4x72xbf16>
    %c1 = arith.constant 1 : index
    %c1_12 = arith.constant 1 : index
    %c0_13 = arith.constant 0 : index
    %14 = vector.load %arg9[%c1, %c1_12, %c0_13] : memref<6x6x72xbf16, #tpu.memory_space<vmem>>, vector<4x4x72xbf16>
    tpu.vector_store %arg9[%c1, %c1_12, %c0_13], %13 {strides = array<i32>} : memref<6x6x72xbf16, #tpu.memory_space<vmem>>, vector<4x4x72xbf16>,
    %cst_14 = arith.constant 0.000000e+00 : f32
    %15 = vector.broadcast %cst_14 : f32 to vector<4x4x72xf32>
    %c0_15 = arith.constant 0 : index
    %c0_16 = arith.constant 0 : index
    %c0_17 = arith.constant 0 : index
    %16 = vector.load %arg9[%c0_15, %c0_16, %c0_17] : memref<6x6x72xbf16, #tpu.memory_space<vmem>>, vector<6x4x72xbf16>
    %17 = arith.extf %16 : vector<6x4x72xbf16> to vector<6x4x72xf32>
    %18 = vector.extract_strided_slice %17 {offsets = [0, 0, 0], sizes = [4, 4, 72], strides = [1, 1, 1]} : vector<6x4x72xf32> to vector<4x4x72xf32>
    %c0_18 = arith.constant 0 : index
    %c0_19 = arith.constant 0 : index
    %c0_20 = arith.constant 0 : index
    %19 = vector.load %arg4[%c0_18, %c0_19, %c0_20] : memref<3x3x72xf32, #tpu.memory_space<vmem>>, vector<1x1x72xf32>
    %20 = vector.shape_cast %19 : vector<1x1x72xf32> to vector<1x72xf32>
    %21 = vector.shape_cast %20 : vector<1x72xf32> to vector<1x1x72xf32>
    %22 = vector.broadcast %21 : vector<1x1x72xf32> to vector<4x4x72xf32>
    %23 = arith.mulf %18, %22 : vector<4x4x72xf32>
    %24 = arith.addf %15, %23 : vector<4x4x72xf32>
    %25 = vector.extract_strided_slice %17 {offsets = [1, 0, 0], sizes = [4, 4, 72], strides = [1, 1, 1]} : vector<6x4x72xf32> to vector<4x4x72xf32>
    %c1_21 = arith.constant 1 : index
    %c0_22 = arith.constant 0 : index
    %c0_23 = arith.constant 0 : index
    %26 = vector.load %arg4[%c1_21, %c0_22, %c0_23] : memref<3x3x72xf32, #tpu.memory_space<vmem>>, vector<1x1x72xf32>
    %27 = vector.shape_cast %26 : vector<1x1x72xf32> to vector<1x72xf32>
    %28 = vector.shape_cast %27 : vector<1x72xf32> to vector<1x1x72xf32>
    %29 = vector.broadcast %28 : vector<1x1x72xf32> to vector<4x4x72xf32>
    %30 = arith.mulf %25, %29 : vector<4x4x72xf32>
    %31 = arith.addf %24, %30 : vector<4x4x72xf32>
    %32 = vector.extract_strided_slice %17 {offsets = [2, 0, 0], sizes = [4, 4, 72], strides = [1, 1, 1]} : vector<6x4x72xf32> to vector<4x4x72xf32>
    %c2 = arith.constant 2 : index
    %c0_24 = arith.constant 0 : index
    %c0_25 = arith.constant 0 : index
    %33 = vector.load %arg4[%c2, %c0_24, %c0_25] : memref<3x3x72xf32, #tpu.memory_space<vmem>>, vector<1x1x72xf32>
    %34 = vector.shape_cast %33 : vector<1x1x72xf32> to vector<1x72xf32>
    %35 = vector.shape_cast %34 : vector<1x72xf32> to vector<1x1x72xf32>
    %36 = vector.broadcast %35 : vector<1x1x72xf32> to vector<4x4x72xf32>
    %37 = arith.mulf %32, %36 : vector<4x4x72xf32>
    %38 = arith.addf %31, %37 : vector<4x4x72xf32>
    %c0_26 = arith.constant 0 : index
    %c1_27 = arith.constant 1 : index
    %c0_28 = arith.constant 0 : index
    %39 = vector.load %arg9[%c0_26, %c1_27, %c0_28] : memref<6x6x72xbf16, #tpu.memory_space<vmem>>, vector<6x4x72xbf16>
    %40 = arith.extf %39 : vector<6x4x72xbf16> to vector<6x4x72xf32>
    %41 = vector.extract_strided_slice %40 {offsets = [0, 0, 0], sizes = [4, 4, 72], strides = [1, 1, 1]} : vector<6x4x72xf32> to vector<4x4x72xf32>
    %c0_29 = arith.constant 0 : index
    %c1_30 = arith.constant 1 : index
    %c0_31 = arith.constant 0 : index
    %42 = vector.load %arg4[%c0_29, %c1_30, %c0_31] : memref<3x3x72xf32, #tpu.memory_space<vmem>>, vector<1x1x72xf32>
    %43 = vector.shape_cast %42 : vector<1x1x72xf32> to vector<1x72xf32>
    %44 = vector.shape_cast %43 : vector<1x72xf32> to vector<1x1x72xf32>
    %45 = vector.broadcast %44 : vector<1x1x72xf32> to vector<4x4x72xf32>
    %46 = arith.mulf %41, %45 : vector<4x4x72xf32>
    %47 = arith.addf %38, %46 : vector<4x4x72xf32>
    %48 = vector.extract_strided_slice %40 {offsets = [1, 0, 0], sizes = [4, 4, 72], strides = [1, 1, 1]} : vector<6x4x72xf32> to vector<4x4x72xf32>
    %c1_32 = arith.constant 1 : index
    %c1_33 = arith.constant 1 : index
    %c0_34 = arith.constant 0 : index
    %49 = vector.load %arg4[%c1_32, %c1_33, %c0_34] : memref<3x3x72xf32, #tpu.memory_space<vmem>>, vector<1x1x72xf32>
    %50 = vector.shape_cast %49 : vector<1x1x72xf32> to vector<1x72xf32>
    %51 = vector.shape_cast %50 : vector<1x72xf32> to vector<1x1x72xf32>
    %52 = vector.broadcast %51 : vector<1x1x72xf32> to vector<4x4x72xf32>
    %53 = arith.mulf %48, %52 : vector<4x4x72xf32>
    %54 = arith.addf %47, %53 : vector<4x4x72xf32>
    %55 = vector.extract_strided_slice %40 {offsets = [2, 0, 0], sizes = [4, 4, 72], strides = [1, 1, 1]} : vector<6x4x72xf32> to vector<4x4x72xf32>
    %c2_35 = arith.constant 2 : index
    %c1_36 = arith.constant 1 : index
    %c0_37 = arith.constant 0 : index
    %56 = vector.load %arg4[%c2_35, %c1_36, %c0_37] : memref<3x3x72xf32, #tpu.memory_space<vmem>>, vector<1x1x72xf32>
    %57 = vector.shape_cast %56 : vector<1x1x72xf32> to vector<1x72xf32>
    %58 = vector.shape_cast %57 : vector<1x72xf32> to vector<1x1x72xf32>
    %59 = vector.broadcast %58 : vector<1x1x72xf32> to vector<4x4x72xf32>
    %60 = arith.mulf %55, %59 : vector<4x4x72xf32>
    %61 = arith.addf %54, %60 : vector<4x4x72xf32>
    %c0_38 = arith.constant 0 : index
    %c2_39 = arith.constant 2 : index
    %c0_40 = arith.constant 0 : index
    %62 = vector.load %arg9[%c0_38, %c2_39, %c0_40] : memref<6x6x72xbf16, #tpu.memory_space<vmem>>, vector<6x4x72xbf16>
    %63 = arith.extf %62 : vector<6x4x72xbf16> to vector<6x4x72xf32>
    %64 = vector.extract_strided_slice %63 {offsets = [0, 0, 0], sizes = [4, 4, 72], strides = [1, 1, 1]} : vector<6x4x72xf32> to vector<4x4x72xf32>
    %c0_41 = arith.constant 0 : index
    %c2_42 = arith.constant 2 : index
    %c0_43 = arith.constant 0 : index
    %65 = vector.load %arg4[%c0_41, %c2_42, %c0_43] : memref<3x3x72xf32, #tpu.memory_space<vmem>>, vector<1x1x72xf32>
    %66 = vector.shape_cast %65 : vector<1x1x72xf32> to vector<1x72xf32>
    %67 = vector.shape_cast %66 : vector<1x72xf32> to vector<1x1x72xf32>
    %68 = vector.broadcast %67 : vector<1x1x72xf32> to vector<4x4x72xf32>
    %69 = arith.mulf %64, %68 : vector<4x4x72xf32>
    %70 = arith.addf %61, %69 : vector<4x4x72xf32>
    %71 = vector.extract_strided_slice %63 {offsets = [1, 0, 0], sizes = [4, 4, 72], strides = [1, 1, 1]} : vector<6x4x72xf32> to vector<4x4x72xf32>
    %c1_44 = arith.constant 1 : index
    %c2_45 = arith.constant 2 : index
    %c0_46 = arith.constant 0 : index
    %72 = vector.load %arg4[%c1_44, %c2_45, %c0_46] : memref<3x3x72xf32, #tpu.memory_space<vmem>>, vector<1x1x72xf32>
    %73 = vector.shape_cast %72 : vector<1x1x72xf32> to vector<1x72xf32>
    %74 = vector.shape_cast %73 : vector<1x72xf32> to vector<1x1x72xf32>
    %75 = vector.broadcast %74 : vector<1x1x72xf32> to vector<4x4x72xf32>
    %76 = arith.mulf %71, %75 : vector<4x4x72xf32>
    %77 = arith.addf %70, %76 : vector<4x4x72xf32>
    %78 = vector.extract_strided_slice %63 {offsets = [2, 0, 0], sizes = [4, 4, 72], strides = [1, 1, 1]} : vector<6x4x72xf32> to vector<4x4x72xf32>
    %c2_47 = arith.constant 2 : index
    %c2_48 = arith.constant 2 : index
    %c0_49 = arith.constant 0 : index
    %79 = vector.load %arg4[%c2_47, %c2_48, %c0_49] : memref<3x3x72xf32, #tpu.memory_space<vmem>>, vector<1x1x72xf32>
    %80 = vector.shape_cast %79 : vector<1x1x72xf32> to vector<1x72xf32>
    %81 = vector.shape_cast %80 : vector<1x72xf32> to vector<1x1x72xf32>
    %82 = vector.broadcast %81 : vector<1x1x72xf32> to vector<4x4x72xf32>
    %83 = arith.mulf %78, %82 : vector<4x4x72xf32>
    %84 = arith.addf %77, %83 : vector<4x4x72xf32>
    %c0_50 = arith.constant 0 : index
    %c0_51 = arith.constant 0 : index
    %85 = vector.load %arg5[%c0_50, %c0_51] : memref<1x72xf32, #tpu.memory_space<vmem>>, vector<1x72xf32>
    %86 = vector.shape_cast %85 : vector<1x72xf32> to vector<1x1x72xf32>
    %87 = vector.broadcast %86 : vector<1x1x72xf32> to vector<4x4x72xf32>
    %88 = arith.addf %84, %87 : vector<4x4x72xf32>
    %cst_52 = arith.constant 0.000000e+00 : f32
    %89 = vector.broadcast %cst_52 : f32 to vector<4x4x72xf32>
    %90 = arith.maximumf %88, %89 : vector<4x4x72xf32>
    %91 = vector.shape_cast %90 : vector<4x4x72xf32> to vector<16x72xf32>
    %92 = arith.truncf %91 : vector<16x72xf32> to vector<16x72xbf16>
    %c0_53 = arith.constant 0 : index
    %c0_54 = arith.constant 0 : index
    %93 = vector.load %arg6[%c0_53, %c0_54] : memref<72x24xbf16, #tpu.memory_space<vmem>>, vector<72x24xbf16>
    %cst_55 = arith.constant dense<0.000000e+00> : vector<16x24xf32>
    %94 = tpu.matmul %92, %93, %cst_55 {dimension_numbers = #tpu.dot_dimension_numbers<[1], [0], [0], [1], [0, 0, 1, 1], [], []>} : vector<16x72xbf16>, vector<72x24xbf16>, vector<16x24xf32> -> vector<16x24xf32>
    %c0_56 = arith.constant 0 : index
    %c0_57 = arith.constant 0 : index
    %95 = vector.load %arg7[%c0_56, %c0_57] : memref<1x24xf32, #tpu.memory_space<vmem>>, vector<1x24xf32>
    %96 = vector.broadcast %95 : vector<1x24xf32> to vector<16x24xf32>
    %97 = arith.addf %94, %96 : vector<16x24xf32>
    %98 = arith.extf %2 : vector<16x24xbf16> to vector<16x24xf32>
    %99 = arith.addf %97, %98 : vector<16x24xf32>
    %100 = vector.shape_cast %99 : vector<16x24xf32> to vector<4x4x24xf32>
    %101 = arith.truncf %100 : vector<4x4x24xf32> to vector<4x4x24xbf16>
    %c0_58 = arith.constant 0 : index
    %c0_59 = arith.constant 0 : index
    %c0_60 = arith.constant 0 : index
    %c0_61 = arith.constant 0 : index
    %102 = vector.load %arg8[%c0_58, %c0_59, %c0_60, %c0_61] : memref<1x4x4x24xbf16, #tpu.memory_space<vmem>>, vector<1x4x4x24xbf16>
    %103 = vector.shape_cast %102 : vector<1x4x4x24xbf16> to vector<4x4x24xbf16>
    %104 = vector.shape_cast %101 : vector<4x4x24xbf16> to vector<1x4x4x24xbf16>
    tpu.vector_store %arg8[%c0_58, %c0_59, %c0_60, %c0_61], %104 {strides = array<i32>} : memref<1x4x4x24xbf16, #tpu.memory_space<vmem>>, vector<1x4x4x24xbf16>,
    return
  }
  func.func @transform_0(%arg0: i32) -> (i32, i32, i32, i32) {
    %c0_i32 = arith.constant 0 : i32
    %c0_i32_0 = arith.constant 0 : i32
    %c0_i32_1 = arith.constant 0 : i32
    %c0_i32_2 = arith.constant 0 : i32
    return %arg0, %c0_i32, %c0_i32_0, %c0_i32_1 : i32, i32, i32, i32
  }
  func.func @transform_1(%arg0: i32) -> (i32, i32) {
    %c0_i32 = arith.constant 0 : i32
    %c0_i32_0 = arith.constant 0 : i32
    %c0_i32_1 = arith.constant 0 : i32
    return %c0_i32, %c0_i32_0 : i32, i32
  }
  func.func @transform_2(%arg0: i32) -> (i32, i32) {
    %c0_i32 = arith.constant 0 : i32
    %c0_i32_0 = arith.constant 0 : i32
    %c0_i32_1 = arith.constant 0 : i32
    return %c0_i32, %c0_i32_0 : i32, i32
  }
  func.func @transform_3(%arg0: i32) -> (i32, i32, i32) {
    %c0_i32 = arith.constant 0 : i32
    %c0_i32_0 = arith.constant 0 : i32
    %c0_i32_1 = arith.constant 0 : i32
    %c0_i32_2 = arith.constant 0 : i32
    return %c0_i32, %c0_i32_0, %c0_i32_1 : i32, i32, i32
  }
  func.func @transform_4(%arg0: i32) -> (i32, i32) {
    %c0_i32 = arith.constant 0 : i32
    %c0_i32_0 = arith.constant 0 : i32
    %c0_i32_1 = arith.constant 0 : i32
    return %c0_i32, %c0_i32_0 : i32, i32
  }
  func.func @transform_5(%arg0: i32) -> (i32, i32) {
    %c0_i32 = arith.constant 0 : i32
    %c0_i32_0 = arith.constant 0 : i32
    %c0_i32_1 = arith.constant 0 : i32
    return %c0_i32, %c0_i32_0 : i32, i32
  }
  func.func @transform_6(%arg0: i32) -> (i32, i32) {
    %c0_i32 = arith.constant 0 : i32
    %c0_i32_0 = arith.constant 0 : i32
    %c0_i32_1 = arith.constant 0 : i32
    return %c0_i32, %c0_i32_0 : i32, i32
  }
  func.func @transform_7(%arg0: i32) -> (i32, i32, i32, i32) {
    %c0_i32 = arith.constant 0 : i32
    %c0_i32_0 = arith.constant 0 : i32
    %c0_i32_1 = arith.constant 0 : i32
    %c0_i32_2 = arith.constant 0 : i32
    return %arg0, %c0_i32, %c0_i32_0, %c0_i32_1 : i32, i32, i32, i32
  }
}

module attributes {stable_mosaic.version = 11 : i64} {
  func.func @_mm_kernel(%arg0: i32, %arg1: memref<32x24xbf16, #tpu.memory_space<vmem>>, %arg2: memref<24x96xbf16, #tpu.memory_space<vmem>>, %arg3: memref<1x96xf32, #tpu.memory_space<vmem>>, %arg4: memref<32x96xbf16, #tpu.memory_space<vmem>>) attributes {dimension_semantics = [#tpu.dimension_semantics<parallel>], iteration_bounds = array<i64: 1>, scalar_prefetch = 0 : i64, scratch_operands = 0 : i64, tpu.core_type = #tpu.core_type<tc>, window_params = [{transform_indices = @transform_0, window_bounds = array<i64: 32, 24>}, {pipeline_mode = #tpu.pipeline_mode<synchronous>, transform_indices = @transform_1, window_bounds = array<i64: 24, 96>}, {pipeline_mode = #tpu.pipeline_mode<synchronous>, transform_indices = @transform_2, window_bounds = array<i64: 1, 96>}, {transform_indices = @transform_3, window_bounds = array<i64: 32, 96>}]} {
    %c0 = arith.constant 0 : index
    %c0_0 = arith.constant 0 : index
    %0 = vector.load %arg1[%c0, %c0_0] : memref<32x24xbf16, #tpu.memory_space<vmem>>, vector<32x24xbf16>
    %c0_1 = arith.constant 0 : index
    %c0_2 = arith.constant 0 : index
    %1 = vector.load %arg2[%c0_1, %c0_2] : memref<24x96xbf16, #tpu.memory_space<vmem>>, vector<24x96xbf16>
    %cst = arith.constant dense<0.000000e+00> : vector<32x96xf32>
    %2 = tpu.matmul %0, %1, %cst {dimension_numbers = #tpu.dot_dimension_numbers<[1], [0], [0], [1], [0, 0, 1, 1], [], []>} : vector<32x24xbf16>, vector<24x96xbf16>, vector<32x96xf32> -> vector<32x96xf32>
    %c0_3 = arith.constant 0 : index
    %c0_4 = arith.constant 0 : index
    %3 = vector.load %arg3[%c0_3, %c0_4] : memref<1x96xf32, #tpu.memory_space<vmem>>, vector<1x96xf32>
    %4 = vector.broadcast %3 : vector<1x96xf32> to vector<32x96xf32>
    %5 = arith.addf %2, %4 : vector<32x96xf32>
    %cst_5 = arith.constant 3.000000e+00 : f32
    %6 = vector.broadcast %cst_5 : f32 to vector<32x96xf32>
    %7 = arith.addf %5, %6 : vector<32x96xf32>
    %cst_6 = arith.constant 0.000000e+00 : f32
    %cst_7 = arith.constant 6.000000e+00 : f32
    %8 = vector.broadcast %cst_6 : f32 to vector<32x96xf32>
    %9 = arith.maximumf %8, %7 : vector<32x96xf32>
    %10 = vector.broadcast %cst_7 : f32 to vector<32x96xf32>
    %11 = arith.minimumf %10, %9 : vector<32x96xf32>
    %12 = arith.mulf %5, %11 : vector<32x96xf32>
    %cst_8 = arith.constant 0.166666672 : f32
    %13 = vector.broadcast %cst_8 : f32 to vector<32x96xf32>
    %14 = arith.mulf %12, %13 : vector<32x96xf32>
    %15 = arith.truncf %14 : vector<32x96xf32> to vector<32x96xbf16>
    %c0_9 = arith.constant 0 : index
    %c0_10 = arith.constant 0 : index
    %16 = vector.load %arg4[%c0_9, %c0_10] : memref<32x96xbf16, #tpu.memory_space<vmem>>, vector<32x96xbf16>
    tpu.vector_store %arg4[%c0_9, %c0_10], %15 {strides = array<i32>} : memref<32x96xbf16, #tpu.memory_space<vmem>>, vector<32x96xbf16>,
    return
  }
  func.func @transform_0(%arg0: i32) -> (i32, i32) {
    %c0_i32 = arith.constant 0 : i32
    %c0_i32_0 = arith.constant 0 : i32
    return %arg0, %c0_i32 : i32, i32
  }
  func.func @transform_1(%arg0: i32) -> (i32, i32) {
    %c0_i32 = arith.constant 0 : i32
    %c0_i32_0 = arith.constant 0 : i32
    %c0_i32_1 = arith.constant 0 : i32
    return %c0_i32, %c0_i32_0 : i32, i32
  }
  func.func @transform_2(%arg0: i32) -> (i32, i32) {
    %c0_i32 = arith.constant 0 : i32
    %c0_i32_0 = arith.constant 0 : i32
    %c0_i32_1 = arith.constant 0 : i32
    return %c0_i32, %c0_i32_0 : i32, i32
  }
  func.func @transform_3(%arg0: i32) -> (i32, i32) {
    %c0_i32 = arith.constant 0 : i32
    %c0_i32_0 = arith.constant 0 : i32
    return %arg0, %c0_i32 : i32, i32
  }
}

module attributes {stable_mosaic.version = 11 : i64} {
  func.func @_dw_proj_s2_kernel(%arg0: i32, %arg1: memref<1x5x5x64xbf16, #tpu.memory_space<vmem>>, %arg2: memref<1x5x5x64xbf16, #tpu.memory_space<vmem>>, %arg3: memref<1x5x5x64xbf16, #tpu.memory_space<vmem>>, %arg4: memref<1x5x5x64xbf16, #tpu.memory_space<vmem>>, %arg5: memref<3x3x64xf32, #tpu.memory_space<vmem>>, %arg6: memref<1x64xf32, #tpu.memory_space<vmem>>, %arg7: memref<64x24xbf16, #tpu.memory_space<vmem>>, %arg8: memref<1x24xf32, #tpu.memory_space<vmem>>, %arg9: memref<1x4x4x24xbf16, #tpu.memory_space<vmem>>) attributes {dimension_semantics = [#tpu.dimension_semantics<parallel>], iteration_bounds = array<i64: 2>, scalar_prefetch = 0 : i64, scratch_operands = 0 : i64, tpu.core_type = #tpu.core_type<tc>, window_params = [{transform_indices = @transform_0, window_bounds = array<i64: 1, 5, 5, 64>}, {transform_indices = @transform_1, window_bounds = array<i64: 1, 5, 5, 64>}, {transform_indices = @transform_2, window_bounds = array<i64: 1, 5, 5, 64>}, {transform_indices = @transform_3, window_bounds = array<i64: 1, 5, 5, 64>}, {pipeline_mode = #tpu.pipeline_mode<synchronous>, transform_indices = @transform_4, window_bounds = array<i64: 3, 3, 64>}, {pipeline_mode = #tpu.pipeline_mode<synchronous>, transform_indices = @transform_5, window_bounds = array<i64: 1, 64>}, {pipeline_mode = #tpu.pipeline_mode<synchronous>, transform_indices = @transform_6, window_bounds = array<i64: 64, 24>}, {pipeline_mode = #tpu.pipeline_mode<synchronous>, transform_indices = @transform_7, window_bounds = array<i64: 1, 24>}, {transform_indices = @transform_8, window_bounds = array<i64: 1, 4, 4, 24>}]} {
    %cst = arith.constant 0.000000e+00 : f32
    %0 = vector.broadcast %cst : f32 to vector<4x4x64xf32>
    %c0 = arith.constant 0 : index
    %c0_0 = arith.constant 0 : index
    %c0_1 = arith.constant 0 : index
    %c0_2 = arith.constant 0 : index
    %1 = vector.load %arg1[%c0, %c0_0, %c0_1, %c0_2] : memref<1x5x5x64xbf16, #tpu.memory_space<vmem>>, vector<1x5x4x64xbf16>
    %2 = vector.shape_cast %1 : vector<1x5x4x64xbf16> to vector<5x4x64xbf16>
    %3 = arith.extf %2 : vector<5x4x64xbf16> to vector<5x4x64xf32>
    %c0_3 = arith.constant 0 : index
    %c0_4 = arith.constant 0 : index
    %c0_5 = arith.constant 0 : index
    %c0_6 = arith.constant 0 : index
    %4 = vector.load %arg3[%c0_3, %c0_4, %c0_5, %c0_6] : memref<1x5x5x64xbf16, #tpu.memory_space<vmem>>, vector<1x5x4x64xbf16>
    %5 = vector.shape_cast %4 : vector<1x5x4x64xbf16> to vector<5x4x64xbf16>
    %6 = arith.extf %5 : vector<5x4x64xbf16> to vector<5x4x64xf32>
    %7 = vector.extract_strided_slice %3 {offsets = [0, 0, 0], sizes = [4, 4, 64], strides = [1, 1, 1]} : vector<5x4x64xf32> to vector<4x4x64xf32>
    %c0_7 = arith.constant 0 : index
    %c0_8 = arith.constant 0 : index
    %c0_9 = arith.constant 0 : index
    %8 = vector.load %arg5[%c0_7, %c0_8, %c0_9] : memref<3x3x64xf32, #tpu.memory_space<vmem>>, vector<1x1x64xf32>
    %9 = vector.shape_cast %8 : vector<1x1x64xf32> to vector<1x64xf32>
    %10 = vector.shape_cast %9 : vector<1x64xf32> to vector<1x1x64xf32>
    %11 = vector.broadcast %10 : vector<1x1x64xf32> to vector<4x4x64xf32>
    %12 = arith.mulf %7, %11 : vector<4x4x64xf32>
    %13 = arith.addf %0, %12 : vector<4x4x64xf32>
    %14 = vector.extract_strided_slice %6 {offsets = [0, 0, 0], sizes = [4, 4, 64], strides = [1, 1, 1]} : vector<5x4x64xf32> to vector<4x4x64xf32>
    %c1 = arith.constant 1 : index
    %c0_10 = arith.constant 0 : index
    %c0_11 = arith.constant 0 : index
    %15 = vector.load %arg5[%c1, %c0_10, %c0_11] : memref<3x3x64xf32, #tpu.memory_space<vmem>>, vector<1x1x64xf32>
    %16 = vector.shape_cast %15 : vector<1x1x64xf32> to vector<1x64xf32>
    %17 = vector.shape_cast %16 : vector<1x64xf32> to vector<1x1x64xf32>
    %18 = vector.broadcast %17 : vector<1x1x64xf32> to vector<4x4x64xf32>
    %19 = arith.mulf %14, %18 : vector<4x4x64xf32>
    %20 = arith.addf %13, %19 : vector<4x4x64xf32>
    %21 = vector.extract_strided_slice %3 {offsets = [1, 0, 0], sizes = [4, 4, 64], strides = [1, 1, 1]} : vector<5x4x64xf32> to vector<4x4x64xf32>
    %c2 = arith.constant 2 : index
    %c0_12 = arith.constant 0 : index
    %c0_13 = arith.constant 0 : index
    %22 = vector.load %arg5[%c2, %c0_12, %c0_13] : memref<3x3x64xf32, #tpu.memory_space<vmem>>, vector<1x1x64xf32>
    %23 = vector.shape_cast %22 : vector<1x1x64xf32> to vector<1x64xf32>
    %24 = vector.shape_cast %23 : vector<1x64xf32> to vector<1x1x64xf32>
    %25 = vector.broadcast %24 : vector<1x1x64xf32> to vector<4x4x64xf32>
    %26 = arith.mulf %21, %25 : vector<4x4x64xf32>
    %27 = arith.addf %20, %26 : vector<4x4x64xf32>
    %c0_14 = arith.constant 0 : index
    %c0_15 = arith.constant 0 : index
    %c0_16 = arith.constant 0 : index
    %c0_17 = arith.constant 0 : index
    %28 = vector.load %arg2[%c0_14, %c0_15, %c0_16, %c0_17] : memref<1x5x5x64xbf16, #tpu.memory_space<vmem>>, vector<1x5x4x64xbf16>
    %29 = vector.shape_cast %28 : vector<1x5x4x64xbf16> to vector<5x4x64xbf16>
    %30 = arith.extf %29 : vector<5x4x64xbf16> to vector<5x4x64xf32>
    %c0_18 = arith.constant 0 : index
    %c0_19 = arith.constant 0 : index
    %c0_20 = arith.constant 0 : index
    %c0_21 = arith.constant 0 : index
    %31 = vector.load %arg4[%c0_18, %c0_19, %c0_20, %c0_21] : memref<1x5x5x64xbf16, #tpu.memory_space<vmem>>, vector<1x5x4x64xbf16>
    %32 = vector.shape_cast %31 : vector<1x5x4x64xbf16> to vector<5x4x64xbf16>
    %33 = arith.extf %32 : vector<5x4x64xbf16> to vector<5x4x64xf32>
    %34 = vector.extract_strided_slice %30 {offsets = [0, 0, 0], sizes = [4, 4, 64], strides = [1, 1, 1]} : vector<5x4x64xf32> to vector<4x4x64xf32>
    %c0_22 = arith.constant 0 : index
    %c1_23 = arith.constant 1 : index
    %c0_24 = arith.constant 0 : index
    %35 = vector.load %arg5[%c0_22, %c1_23, %c0_24] : memref<3x3x64xf32, #tpu.memory_space<vmem>>, vector<1x1x64xf32>
    %36 = vector.shape_cast %35 : vector<1x1x64xf32> to vector<1x64xf32>
    %37 = vector.shape_cast %36 : vector<1x64xf32> to vector<1x1x64xf32>
    %38 = vector.broadcast %37 : vector<1x1x64xf32> to vector<4x4x64xf32>
    %39 = arith.mulf %34, %38 : vector<4x4x64xf32>
    %40 = arith.addf %27, %39 : vector<4x4x64xf32>
    %41 = vector.extract_strided_slice %33 {offsets = [0, 0, 0], sizes = [4, 4, 64], strides = [1, 1, 1]} : vector<5x4x64xf32> to vector<4x4x64xf32>
    %c1_25 = arith.constant 1 : index
    %c1_26 = arith.constant 1 : index
    %c0_27 = arith.constant 0 : index
    %42 = vector.load %arg5[%c1_25, %c1_26, %c0_27] : memref<3x3x64xf32, #tpu.memory_space<vmem>>, vector<1x1x64xf32>
    %43 = vector.shape_cast %42 : vector<1x1x64xf32> to vector<1x64xf32>
    %44 = vector.shape_cast %43 : vector<1x64xf32> to vector<1x1x64xf32>
    %45 = vector.broadcast %44 : vector<1x1x64xf32> to vector<4x4x64xf32>
    %46 = arith.mulf %41, %45 : vector<4x4x64xf32>
    %47 = arith.addf %40, %46 : vector<4x4x64xf32>
    %48 = vector.extract_strided_slice %30 {offsets = [1, 0, 0], sizes = [4, 4, 64], strides = [1, 1, 1]} : vector<5x4x64xf32> to vector<4x4x64xf32>
    %c2_28 = arith.constant 2 : index
    %c1_29 = arith.constant 1 : index
    %c0_30 = arith.constant 0 : index
    %49 = vector.load %arg5[%c2_28, %c1_29, %c0_30] : memref<3x3x64xf32, #tpu.memory_space<vmem>>, vector<1x1x64xf32>
    %50 = vector.shape_cast %49 : vector<1x1x64xf32> to vector<1x64xf32>
    %51 = vector.shape_cast %50 : vector<1x64xf32> to vector<1x1x64xf32>
    %52 = vector.broadcast %51 : vector<1x1x64xf32> to vector<4x4x64xf32>
    %53 = arith.mulf %48, %52 : vector<4x4x64xf32>
    %54 = arith.addf %47, %53 : vector<4x4x64xf32>
    %c0_31 = arith.constant 0 : index
    %c0_32 = arith.constant 0 : index
    %c1_33 = arith.constant 1 : index
    %c0_34 = arith.constant 0 : index
    %55 = vector.load %arg1[%c0_31, %c0_32, %c1_33, %c0_34] : memref<1x5x5x64xbf16, #tpu.memory_space<vmem>>, vector<1x5x4x64xbf16>
    %56 = vector.shape_cast %55 : vector<1x5x4x64xbf16> to vector<5x4x64xbf16>
    %57 = arith.extf %56 : vector<5x4x64xbf16> to vector<5x4x64xf32>
    %c0_35 = arith.constant 0 : index
    %c0_36 = arith.constant 0 : index
    %c1_37 = arith.constant 1 : index
    %c0_38 = arith.constant 0 : index
    %58 = vector.load %arg3[%c0_35, %c0_36, %c1_37, %c0_38] : memref<1x5x5x64xbf16, #tpu.memory_space<vmem>>, vector<1x5x4x64xbf16>
    %59 = vector.shape_cast %58 : vector<1x5x4x64xbf16> to vector<5x4x64xbf16>
    %60 = arith.extf %59 : vector<5x4x64xbf16> to vector<5x4x64xf32>
    %61 = vector.extract_strided_slice %57 {offsets = [0, 0, 0], sizes = [4, 4, 64], strides = [1, 1, 1]} : vector<5x4x64xf32> to vector<4x4x64xf32>
    %c0_39 = arith.constant 0 : index
    %c2_40 = arith.constant 2 : index
    %c0_41 = arith.constant 0 : index
    %62 = vector.load %arg5[%c0_39, %c2_40, %c0_41] : memref<3x3x64xf32, #tpu.memory_space<vmem>>, vector<1x1x64xf32>
    %63 = vector.shape_cast %62 : vector<1x1x64xf32> to vector<1x64xf32>
    %64 = vector.shape_cast %63 : vector<1x64xf32> to vector<1x1x64xf32>
    %65 = vector.broadcast %64 : vector<1x1x64xf32> to vector<4x4x64xf32>
    %66 = arith.mulf %61, %65 : vector<4x4x64xf32>
    %67 = arith.addf %54, %66 : vector<4x4x64xf32>
    %68 = vector.extract_strided_slice %60 {offsets = [0, 0, 0], sizes = [4, 4, 64], strides = [1, 1, 1]} : vector<5x4x64xf32> to vector<4x4x64xf32>
    %c1_42 = arith.constant 1 : index
    %c2_43 = arith.constant 2 : index
    %c0_44 = arith.constant 0 : index
    %69 = vector.load %arg5[%c1_42, %c2_43, %c0_44] : memref<3x3x64xf32, #tpu.memory_space<vmem>>, vector<1x1x64xf32>
    %70 = vector.shape_cast %69 : vector<1x1x64xf32> to vector<1x64xf32>
    %71 = vector.shape_cast %70 : vector<1x64xf32> to vector<1x1x64xf32>
    %72 = vector.broadcast %71 : vector<1x1x64xf32> to vector<4x4x64xf32>
    %73 = arith.mulf %68, %72 : vector<4x4x64xf32>
    %74 = arith.addf %67, %73 : vector<4x4x64xf32>
    %75 = vector.extract_strided_slice %57 {offsets = [1, 0, 0], sizes = [4, 4, 64], strides = [1, 1, 1]} : vector<5x4x64xf32> to vector<4x4x64xf32>
    %c2_45 = arith.constant 2 : index
    %c2_46 = arith.constant 2 : index
    %c0_47 = arith.constant 0 : index
    %76 = vector.load %arg5[%c2_45, %c2_46, %c0_47] : memref<3x3x64xf32, #tpu.memory_space<vmem>>, vector<1x1x64xf32>
    %77 = vector.shape_cast %76 : vector<1x1x64xf32> to vector<1x64xf32>
    %78 = vector.shape_cast %77 : vector<1x64xf32> to vector<1x1x64xf32>
    %79 = vector.broadcast %78 : vector<1x1x64xf32> to vector<4x4x64xf32>
    %80 = arith.mulf %75, %79 : vector<4x4x64xf32>
    %81 = arith.addf %74, %80 : vector<4x4x64xf32>
    %c0_48 = arith.constant 0 : index
    %c0_49 = arith.constant 0 : index
    %82 = vector.load %arg6[%c0_48, %c0_49] : memref<1x64xf32, #tpu.memory_space<vmem>>, vector<1x64xf32>
    %83 = vector.shape_cast %82 : vector<1x64xf32> to vector<1x1x64xf32>
    %84 = vector.broadcast %83 : vector<1x1x64xf32> to vector<4x4x64xf32>
    %85 = arith.addf %81, %84 : vector<4x4x64xf32>
    %cst_50 = arith.constant 0.000000e+00 : f32
    %86 = vector.broadcast %cst_50 : f32 to vector<4x4x64xf32>
    %87 = arith.maximumf %85, %86 : vector<4x4x64xf32>
    %88 = vector.shape_cast %87 : vector<4x4x64xf32> to vector<16x64xf32>
    %89 = arith.truncf %88 : vector<16x64xf32> to vector<16x64xbf16>
    %c0_51 = arith.constant 0 : index
    %c0_52 = arith.constant 0 : index
    %90 = vector.load %arg7[%c0_51, %c0_52] : memref<64x24xbf16, #tpu.memory_space<vmem>>, vector<64x24xbf16>
    %cst_53 = arith.constant dense<0.000000e+00> : vector<16x24xf32>
    %91 = tpu.matmul %89, %90, %cst_53 {dimension_numbers = #tpu.dot_dimension_numbers<[1], [0], [0], [1], [0, 0, 1, 1], [], []>} : vector<16x64xbf16>, vector<64x24xbf16>, vector<16x24xf32> -> vector<16x24xf32>
    %c0_54 = arith.constant 0 : index
    %c0_55 = arith.constant 0 : index
    %92 = vector.load %arg8[%c0_54, %c0_55] : memref<1x24xf32, #tpu.memory_space<vmem>>, vector<1x24xf32>
    %93 = vector.broadcast %92 : vector<1x24xf32> to vector<16x24xf32>
    %94 = arith.addf %91, %93 : vector<16x24xf32>
    %95 = vector.shape_cast %94 : vector<16x24xf32> to vector<4x4x24xf32>
    %96 = arith.truncf %95 : vector<4x4x24xf32> to vector<4x4x24xbf16>
    %c0_56 = arith.constant 0 : index
    %c0_57 = arith.constant 0 : index
    %c0_58 = arith.constant 0 : index
    %c0_59 = arith.constant 0 : index
    %97 = vector.load %arg9[%c0_56, %c0_57, %c0_58, %c0_59] : memref<1x4x4x24xbf16, #tpu.memory_space<vmem>>, vector<1x4x4x24xbf16>
    %98 = vector.shape_cast %97 : vector<1x4x4x24xbf16> to vector<4x4x24xbf16>
    %99 = vector.shape_cast %96 : vector<4x4x24xbf16> to vector<1x4x4x24xbf16>
    tpu.vector_store %arg9[%c0_56, %c0_57, %c0_58, %c0_59], %99 {strides = array<i32>} : memref<1x4x4x24xbf16, #tpu.memory_space<vmem>>, vector<1x4x4x24xbf16>,
    return
  }
  func.func @transform_0(%arg0: i32) -> (i32, i32, i32, i32) {
    %c0_i32 = arith.constant 0 : i32
    %c0_i32_0 = arith.constant 0 : i32
    %c0_i32_1 = arith.constant 0 : i32
    %c0_i32_2 = arith.constant 0 : i32
    return %arg0, %c0_i32, %c0_i32_0, %c0_i32_1 : i32, i32, i32, i32
  }
  func.func @transform_1(%arg0: i32) -> (i32, i32, i32, i32) {
    %c0_i32 = arith.constant 0 : i32
    %c0_i32_0 = arith.constant 0 : i32
    %c0_i32_1 = arith.constant 0 : i32
    %c0_i32_2 = arith.constant 0 : i32
    return %arg0, %c0_i32, %c0_i32_0, %c0_i32_1 : i32, i32, i32, i32
  }
  func.func @transform_2(%arg0: i32) -> (i32, i32, i32, i32) {
    %c0_i32 = arith.constant 0 : i32
    %c0_i32_0 = arith.constant 0 : i32
    %c0_i32_1 = arith.constant 0 : i32
    %c0_i32_2 = arith.constant 0 : i32
    return %arg0, %c0_i32, %c0_i32_0, %c0_i32_1 : i32, i32, i32, i32
  }
  func.func @transform_3(%arg0: i32) -> (i32, i32, i32, i32) {
    %c0_i32 = arith.constant 0 : i32
    %c0_i32_0 = arith.constant 0 : i32
    %c0_i32_1 = arith.constant 0 : i32
    %c0_i32_2 = arith.constant 0 : i32
    return %arg0, %c0_i32, %c0_i32_0, %c0_i32_1 : i32, i32, i32, i32
  }
  func.func @transform_4(%arg0: i32) -> (i32, i32, i32) {
    %c0_i32 = arith.constant 0 : i32
    %c0_i32_0 = arith.constant 0 : i32
    %c0_i32_1 = arith.constant 0 : i32
    %c0_i32_2 = arith.constant 0 : i32
    return %c0_i32, %c0_i32_0, %c0_i32_1 : i32, i32, i32
  }
  func.func @transform_5(%arg0: i32) -> (i32, i32) {
    %c0_i32 = arith.constant 0 : i32
    %c0_i32_0 = arith.constant 0 : i32
    %c0_i32_1 = arith.constant 0 : i32
    return %c0_i32, %c0_i32_0 : i32, i32
  }
  func.func @transform_6(%arg0: i32) -> (i32, i32) {
    %c0_i32 = arith.constant 0 : i32
    %c0_i32_0 = arith.constant 0 : i32
    %c0_i32_1 = arith.constant 0 : i32
    return %c0_i32, %c0_i32_0 : i32, i32
  }
  func.func @transform_7(%arg0: i32) -> (i32, i32) {
    %c0_i32 = arith.constant 0 : i32
    %c0_i32_0 = arith.constant 0 : i32
    %c0_i32_1 = arith.constant 0 : i32
    return %c0_i32, %c0_i32_0 : i32, i32
  }
  func.func @transform_8(%arg0: i32) -> (i32, i32, i32, i32) {
    %c0_i32 = arith.constant 0 : i32
    %c0_i32_0 = arith.constant 0 : i32
    %c0_i32_1 = arith.constant 0 : i32
    %c0_i32_2 = arith.constant 0 : i32
    return %arg0, %c0_i32, %c0_i32_0, %c0_i32_1 : i32, i32, i32, i32
  }
}

module attributes {stable_mosaic.version = 11 : i64} {
  func.func @_dw_proj_s2_kernel(%arg0: i32, %arg1: memref<1x4x4x96xbf16, #tpu.memory_space<vmem>>, %arg2: memref<1x4x4x96xbf16, #tpu.memory_space<vmem>>, %arg3: memref<1x4x4x96xbf16, #tpu.memory_space<vmem>>, %arg4: memref<1x4x4x96xbf16, #tpu.memory_space<vmem>>, %arg5: memref<5x5x96xf32, #tpu.memory_space<vmem>>, %arg6: memref<1x96xf32, #tpu.memory_space<vmem>>, %arg7: memref<96x40xbf16, #tpu.memory_space<vmem>>, %arg8: memref<1x40xf32, #tpu.memory_space<vmem>>, %arg9: memref<1x2x2x40xbf16, #tpu.memory_space<vmem>>) attributes {dimension_semantics = [#tpu.dimension_semantics<parallel>], iteration_bounds = array<i64: 2>, scalar_prefetch = 0 : i64, scratch_operands = 0 : i64, tpu.core_type = #tpu.core_type<tc>, window_params = [{transform_indices = @transform_0, window_bounds = array<i64: 1, 4, 4, 96>}, {transform_indices = @transform_1, window_bounds = array<i64: 1, 4, 4, 96>}, {transform_indices = @transform_2, window_bounds = array<i64: 1, 4, 4, 96>}, {transform_indices = @transform_3, window_bounds = array<i64: 1, 4, 4, 96>}, {pipeline_mode = #tpu.pipeline_mode<synchronous>, transform_indices = @transform_4, window_bounds = array<i64: 5, 5, 96>}, {pipeline_mode = #tpu.pipeline_mode<synchronous>, transform_indices = @transform_5, window_bounds = array<i64: 1, 96>}, {pipeline_mode = #tpu.pipeline_mode<synchronous>, transform_indices = @transform_6, window_bounds = array<i64: 96, 40>}, {pipeline_mode = #tpu.pipeline_mode<synchronous>, transform_indices = @transform_7, window_bounds = array<i64: 1, 40>}, {transform_indices = @transform_8, window_bounds = array<i64: 1, 2, 2, 40>}]} {
    %cst = arith.constant 0.000000e+00 : f32
    %0 = vector.broadcast %cst : f32 to vector<2x2x96xf32>
    %c0 = arith.constant 0 : index
    %c0_0 = arith.constant 0 : index
    %c0_1 = arith.constant 0 : index
    %c0_2 = arith.constant 0 : index
    %1 = vector.load %arg1[%c0, %c0_0, %c0_1, %c0_2] : memref<1x4x4x96xbf16, #tpu.memory_space<vmem>>, vector<1x4x2x96xbf16>
    %2 = vector.shape_cast %1 : vector<1x4x2x96xbf16> to vector<4x2x96xbf16>
    %3 = arith.extf %2 : vector<4x2x96xbf16> to vector<4x2x96xf32>
    %c0_3 = arith.constant 0 : index
    %c0_4 = arith.constant 0 : index
    %c0_5 = arith.constant 0 : index
    %c0_6 = arith.constant 0 : index
    %4 = vector.load %arg3[%c0_3, %c0_4, %c0_5, %c0_6] : memref<1x4x4x96xbf16, #tpu.memory_space<vmem>>, vector<1x4x2x96xbf16>
    %5 = vector.shape_cast %4 : vector<1x4x2x96xbf16> to vector<4x2x96xbf16>
    %6 = arith.extf %5 : vector<4x2x96xbf16> to vector<4x2x96xf32>
    %7 = vector.extract_strided_slice %3 {offsets = [0, 0, 0], sizes = [2, 2, 96], strides = [1, 1, 1]} : vector<4x2x96xf32> to vector<2x2x96xf32>
    %c0_7 = arith.constant 0 : index
    %c0_8 = arith.constant 0 : index
    %c0_9 = arith.constant 0 : index
    %8 = vector.load %arg5[%c0_7, %c0_8, %c0_9] : memref<5x5x96xf32, #tpu.memory_space<vmem>>, vector<1x1x96xf32>
    %9 = vector.shape_cast %8 : vector<1x1x96xf32> to vector<1x96xf32>
    %10 = vector.shape_cast %9 : vector<1x96xf32> to vector<1x1x96xf32>
    %11 = vector.broadcast %10 : vector<1x1x96xf32> to vector<2x2x96xf32>
    %12 = arith.mulf %7, %11 : vector<2x2x96xf32>
    %13 = arith.addf %0, %12 : vector<2x2x96xf32>
    %14 = vector.extract_strided_slice %6 {offsets = [0, 0, 0], sizes = [2, 2, 96], strides = [1, 1, 1]} : vector<4x2x96xf32> to vector<2x2x96xf32>
    %c1 = arith.constant 1 : index
    %c0_10 = arith.constant 0 : index
    %c0_11 = arith.constant 0 : index
    %15 = vector.load %arg5[%c1, %c0_10, %c0_11] : memref<5x5x96xf32, #tpu.memory_space<vmem>>, vector<1x1x96xf32>
    %16 = vector.shape_cast %15 : vector<1x1x96xf32> to vector<1x96xf32>
    %17 = vector.shape_cast %16 : vector<1x96xf32> to vector<1x1x96xf32>
    %18 = vector.broadcast %17 : vector<1x1x96xf32> to vector<2x2x96xf32>
    %19 = arith.mulf %14, %18 : vector<2x2x96xf32>
    %20 = arith.addf %13, %19 : vector<2x2x96xf32>
    %21 = vector.extract_strided_slice %3 {offsets = [1, 0, 0], sizes = [2, 2, 96], strides = [1, 1, 1]} : vector<4x2x96xf32> to vector<2x2x96xf32>
    %c2 = arith.constant 2 : index
    %c0_12 = arith.constant 0 : index
    %c0_13 = arith.constant 0 : index
    %22 = vector.load %arg5[%c2, %c0_12, %c0_13] : memref<5x5x96xf32, #tpu.memory_space<vmem>>, vector<1x1x96xf32>
    %23 = vector.shape_cast %22 : vector<1x1x96xf32> to vector<1x96xf32>
    %24 = vector.shape_cast %23 : vector<1x96xf32> to vector<1x1x96xf32>
    %25 = vector.broadcast %24 : vector<1x1x96xf32> to vector<2x2x96xf32>
    %26 = arith.mulf %21, %25 : vector<2x2x96xf32>
    %27 = arith.addf %20, %26 : vector<2x2x96xf32>
    %28 = vector.extract_strided_slice %6 {offsets = [1, 0, 0], sizes = [2, 2, 96], strides = [1, 1, 1]} : vector<4x2x96xf32> to vector<2x2x96xf32>
    %c3 = arith.constant 3 : index
    %c0_14 = arith.constant 0 : index
    %c0_15 = arith.constant 0 : index
    %29 = vector.load %arg5[%c3, %c0_14, %c0_15] : memref<5x5x96xf32, #tpu.memory_space<vmem>>, vector<1x1x96xf32>
    %30 = vector.shape_cast %29 : vector<1x1x96xf32> to vector<1x96xf32>
    %31 = vector.shape_cast %30 : vector<1x96xf32> to vector<1x1x96xf32>
    %32 = vector.broadcast %31 : vector<1x1x96xf32> to vector<2x2x96xf32>
    %33 = arith.mulf %28, %32 : vector<2x2x96xf32>
    %34 = arith.addf %27, %33 : vector<2x2x96xf32>
    %35 = vector.extract_strided_slice %3 {offsets = [2, 0, 0], sizes = [2, 2, 96], strides = [1, 1, 1]} : vector<4x2x96xf32> to vector<2x2x96xf32>
    %c4 = arith.constant 4 : index
    %c0_16 = arith.constant 0 : index
    %c0_17 = arith.constant 0 : index
    %36 = vector.load %arg5[%c4, %c0_16, %c0_17] : memref<5x5x96xf32, #tpu.memory_space<vmem>>, vector<1x1x96xf32>
    %37 = vector.shape_cast %36 : vector<1x1x96xf32> to vector<1x96xf32>
    %38 = vector.shape_cast %37 : vector<1x96xf32> to vector<1x1x96xf32>
    %39 = vector.broadcast %38 : vector<1x1x96xf32> to vector<2x2x96xf32>
    %40 = arith.mulf %35, %39 : vector<2x2x96xf32>
    %41 = arith.addf %34, %40 : vector<2x2x96xf32>
    %c0_18 = arith.constant 0 : index
    %c0_19 = arith.constant 0 : index
    %c0_20 = arith.constant 0 : index
    %c0_21 = arith.constant 0 : index
    %42 = vector.load %arg2[%c0_18, %c0_19, %c0_20, %c0_21] : memref<1x4x4x96xbf16, #tpu.memory_space<vmem>>, vector<1x4x2x96xbf16>
    %43 = vector.shape_cast %42 : vector<1x4x2x96xbf16> to vector<4x2x96xbf16>
    %44 = arith.extf %43 : vector<4x2x96xbf16> to vector<4x2x96xf32>
    %c0_22 = arith.constant 0 : index
    %c0_23 = arith.constant 0 : index
    %c0_24 = arith.constant 0 : index
    %c0_25 = arith.constant 0 : index
    %45 = vector.load %arg4[%c0_22, %c0_23, %c0_24, %c0_25] : memref<1x4x4x96xbf16, #tpu.memory_space<vmem>>, vector<1x4x2x96xbf16>
    %46 = vector.shape_cast %45 : vector<1x4x2x96xbf16> to vector<4x2x96xbf16>
    %47 = arith.extf %46 : vector<4x2x96xbf16> to vector<4x2x96xf32>
    %48 = vector.extract_strided_slice %44 {offsets = [0, 0, 0], sizes = [2, 2, 96], strides = [1, 1, 1]} : vector<4x2x96xf32> to vector<2x2x96xf32>
    %c0_26 = arith.constant 0 : index
    %c1_27 = arith.constant 1 : index
    %c0_28 = arith.constant 0 : index
    %49 = vector.load %arg5[%c0_26, %c1_27, %c0_28] : memref<5x5x96xf32, #tpu.memory_space<vmem>>, vector<1x1x96xf32>
    %50 = vector.shape_cast %49 : vector<1x1x96xf32> to vector<1x96xf32>
    %51 = vector.shape_cast %50 : vector<1x96xf32> to vector<1x1x96xf32>
    %52 = vector.broadcast %51 : vector<1x1x96xf32> to vector<2x2x96xf32>
    %53 = arith.mulf %48, %52 : vector<2x2x96xf32>
    %54 = arith.addf %41, %53 : vector<2x2x96xf32>
    %55 = vector.extract_strided_slice %47 {offsets = [0, 0, 0], sizes = [2, 2, 96], strides = [1, 1, 1]} : vector<4x2x96xf32> to vector<2x2x96xf32>
    %c1_29 = arith.constant 1 : index
    %c1_30 = arith.constant 1 : index
    %c0_31 = arith.constant 0 : index
    %56 = vector.load %arg5[%c1_29, %c1_30, %c0_31] : memref<5x5x96xf32, #tpu.memory_space<vmem>>, vector<1x1x96xf32>
    %57 = vector.shape_cast %56 : vector<1x1x96xf32> to vector<1x96xf32>
    %58 = vector.shape_cast %57 : vector<1x96xf32> to vector<1x1x96xf32>
    %59 = vector.broadcast %58 : vector<1x1x96xf32> to vector<2x2x96xf32>
    %60 = arith.mulf %55, %59 : vector<2x2x96xf32>
    %61 = arith.addf %54, %60 : vector<2x2x96xf32>
    %62 = vector.extract_strided_slice %44 {offsets = [1, 0, 0], sizes = [2, 2, 96], strides = [1, 1, 1]} : vector<4x2x96xf32> to vector<2x2x96xf32>
    %c2_32 = arith.constant 2 : index
    %c1_33 = arith.constant 1 : index
    %c0_34 = arith.constant 0 : index
    %63 = vector.load %arg5[%c2_32, %c1_33, %c0_34] : memref<5x5x96xf32, #tpu.memory_space<vmem>>, vector<1x1x96xf32>
    %64 = vector.shape_cast %63 : vector<1x1x96xf32> to vector<1x96xf32>
    %65 = vector.shape_cast %64 : vector<1x96xf32> to vector<1x1x96xf32>
    %66 = vector.broadcast %65 : vector<1x1x96xf32> to vector<2x2x96xf32>
    %67 = arith.mulf %62, %66 : vector<2x2x96xf32>
    %68 = arith.addf %61, %67 : vector<2x2x96xf32>
    %69 = vector.extract_strided_slice %47 {offsets = [1, 0, 0], sizes = [2, 2, 96], strides = [1, 1, 1]} : vector<4x2x96xf32> to vector<2x2x96xf32>
    %c3_35 = arith.constant 3 : index
    %c1_36 = arith.constant 1 : index
    %c0_37 = arith.constant 0 : index
    %70 = vector.load %arg5[%c3_35, %c1_36, %c0_37] : memref<5x5x96xf32, #tpu.memory_space<vmem>>, vector<1x1x96xf32>
    %71 = vector.shape_cast %70 : vector<1x1x96xf32> to vector<1x96xf32>
    %72 = vector.shape_cast %71 : vector<1x96xf32> to vector<1x1x96xf32>
    %73 = vector.broadcast %72 : vector<1x1x96xf32> to vector<2x2x96xf32>
    %74 = arith.mulf %69, %73 : vector<2x2x96xf32>
    %75 = arith.addf %68, %74 : vector<2x2x96xf32>
    %76 = vector.extract_strided_slice %44 {offsets = [2, 0, 0], sizes = [2, 2, 96], strides = [1, 1, 1]} : vector<4x2x96xf32> to vector<2x2x96xf32>
    %c4_38 = arith.constant 4 : index
    %c1_39 = arith.constant 1 : index
    %c0_40 = arith.constant 0 : index
    %77 = vector.load %arg5[%c4_38, %c1_39, %c0_40] : memref<5x5x96xf32, #tpu.memory_space<vmem>>, vector<1x1x96xf32>
    %78 = vector.shape_cast %77 : vector<1x1x96xf32> to vector<1x96xf32>
    %79 = vector.shape_cast %78 : vector<1x96xf32> to vector<1x1x96xf32>
    %80 = vector.broadcast %79 : vector<1x1x96xf32> to vector<2x2x96xf32>
    %81 = arith.mulf %76, %80 : vector<2x2x96xf32>
    %82 = arith.addf %75, %81 : vector<2x2x96xf32>
    %c0_41 = arith.constant 0 : index
    %c0_42 = arith.constant 0 : index
    %c1_43 = arith.constant 1 : index
    %c0_44 = arith.constant 0 : index
    %83 = vector.load %arg1[%c0_41, %c0_42, %c1_43, %c0_44] : memref<1x4x4x96xbf16, #tpu.memory_space<vmem>>, vector<1x4x2x96xbf16>
    %84 = vector.shape_cast %83 : vector<1x4x2x96xbf16> to vector<4x2x96xbf16>
    %85 = arith.extf %84 : vector<4x2x96xbf16> to vector<4x2x96xf32>
    %c0_45 = arith.constant 0 : index
    %c0_46 = arith.constant 0 : index
    %c1_47 = arith.constant 1 : index
    %c0_48 = arith.constant 0 : index
    %86 = vector.load %arg3[%c0_45, %c0_46, %c1_47, %c0_48] : memref<1x4x4x96xbf16, #tpu.memory_space<vmem>>, vector<1x4x2x96xbf16>
    %87 = vector.shape_cast %86 : vector<1x4x2x96xbf16> to vector<4x2x96xbf16>
    %88 = arith.extf %87 : vector<4x2x96xbf16> to vector<4x2x96xf32>
    %89 = vector.extract_strided_slice %85 {offsets = [0, 0, 0], sizes = [2, 2, 96], strides = [1, 1, 1]} : vector<4x2x96xf32> to vector<2x2x96xf32>
    %c0_49 = arith.constant 0 : index
    %c2_50 = arith.constant 2 : index
    %c0_51 = arith.constant 0 : index
    %90 = vector.load %arg5[%c0_49, %c2_50, %c0_51] : memref<5x5x96xf32, #tpu.memory_space<vmem>>, vector<1x1x96xf32>
    %91 = vector.shape_cast %90 : vector<1x1x96xf32> to vector<1x96xf32>
    %92 = vector.shape_cast %91 : vector<1x96xf32> to vector<1x1x96xf32>
    %93 = vector.broadcast %92 : vector<1x1x96xf32> to vector<2x2x96xf32>
    %94 = arith.mulf %89, %93 : vector<2x2x96xf32>
    %95 = arith.addf %82, %94 : vector<2x2x96xf32>
    %96 = vector.extract_strided_slice %88 {offsets = [0, 0, 0], sizes = [2, 2, 96], strides = [1, 1, 1]} : vector<4x2x96xf32> to vector<2x2x96xf32>
    %c1_52 = arith.constant 1 : index
    %c2_53 = arith.constant 2 : index
    %c0_54 = arith.constant 0 : index
    %97 = vector.load %arg5[%c1_52, %c2_53, %c0_54] : memref<5x5x96xf32, #tpu.memory_space<vmem>>, vector<1x1x96xf32>
    %98 = vector.shape_cast %97 : vector<1x1x96xf32> to vector<1x96xf32>
    %99 = vector.shape_cast %98 : vector<1x96xf32> to vector<1x1x96xf32>
    %100 = vector.broadcast %99 : vector<1x1x96xf32> to vector<2x2x96xf32>
    %101 = arith.mulf %96, %100 : vector<2x2x96xf32>
    %102 = arith.addf %95, %101 : vector<2x2x96xf32>
    %103 = vector.extract_strided_slice %85 {offsets = [1, 0, 0], sizes = [2, 2, 96], strides = [1, 1, 1]} : vector<4x2x96xf32> to vector<2x2x96xf32>
    %c2_55 = arith.constant 2 : index
    %c2_56 = arith.constant 2 : index
    %c0_57 = arith.constant 0 : index
    %104 = vector.load %arg5[%c2_55, %c2_56, %c0_57] : memref<5x5x96xf32, #tpu.memory_space<vmem>>, vector<1x1x96xf32>
    %105 = vector.shape_cast %104 : vector<1x1x96xf32> to vector<1x96xf32>
    %106 = vector.shape_cast %105 : vector<1x96xf32> to vector<1x1x96xf32>
    %107 = vector.broadcast %106 : vector<1x1x96xf32> to vector<2x2x96xf32>
    %108 = arith.mulf %103, %107 : vector<2x2x96xf32>
    %109 = arith.addf %102, %108 : vector<2x2x96xf32>
    %110 = vector.extract_strided_slice %88 {offsets = [1, 0, 0], sizes = [2, 2, 96], strides = [1, 1, 1]} : vector<4x2x96xf32> to vector<2x2x96xf32>
    %c3_58 = arith.constant 3 : index
    %c2_59 = arith.constant 2 : index
    %c0_60 = arith.constant 0 : index
    %111 = vector.load %arg5[%c3_58, %c2_59, %c0_60] : memref<5x5x96xf32, #tpu.memory_space<vmem>>, vector<1x1x96xf32>
    %112 = vector.shape_cast %111 : vector<1x1x96xf32> to vector<1x96xf32>
    %113 = vector.shape_cast %112 : vector<1x96xf32> to vector<1x1x96xf32>
    %114 = vector.broadcast %113 : vector<1x1x96xf32> to vector<2x2x96xf32>
    %115 = arith.mulf %110, %114 : vector<2x2x96xf32>
    %116 = arith.addf %109, %115 : vector<2x2x96xf32>
    %117 = vector.extract_strided_slice %85 {offsets = [2, 0, 0], sizes = [2, 2, 96], strides = [1, 1, 1]} : vector<4x2x96xf32> to vector<2x2x96xf32>
    %c4_61 = arith.constant 4 : index
    %c2_62 = arith.constant 2 : index
    %c0_63 = arith.constant 0 : index
    %118 = vector.load %arg5[%c4_61, %c2_62, %c0_63] : memref<5x5x96xf32, #tpu.memory_space<vmem>>, vector<1x1x96xf32>
    %119 = vector.shape_cast %118 : vector<1x1x96xf32> to vector<1x96xf32>
    %120 = vector.shape_cast %119 : vector<1x96xf32> to vector<1x1x96xf32>
    %121 = vector.broadcast %120 : vector<1x1x96xf32> to vector<2x2x96xf32>
    %122 = arith.mulf %117, %121 : vector<2x2x96xf32>
    %123 = arith.addf %116, %122 : vector<2x2x96xf32>
    %c0_64 = arith.constant 0 : index
    %c0_65 = arith.constant 0 : index
    %c1_66 = arith.constant 1 : index
    %c0_67 = arith.constant 0 : index
    %124 = vector.load %arg2[%c0_64, %c0_65, %c1_66, %c0_67] : memref<1x4x4x96xbf16, #tpu.memory_space<vmem>>, vector<1x4x2x96xbf16>
    %125 = vector.shape_cast %124 : vector<1x4x2x96xbf16> to vector<4x2x96xbf16>
    %126 = arith.extf %125 : vector<4x2x96xbf16> to vector<4x2x96xf32>
    %c0_68 = arith.constant 0 : index
    %c0_69 = arith.constant 0 : index
    %c1_70 = arith.constant 1 : index
    %c0_71 = arith.constant 0 : index
    %127 = vector.load %arg4[%c0_68, %c0_69, %c1_70, %c0_71] : memref<1x4x4x96xbf16, #tpu.memory_space<vmem>>, vector<1x4x2x96xbf16>
    %128 = vector.shape_cast %127 : vector<1x4x2x96xbf16> to vector<4x2x96xbf16>
    %129 = arith.extf %128 : vector<4x2x96xbf16> to vector<4x2x96xf32>
    %130 = vector.extract_strided_slice %126 {offsets = [0, 0, 0], sizes = [2, 2, 96], strides = [1, 1, 1]} : vector<4x2x96xf32> to vector<2x2x96xf32>
    %c0_72 = arith.constant 0 : index
    %c3_73 = arith.constant 3 : index
    %c0_74 = arith.constant 0 : index
    %131 = vector.load %arg5[%c0_72, %c3_73, %c0_74] : memref<5x5x96xf32, #tpu.memory_space<vmem>>, vector<1x1x96xf32>
    %132 = vector.shape_cast %131 : vector<1x1x96xf32> to vector<1x96xf32>
    %133 = vector.shape_cast %132 : vector<1x96xf32> to vector<1x1x96xf32>
    %134 = vector.broadcast %133 : vector<1x1x96xf32> to vector<2x2x96xf32>
    %135 = arith.mulf %130, %134 : vector<2x2x96xf32>
    %136 = arith.addf %123, %135 : vector<2x2x96xf32>
    %137 = vector.extract_strided_slice %129 {offsets = [0, 0, 0], sizes = [2, 2, 96], strides = [1, 1, 1]} : vector<4x2x96xf32> to vector<2x2x96xf32>
    %c1_75 = arith.constant 1 : index
    %c3_76 = arith.constant 3 : index
    %c0_77 = arith.constant 0 : index
    %138 = vector.load %arg5[%c1_75, %c3_76, %c0_77] : memref<5x5x96xf32, #tpu.memory_space<vmem>>, vector<1x1x96xf32>
    %139 = vector.shape_cast %138 : vector<1x1x96xf32> to vector<1x96xf32>
    %140 = vector.shape_cast %139 : vector<1x96xf32> to vector<1x1x96xf32>
    %141 = vector.broadcast %140 : vector<1x1x96xf32> to vector<2x2x96xf32>
    %142 = arith.mulf %137, %141 : vector<2x2x96xf32>
    %143 = arith.addf %136, %142 : vector<2x2x96xf32>
    %144 = vector.extract_strided_slice %126 {offsets = [1, 0, 0], sizes = [2, 2, 96], strides = [1, 1, 1]} : vector<4x2x96xf32> to vector<2x2x96xf32>
    %c2_78 = arith.constant 2 : index
    %c3_79 = arith.constant 3 : index
    %c0_80 = arith.constant 0 : index
    %145 = vector.load %arg5[%c2_78, %c3_79, %c0_80] : memref<5x5x96xf32, #tpu.memory_space<vmem>>, vector<1x1x96xf32>
    %146 = vector.shape_cast %145 : vector<1x1x96xf32> to vector<1x96xf32>
    %147 = vector.shape_cast %146 : vector<1x96xf32> to vector<1x1x96xf32>
    %148 = vector.broadcast %147 : vector<1x1x96xf32> to vector<2x2x96xf32>
    %149 = arith.mulf %144, %148 : vector<2x2x96xf32>
    %150 = arith.addf %143, %149 : vector<2x2x96xf32>
    %151 = vector.extract_strided_slice %129 {offsets = [1, 0, 0], sizes = [2, 2, 96], strides = [1, 1, 1]} : vector<4x2x96xf32> to vector<2x2x96xf32>
    %c3_81 = arith.constant 3 : index
    %c3_82 = arith.constant 3 : index
    %c0_83 = arith.constant 0 : index
    %152 = vector.load %arg5[%c3_81, %c3_82, %c0_83] : memref<5x5x96xf32, #tpu.memory_space<vmem>>, vector<1x1x96xf32>
    %153 = vector.shape_cast %152 : vector<1x1x96xf32> to vector<1x96xf32>
    %154 = vector.shape_cast %153 : vector<1x96xf32> to vector<1x1x96xf32>
    %155 = vector.broadcast %154 : vector<1x1x96xf32> to vector<2x2x96xf32>
    %156 = arith.mulf %151, %155 : vector<2x2x96xf32>
    %157 = arith.addf %150, %156 : vector<2x2x96xf32>
    %158 = vector.extract_strided_slice %126 {offsets = [2, 0, 0], sizes = [2, 2, 96], strides = [1, 1, 1]} : vector<4x2x96xf32> to vector<2x2x96xf32>
    %c4_84 = arith.constant 4 : index
    %c3_85 = arith.constant 3 : index
    %c0_86 = arith.constant 0 : index
    %159 = vector.load %arg5[%c4_84, %c3_85, %c0_86] : memref<5x5x96xf32, #tpu.memory_space<vmem>>, vector<1x1x96xf32>
    %160 = vector.shape_cast %159 : vector<1x1x96xf32> to vector<1x96xf32>
    %161 = vector.shape_cast %160 : vector<1x96xf32> to vector<1x1x96xf32>
    %162 = vector.broadcast %161 : vector<1x1x96xf32> to vector<2x2x96xf32>
    %163 = arith.mulf %158, %162 : vector<2x2x96xf32>
    %164 = arith.addf %157, %163 : vector<2x2x96xf32>
    %c0_87 = arith.constant 0 : index
    %c0_88 = arith.constant 0 : index
    %c2_89 = arith.constant 2 : index
    %c0_90 = arith.constant 0 : index
    %165 = vector.load %arg1[%c0_87, %c0_88, %c2_89, %c0_90] : memref<1x4x4x96xbf16, #tpu.memory_space<vmem>>, vector<1x4x2x96xbf16>
    %166 = vector.shape_cast %165 : vector<1x4x2x96xbf16> to vector<4x2x96xbf16>
    %167 = arith.extf %166 : vector<4x2x96xbf16> to vector<4x2x96xf32>
    %c0_91 = arith.constant 0 : index
    %c0_92 = arith.constant 0 : index
    %c2_93 = arith.constant 2 : index
    %c0_94 = arith.constant 0 : index
    %168 = vector.load %arg3[%c0_91, %c0_92, %c2_93, %c0_94] : memref<1x4x4x96xbf16, #tpu.memory_space<vmem>>, vector<1x4x2x96xbf16>
    %169 = vector.shape_cast %168 : vector<1x4x2x96xbf16> to vector<4x2x96xbf16>
    %170 = arith.extf %169 : vector<4x2x96xbf16> to vector<4x2x96xf32>
    %171 = vector.extract_strided_slice %167 {offsets = [0, 0, 0], sizes = [2, 2, 96], strides = [1, 1, 1]} : vector<4x2x96xf32> to vector<2x2x96xf32>
    %c0_95 = arith.constant 0 : index
    %c4_96 = arith.constant 4 : index
    %c0_97 = arith.constant 0 : index
    %172 = vector.load %arg5[%c0_95, %c4_96, %c0_97] : memref<5x5x96xf32, #tpu.memory_space<vmem>>, vector<1x1x96xf32>
    %173 = vector.shape_cast %172 : vector<1x1x96xf32> to vector<1x96xf32>
    %174 = vector.shape_cast %173 : vector<1x96xf32> to vector<1x1x96xf32>
    %175 = vector.broadcast %174 : vector<1x1x96xf32> to vector<2x2x96xf32>
    %176 = arith.mulf %171, %175 : vector<2x2x96xf32>
    %177 = arith.addf %164, %176 : vector<2x2x96xf32>
    %178 = vector.extract_strided_slice %170 {offsets = [0, 0, 0], sizes = [2, 2, 96], strides = [1, 1, 1]} : vector<4x2x96xf32> to vector<2x2x96xf32>
    %c1_98 = arith.constant 1 : index
    %c4_99 = arith.constant 4 : index
    %c0_100 = arith.constant 0 : index
    %179 = vector.load %arg5[%c1_98, %c4_99, %c0_100] : memref<5x5x96xf32, #tpu.memory_space<vmem>>, vector<1x1x96xf32>
    %180 = vector.shape_cast %179 : vector<1x1x96xf32> to vector<1x96xf32>
    %181 = vector.shape_cast %180 : vector<1x96xf32> to vector<1x1x96xf32>
    %182 = vector.broadcast %181 : vector<1x1x96xf32> to vector<2x2x96xf32>
    %183 = arith.mulf %178, %182 : vector<2x2x96xf32>
    %184 = arith.addf %177, %183 : vector<2x2x96xf32>
    %185 = vector.extract_strided_slice %167 {offsets = [1, 0, 0], sizes = [2, 2, 96], strides = [1, 1, 1]} : vector<4x2x96xf32> to vector<2x2x96xf32>
    %c2_101 = arith.constant 2 : index
    %c4_102 = arith.constant 4 : index
    %c0_103 = arith.constant 0 : index
    %186 = vector.load %arg5[%c2_101, %c4_102, %c0_103] : memref<5x5x96xf32, #tpu.memory_space<vmem>>, vector<1x1x96xf32>
    %187 = vector.shape_cast %186 : vector<1x1x96xf32> to vector<1x96xf32>
    %188 = vector.shape_cast %187 : vector<1x96xf32> to vector<1x1x96xf32>
    %189 = vector.broadcast %188 : vector<1x1x96xf32> to vector<2x2x96xf32>
    %190 = arith.mulf %185, %189 : vector<2x2x96xf32>
    %191 = arith.addf %184, %190 : vector<2x2x96xf32>
    %192 = vector.extract_strided_slice %170 {offsets = [1, 0, 0], sizes = [2, 2, 96], strides = [1, 1, 1]} : vector<4x2x96xf32> to vector<2x2x96xf32>
    %c3_104 = arith.constant 3 : index
    %c4_105 = arith.constant 4 : index
    %c0_106 = arith.constant 0 : index
    %193 = vector.load %arg5[%c3_104, %c4_105, %c0_106] : memref<5x5x96xf32, #tpu.memory_space<vmem>>, vector<1x1x96xf32>
    %194 = vector.shape_cast %193 : vector<1x1x96xf32> to vector<1x96xf32>
    %195 = vector.shape_cast %194 : vector<1x96xf32> to vector<1x1x96xf32>
    %196 = vector.broadcast %195 : vector<1x1x96xf32> to vector<2x2x96xf32>
    %197 = arith.mulf %192, %196 : vector<2x2x96xf32>
    %198 = arith.addf %191, %197 : vector<2x2x96xf32>
    %199 = vector.extract_strided_slice %167 {offsets = [2, 0, 0], sizes = [2, 2, 96], strides = [1, 1, 1]} : vector<4x2x96xf32> to vector<2x2x96xf32>
    %c4_107 = arith.constant 4 : index
    %c4_108 = arith.constant 4 : index
    %c0_109 = arith.constant 0 : index
    %200 = vector.load %arg5[%c4_107, %c4_108, %c0_109] : memref<5x5x96xf32, #tpu.memory_space<vmem>>, vector<1x1x96xf32>
    %201 = vector.shape_cast %200 : vector<1x1x96xf32> to vector<1x96xf32>
    %202 = vector.shape_cast %201 : vector<1x96xf32> to vector<1x1x96xf32>
    %203 = vector.broadcast %202 : vector<1x1x96xf32> to vector<2x2x96xf32>
    %204 = arith.mulf %199, %203 : vector<2x2x96xf32>
    %205 = arith.addf %198, %204 : vector<2x2x96xf32>
    %c0_110 = arith.constant 0 : index
    %c0_111 = arith.constant 0 : index
    %206 = vector.load %arg6[%c0_110, %c0_111] : memref<1x96xf32, #tpu.memory_space<vmem>>, vector<1x96xf32>
    %207 = vector.shape_cast %206 : vector<1x96xf32> to vector<1x1x96xf32>
    %208 = vector.broadcast %207 : vector<1x1x96xf32> to vector<2x2x96xf32>
    %209 = arith.addf %205, %208 : vector<2x2x96xf32>
    %cst_112 = arith.constant 3.000000e+00 : f32
    %210 = vector.broadcast %cst_112 : f32 to vector<2x2x96xf32>
    %211 = arith.addf %209, %210 : vector<2x2x96xf32>
    %cst_113 = arith.constant 0.000000e+00 : f32
    %cst_114 = arith.constant 6.000000e+00 : f32
    %212 = vector.broadcast %cst_113 : f32 to vector<2x2x96xf32>
    %213 = arith.maximumf %212, %211 : vector<2x2x96xf32>
    %214 = vector.broadcast %cst_114 : f32 to vector<2x2x96xf32>
    %215 = arith.minimumf %214, %213 : vector<2x2x96xf32>
    %216 = arith.mulf %209, %215 : vector<2x2x96xf32>
    %cst_115 = arith.constant 0.166666672 : f32
    %217 = vector.broadcast %cst_115 : f32 to vector<2x2x96xf32>
    %218 = arith.mulf %216, %217 : vector<2x2x96xf32>
    %219 = vector.shape_cast %218 : vector<2x2x96xf32> to vector<4x96xf32>
    %220 = arith.truncf %219 : vector<4x96xf32> to vector<4x96xbf16>
    %c0_116 = arith.constant 0 : index
    %c0_117 = arith.constant 0 : index
    %221 = vector.load %arg7[%c0_116, %c0_117] : memref<96x40xbf16, #tpu.memory_space<vmem>>, vector<96x40xbf16>
    %cst_118 = arith.constant dense<0.000000e+00> : vector<4x40xf32>
    %222 = tpu.matmul %220, %221, %cst_118 {dimension_numbers = #tpu.dot_dimension_numbers<[1], [0], [0], [1], [0, 0, 1, 1], [], []>} : vector<4x96xbf16>, vector<96x40xbf16>, vector<4x40xf32> -> vector<4x40xf32>
    %c0_119 = arith.constant 0 : index
    %c0_120 = arith.constant 0 : index
    %223 = vector.load %arg8[%c0_119, %c0_120] : memref<1x40xf32, #tpu.memory_space<vmem>>, vector<1x40xf32>
    %224 = vector.broadcast %223 : vector<1x40xf32> to vector<4x40xf32>
    %225 = arith.addf %222, %224 : vector<4x40xf32>
    %226 = vector.shape_cast %225 : vector<4x40xf32> to vector<2x2x40xf32>
    %227 = arith.truncf %226 : vector<2x2x40xf32> to vector<2x2x40xbf16>
    %c0_121 = arith.constant 0 : index
    %c0_122 = arith.constant 0 : index
    %c0_123 = arith.constant 0 : index
    %c0_124 = arith.constant 0 : index
    %228 = vector.load %arg9[%c0_121, %c0_122, %c0_123, %c0_124] : memref<1x2x2x40xbf16, #tpu.memory_space<vmem>>, vector<1x2x2x40xbf16>
    %229 = vector.shape_cast %228 : vector<1x2x2x40xbf16> to vector<2x2x40xbf16>
    %230 = vector.shape_cast %227 : vector<2x2x40xbf16> to vector<1x2x2x40xbf16>
    tpu.vector_store %arg9[%c0_121, %c0_122, %c0_123, %c0_124], %230 {strides = array<i32>} : memref<1x2x2x40xbf16, #tpu.memory_space<vmem>>, vector<1x2x2x40xbf16>,
    return
  }
  func.func @transform_0(%arg0: i32) -> (i32, i32, i32, i32) {
    %c0_i32 = arith.constant 0 : i32
    %c0_i32_0 = arith.constant 0 : i32
    %c0_i32_1 = arith.constant 0 : i32
    %c0_i32_2 = arith.constant 0 : i32
    return %arg0, %c0_i32, %c0_i32_0, %c0_i32_1 : i32, i32, i32, i32
  }
  func.func @transform_1(%arg0: i32) -> (i32, i32, i32, i32) {
    %c0_i32 = arith.constant 0 : i32
    %c0_i32_0 = arith.constant 0 : i32
    %c0_i32_1 = arith.constant 0 : i32
    %c0_i32_2 = arith.constant 0 : i32
    return %arg0, %c0_i32, %c0_i32_0, %c0_i32_1 : i32, i32, i32, i32
  }
  func.func @transform_2(%arg0: i32) -> (i32, i32, i32, i32) {
    %c0_i32 = arith.constant 0 : i32
    %c0_i32_0 = arith.constant 0 : i32
    %c0_i32_1 = arith.constant 0 : i32
    %c0_i32_2 = arith.constant 0 : i32
    return %arg0, %c0_i32, %c0_i32_0, %c0_i32_1 : i32, i32, i32, i32
  }
  func.func @transform_3(%arg0: i32) -> (i32, i32, i32, i32) {
    %c0_i32 = arith.constant 0 : i32
    %c0_i32_0 = arith.constant 0 : i32
    %c0_i32_1 = arith.constant 0 : i32
    %c0_i32_2 = arith.constant 0 : i32
    return %arg0, %c0_i32, %c0_i32_0, %c0_i32_1 : i32, i32, i32, i32
  }
  func.func @transform_4(%arg0: i32) -> (i32, i32, i32) {
    %c0_i32 = arith.constant 0 : i32
    %c0_i32_0 = arith.constant 0 : i32
    %c0_i32_1 = arith.constant 0 : i32
    %c0_i32_2 = arith.constant 0 : i32
    return %c0_i32, %c0_i32_0, %c0_i32_1 : i32, i32, i32
  }
  func.func @transform_5(%arg0: i32) -> (i32, i32) {
    %c0_i32 = arith.constant 0 : i32
    %c0_i32_0 = arith.constant 0 : i32
    %c0_i32_1 = arith.constant 0 : i32
    return %c0_i32, %c0_i32_0 : i32, i32
  }
  func.func @transform_6(%arg0: i32) -> (i32, i32) {
    %c0_i32 = arith.constant 0 : i32
    %c0_i32_0 = arith.constant 0 : i32
    %c0_i32_1 = arith.constant 0 : i32
    return %c0_i32, %c0_i32_0 : i32, i32
  }
  func.func @transform_7(%arg0: i32) -> (i32, i32) {
    %c0_i32 = arith.constant 0 : i32
    %c0_i32_0 = arith.constant 0 : i32
    %c0_i32_1 = arith.constant 0 : i32
    return %c0_i32, %c0_i32_0 : i32, i32
  }
  func.func @transform_8(%arg0: i32) -> (i32, i32, i32, i32) {
    %c0_i32 = arith.constant 0 : i32
    %c0_i32_0 = arith.constant 0 : i32
    %c0_i32_1 = arith.constant 0 : i32
    %c0_i32_2 = arith.constant 0 : i32
    return %arg0, %c0_i32, %c0_i32_0, %c0_i32_1 : i32, i32, i32, i32
  }
}

module attributes {stable_mosaic.version = 11 : i64} {
  func.func @_pool_kernel(%arg0: i32, %arg1: memref<1x4x240xbf16, #tpu.memory_space<vmem>>, %arg2: memref<1x1x240xbf16, #tpu.memory_space<vmem>>) attributes {dimension_semantics = [#tpu.dimension_semantics<parallel>], iteration_bounds = array<i64: 2>, scalar_prefetch = 0 : i64, scratch_operands = 0 : i64, tpu.core_type = #tpu.core_type<tc>, window_params = [{transform_indices = @transform_0, window_bounds = array<i64: 1, 4, 240>}, {transform_indices = @transform_1, window_bounds = array<i64: 1, 1, 240>}]} {
    %c0 = arith.constant 0 : index
    %c0_0 = arith.constant 0 : index
    %c0_1 = arith.constant 0 : index
    %0 = vector.load %arg1[%c0, %c0_0, %c0_1] : memref<1x4x240xbf16, #tpu.memory_space<vmem>>, vector<1x4x240xbf16>
    %1 = vector.shape_cast %0 : vector<1x4x240xbf16> to vector<4x240xbf16>
    %2 = arith.extf %1 : vector<4x240xbf16> to vector<4x240xf32>
    %cst = arith.constant dense<0.000000e+00> : vector<240xf32>
    %3 = vector.multi_reduction <add>, %2, %cst [0] : vector<4x240xf32> to vector<240xf32>
    %4 = vector.shape_cast %3 : vector<240xf32> to vector<1x240xf32>
    %cst_2 = arith.constant 4.000000e+00 : f32
    %5 = vector.broadcast %cst_2 : f32 to vector<1x240xf32>
    %6 = arith.divf %4, %5 : vector<1x240xf32>
    %7 = arith.truncf %6 : vector<1x240xf32> to vector<1x240xbf16>
    %c0_3 = arith.constant 0 : index
    %c0_4 = arith.constant 0 : index
    %c0_5 = arith.constant 0 : index
    %8 = vector.load %arg2[%c0_3, %c0_4, %c0_5] : memref<1x1x240xbf16, #tpu.memory_space<vmem>>, vector<1x1x240xbf16>
    %9 = vector.shape_cast %8 : vector<1x1x240xbf16> to vector<1x240xbf16>
    %10 = vector.shape_cast %7 : vector<1x240xbf16> to vector<1x1x240xbf16>
    tpu.vector_store %arg2[%c0_3, %c0_4, %c0_5], %10 {strides = array<i32>} : memref<1x1x240xbf16, #tpu.memory_space<vmem>>, vector<1x1x240xbf16>,
    return
  }
  func.func @transform_0(%arg0: i32) -> (i32, i32, i32) {
    %c0_i32 = arith.constant 0 : i32
    %c0_i32_0 = arith.constant 0 : i32
    %c0_i32_1 = arith.constant 0 : i32
    return %arg0, %c0_i32, %c0_i32_0 : i32, i32, i32
  }
  func.func @transform_1(%arg0: i32) -> (i32, i32, i32) {
    %c0_i32 = arith.constant 0 : i32
    %c0_i32_0 = arith.constant 0 : i32
    %c0_i32_1 = arith.constant 0 : i32
    return %arg0, %c0_i32, %c0_i32_0 : i32, i32, i32
  }
}

module attributes {stable_mosaic.version = 11 : i64} {
  func.func @_mm_kernel(%arg0: i32, %arg1: memref<8x40xbf16, #tpu.memory_space<vmem>>, %arg2: memref<40x240xbf16, #tpu.memory_space<vmem>>, %arg3: memref<1x240xf32, #tpu.memory_space<vmem>>, %arg4: memref<8x240xbf16, #tpu.memory_space<vmem>>) attributes {dimension_semantics = [#tpu.dimension_semantics<parallel>], iteration_bounds = array<i64: 1>, scalar_prefetch = 0 : i64, scratch_operands = 0 : i64, tpu.core_type = #tpu.core_type<tc>, window_params = [{transform_indices = @transform_0, window_bounds = array<i64: 8, 40>}, {pipeline_mode = #tpu.pipeline_mode<synchronous>, transform_indices = @transform_1, window_bounds = array<i64: 40, 240>}, {pipeline_mode = #tpu.pipeline_mode<synchronous>, transform_indices = @transform_2, window_bounds = array<i64: 1, 240>}, {transform_indices = @transform_3, window_bounds = array<i64: 8, 240>}]} {
    %c0 = arith.constant 0 : index
    %c0_0 = arith.constant 0 : index
    %0 = vector.load %arg1[%c0, %c0_0] : memref<8x40xbf16, #tpu.memory_space<vmem>>, vector<8x40xbf16>
    %c0_1 = arith.constant 0 : index
    %c0_2 = arith.constant 0 : index
    %1 = vector.load %arg2[%c0_1, %c0_2] : memref<40x240xbf16, #tpu.memory_space<vmem>>, vector<40x240xbf16>
    %cst = arith.constant dense<0.000000e+00> : vector<8x240xf32>
    %2 = tpu.matmul %0, %1, %cst {dimension_numbers = #tpu.dot_dimension_numbers<[1], [0], [0], [1], [0, 0, 1, 1], [], []>} : vector<8x40xbf16>, vector<40x240xbf16>, vector<8x240xf32> -> vector<8x240xf32>
    %c0_3 = arith.constant 0 : index
    %c0_4 = arith.constant 0 : index
    %3 = vector.load %arg3[%c0_3, %c0_4] : memref<1x240xf32, #tpu.memory_space<vmem>>, vector<1x240xf32>
    %4 = vector.broadcast %3 : vector<1x240xf32> to vector<8x240xf32>
    %5 = arith.addf %2, %4 : vector<8x240xf32>
    %cst_5 = arith.constant 3.000000e+00 : f32
    %6 = vector.broadcast %cst_5 : f32 to vector<8x240xf32>
    %7 = arith.addf %5, %6 : vector<8x240xf32>
    %cst_6 = arith.constant 0.000000e+00 : f32
    %cst_7 = arith.constant 6.000000e+00 : f32
    %8 = vector.broadcast %cst_6 : f32 to vector<8x240xf32>
    %9 = arith.maximumf %8, %7 : vector<8x240xf32>
    %10 = vector.broadcast %cst_7 : f32 to vector<8x240xf32>
    %11 = arith.minimumf %10, %9 : vector<8x240xf32>
    %12 = arith.mulf %5, %11 : vector<8x240xf32>
    %cst_8 = arith.constant 0.166666672 : f32
    %13 = vector.broadcast %cst_8 : f32 to vector<8x240xf32>
    %14 = arith.mulf %12, %13 : vector<8x240xf32>
    %15 = arith.truncf %14 : vector<8x240xf32> to vector<8x240xbf16>
    %c0_9 = arith.constant 0 : index
    %c0_10 = arith.constant 0 : index
    %16 = vector.load %arg4[%c0_9, %c0_10] : memref<8x240xbf16, #tpu.memory_space<vmem>>, vector<8x240xbf16>
    tpu.vector_store %arg4[%c0_9, %c0_10], %15 {strides = array<i32>} : memref<8x240xbf16, #tpu.memory_space<vmem>>, vector<8x240xbf16>,
    return
  }
  func.func @transform_0(%arg0: i32) -> (i32, i32) {
    %c0_i32 = arith.constant 0 : i32
    %c0_i32_0 = arith.constant 0 : i32
    return %arg0, %c0_i32 : i32, i32
  }
  func.func @transform_1(%arg0: i32) -> (i32, i32) {
    %c0_i32 = arith.constant 0 : i32
    %c0_i32_0 = arith.constant 0 : i32
    %c0_i32_1 = arith.constant 0 : i32
    return %c0_i32, %c0_i32_0 : i32, i32
  }
  func.func @transform_2(%arg0: i32) -> (i32, i32) {
    %c0_i32 = arith.constant 0 : i32
    %c0_i32_0 = arith.constant 0 : i32
    %c0_i32_1 = arith.constant 0 : i32
    return %c0_i32, %c0_i32_0 : i32, i32
  }
  func.func @transform_3(%arg0: i32) -> (i32, i32) {
    %c0_i32 = arith.constant 0 : i32
    %c0_i32_0 = arith.constant 0 : i32
    return %arg0, %c0_i32 : i32, i32
  }
}

module attributes {stable_mosaic.version = 11 : i64} {
  func.func @_head_mlp_kernel(%arg0: i32, %arg1: memref<2x240xbf16, #tpu.memory_space<vmem>>, %arg2: memref<240x128xbf16, #tpu.memory_space<vmem>>, %arg3: memref<1x128xf32, #tpu.memory_space<vmem>>, %arg4: memref<128x5xbf16, #tpu.memory_space<vmem>>, %arg5: memref<1x5xf32, #tpu.memory_space<vmem>>, %arg6: memref<2x5xf32, #tpu.memory_space<vmem>>) attributes {dimension_semantics = [#tpu.dimension_semantics<arbitrary>], iteration_bounds = array<i64: 1>, scalar_prefetch = 0 : i64, scratch_operands = 0 : i64, tpu.core_type = #tpu.core_type<tc>, window_params = [{pipeline_mode = #tpu.pipeline_mode<synchronous>, transform_indices = @transform_0, window_bounds = array<i64: 2, 240>}, {pipeline_mode = #tpu.pipeline_mode<synchronous>, transform_indices = @transform_1, window_bounds = array<i64: 240, 128>}, {pipeline_mode = #tpu.pipeline_mode<synchronous>, transform_indices = @transform_2, window_bounds = array<i64: 1, 128>}, {pipeline_mode = #tpu.pipeline_mode<synchronous>, transform_indices = @transform_3, window_bounds = array<i64: 128, 5>}, {pipeline_mode = #tpu.pipeline_mode<synchronous>, transform_indices = @transform_4, window_bounds = array<i64: 1, 5>}, {pipeline_mode = #tpu.pipeline_mode<synchronous>, transform_indices = @transform_5, window_bounds = array<i64: 2, 5>}]} {
    %c0 = arith.constant 0 : index
    %c0_0 = arith.constant 0 : index
    %0 = vector.load %arg1[%c0, %c0_0] : memref<2x240xbf16, #tpu.memory_space<vmem>>, vector<2x240xbf16>
    %c0_1 = arith.constant 0 : index
    %c0_2 = arith.constant 0 : index
    %1 = vector.load %arg2[%c0_1, %c0_2] : memref<240x128xbf16, #tpu.memory_space<vmem>>, vector<240x128xbf16>
    %cst = arith.constant dense<0.000000e+00> : vector<2x128xf32>
    %2 = tpu.matmul %0, %1, %cst {dimension_numbers = #tpu.dot_dimension_numbers<[1], [0], [0], [1], [0, 0, 1, 1], [], []>} : vector<2x240xbf16>, vector<240x128xbf16>, vector<2x128xf32> -> vector<2x128xf32>
    %c0_3 = arith.constant 0 : index
    %c0_4 = arith.constant 0 : index
    %3 = vector.load %arg3[%c0_3, %c0_4] : memref<1x128xf32, #tpu.memory_space<vmem>>, vector<1x128xf32>
    %4 = vector.broadcast %3 : vector<1x128xf32> to vector<2x128xf32>
    %5 = arith.addf %2, %4 : vector<2x128xf32>
    %cst_5 = arith.constant 3.000000e+00 : f32
    %6 = vector.broadcast %cst_5 : f32 to vector<2x128xf32>
    %7 = arith.addf %5, %6 : vector<2x128xf32>
    %cst_6 = arith.constant 0.000000e+00 : f32
    %cst_7 = arith.constant 6.000000e+00 : f32
    %8 = vector.broadcast %cst_6 : f32 to vector<2x128xf32>
    %9 = arith.maximumf %8, %7 : vector<2x128xf32>
    %10 = vector.broadcast %cst_7 : f32 to vector<2x128xf32>
    %11 = arith.minimumf %10, %9 : vector<2x128xf32>
    %12 = arith.mulf %5, %11 : vector<2x128xf32>
    %cst_8 = arith.constant 0.166666672 : f32
    %13 = vector.broadcast %cst_8 : f32 to vector<2x128xf32>
    %14 = arith.mulf %12, %13 : vector<2x128xf32>
    %15 = arith.truncf %14 : vector<2x128xf32> to vector<2x128xbf16>
    %c0_9 = arith.constant 0 : index
    %c0_10 = arith.constant 0 : index
    %16 = vector.load %arg4[%c0_9, %c0_10] : memref<128x5xbf16, #tpu.memory_space<vmem>>, vector<128x5xbf16>
    %cst_11 = arith.constant dense<0.000000e+00> : vector<2x5xf32>
    %17 = tpu.matmul %15, %16, %cst_11 {dimension_numbers = #tpu.dot_dimension_numbers<[1], [0], [0], [1], [0, 0, 1, 1], [], []>} : vector<2x128xbf16>, vector<128x5xbf16>, vector<2x5xf32> -> vector<2x5xf32>
    %c0_12 = arith.constant 0 : index
    %c0_13 = arith.constant 0 : index
    %18 = vector.load %arg5[%c0_12, %c0_13] : memref<1x5xf32, #tpu.memory_space<vmem>>, vector<1x5xf32>
    %19 = vector.broadcast %18 : vector<1x5xf32> to vector<2x5xf32>
    %20 = arith.addf %17, %19 : vector<2x5xf32>
    %c0_14 = arith.constant 0 : index
    %c0_15 = arith.constant 0 : index
    %21 = vector.load %arg6[%c0_14, %c0_15] : memref<2x5xf32, #tpu.memory_space<vmem>>, vector<2x5xf32>
    tpu.vector_store %arg6[%c0_14, %c0_15], %20 {strides = array<i32>} : memref<2x5xf32, #tpu.memory_space<vmem>>, vector<2x5xf32>,
    return
  }
  func.func @transform_0(%arg0: i32) -> (i32, i32) {
    %c0_i32 = arith.constant 0 : i32
    %c0_i32_0 = arith.constant 0 : i32
    %c0_i32_1 = arith.constant 0 : i32
    return %c0_i32, %c0_i32_0 : i32, i32
  }
  func.func @transform_1(%arg0: i32) -> (i32, i32) {
    %c0_i32 = arith.constant 0 : i32
    %c0_i32_0 = arith.constant 0 : i32
    %c0_i32_1 = arith.constant 0 : i32
    return %c0_i32, %c0_i32_0 : i32, i32
  }
  func.func @transform_2(%arg0: i32) -> (i32, i32) {
    %c0_i32 = arith.constant 0 : i32
    %c0_i32_0 = arith.constant 0 : i32
    %c0_i32_1 = arith.constant 0 : i32
    return %c0_i32, %c0_i32_0 : i32, i32
  }
  func.func @transform_3(%arg0: i32) -> (i32, i32) {
    %c0_i32 = arith.constant 0 : i32
    %c0_i32_0 = arith.constant 0 : i32
    %c0_i32_1 = arith.constant 0 : i32
    return %c0_i32, %c0_i32_0 : i32, i32
  }
  func.func @transform_4(%arg0: i32) -> (i32, i32) {
    %c0_i32 = arith.constant 0 : i32
    %c0_i32_0 = arith.constant 0 : i32
    %c0_i32_1 = arith.constant 0 : i32
    return %c0_i32, %c0_i32_0 : i32, i32
  }
  func.func @transform_5(%arg0: i32) -> (i32, i32) {
    %c0_i32 = arith.constant 0 : i32
    %c0_i32_0 = arith.constant 0 : i32
    %c0_i32_1 = arith.constant 0 : i32
    return %c0_i32, %c0_i32_0 : i32, i32
  }
}

</mosaic_0001>

<bundles_post_ra>
// kernel: mobilenet_v3_forward.10
= control target key start
LH: loop header
LB: loop body
LE: loop exit
PB: predicated region body
PF: predicated region fallthrough
CT: control target
= control target key end

     0   :  { %vm118_vm0 = vcmask 1044480   ;;  %vm119_vm1 = vcmask 1045504   ;;  %v483_v1 = vmov 65535   ;;  %vm93_vm2 = vcmask 220160   ;;  %s627_s1 = inlined_call_operand.vmem [shape: bf16[27,16], index: 1, kind: input, shape index: {}]   ;;  %s628_s0 = inlined_call_operand.vmem [shape: bf16[128,27], index: 0, kind: input, shape index: {}]   ;;  %s629_s2 = inlined_call_operand.vmem [shape: f32[1,16], index: 2, kind: input, shape index: {}]   ;;  %s630_s3 = inlined_call_operand.vmem [shape: bf16[128,16], index: 3, kind: output, shape index: {}]  }
   0x1   :  { %v473_v0 = vld [vmem:[%s627_s1 + $0x8] sm:$0x3f]   ;;  %v120_v2 = vsel %vm118_vm0, 4294967295, %v483_v1  ;;  %v475_v4 = vld [vmem:[%s628_s0] sm:$0xff]   ;;  %v479_v10 = vld [vmem:[%s628_s0 + $0x10] sm:$0xff]   ;;  %vm366_vm3 = vcmask 125952  }
   0x2   :  { %v121_v3 = vsel %vm119_vm1, %v120_v2, 0  ;;  %v474_v6 = vld [vmem:[%s627_s1] sm:$0xff]   ;;  %452 = vmatprep.mubr.msk.bf16.mxu0 %vm93_vm2, %v475_v4  ;;  %v477_v8 = vld [vmem:[%s628_s0 + $0x8] sm:$0xff]   ;;  %v480_v11 = vld [vmem:[%s628_s0 + $0x30] sm:$0xff]  }
   0x3   :  { %v123_v5 = vand.u32 %v473_v0, %v121_v3  ;;  %v476_v7 = vld [vmem:[%s628_s0 + $0x20] sm:$0xff]   ;;  %v478_v9 = vld [vmem:[%s628_s0 + $0x28] sm:$0xff]   ;;  %v481_v12 = vld [vmem:[%s628_s0 + $0x18] sm:$0xff]  }
   0x4   :  { %460 = vmatprep.mubr.msk.bf16.mxu1 %vm93_vm2, %v476_v7  ;;  %v482_v13 = vld [vmem:[%s628_s0 + $0x38] sm:$0xff]   ;;  %v545_v14 = vld [vmem:[%s629_s2] ss:$0 sm:$0xff] }
   0x5   :  { %448 = vmatprep.subr.bf16.mxu0 %v123_v5  ;;  %468 = vmatprep.subr.bf16.mxu1 %v123_v5 }
   0x6   :  { %449 = vmatpush3.bf16.msra.mxu0 %v123_v5  ;;  %470 = vmatpush3.bf16.msra.mxu1 %v123_v5 }
   0x7   :  { %450 = vmatprep.subr.bf16.mxu0 %v474_v6  ;;  %469 = vmatprep.subr.bf16.mxu1 %v474_v6 }
   0xa   :  { %451 = vmatpush3.bf16.msra.mxu0 %v474_v6  ;;  %471 = vmatpush3.bf16.msra.mxu1 %v474_v6 }
   0xd   :  { %453 = vmatmul.mubr.msk.bf16.vlgmr.msra.gmra.mxu0 %vm93_vm2, %v477_v8  ;;  %461 = vmatmul.mubr.msk.bf16.vlgmr.msra.gmra.mxu1 %vm93_vm2, %v478_v9 }
   0xe   :  { %456 = vmatprep.mubr.msk.bf16.mxu0 %vm93_vm2, %v479_v10  ;;  %464 = vmatprep.mubr.msk.bf16.mxu1 %vm93_vm2, %v480_v11 }
  0x15   :  { %457 = vmatmul.mubr.msk.bf16.gmra.mxu0 %vm93_vm2, %v481_v12  ;;  %465 = vmatmul.mubr.msk.bf16.gmra.mxu1 %vm93_vm2, %v482_v13 }
  0xcd   :  { %v454_v15 = vpop.f32.mrf.mxu0  ;;  %v462_v16 = vpop.f32.mrf.mxu1 }
  0xce   :  { %v168_v17 = vadd.f32 %v454_v15, %v545_v14  ;;  %v200_v18 = vadd.f32 %v462_v16, %v545_v14 }
  0xcf   :  { %v159_v19 = vpop.f32.mrf.mxu0  ;;  %v191_v20 = vpop.f32.mrf.mxu1 }
  0xd0   :  { %v224_v21 = vadd.f32 3.0, %v168_v17  ;;  %v232_v22 = vadd.f32 3.0, %v200_v18  ;;  %v160_v23 = vadd.f32 %v545_v14, %v159_v19  ;;  %v192_v24 = vadd.f32 %v545_v14, %v191_v20 }
  0xd1   :  { %v455_v25 = vpop.f32.mrf.mxu0  ;;  %v463_v26 = vpop.f32.mrf.mxu1 }
  0xd2   :  { %v240_v27 = vmax.f32 %v224_v21, 0.0  ;;  %v248_v28 = vmax.f32 %v232_v22, 0.0  ;;  %v222_v29 = vadd.f32 3.0, %v160_v23  ;;  %v230_v30 = vadd.f32 3.0, %v192_v24 }
  0xd3   :  { %v171_v31 = vadd.f32 %v455_v25, %v545_v14  ;;  %v203_v32 = vadd.f32 %v463_v26, %v545_v14  ;;  %v162_v33 = vpop.f32.mrf.mxu0  ;;  %v194_v34 = vpop.f32.mrf.mxu1 }
  0xd4   :  { %v256_v35 = vmin.f32 %v240_v27, 6.0  ;;  %v264_v36 = vmin.f32 %v248_v28, 6.0  ;;  %v238_v37 = vmax.f32 %v222_v29, 0.0  ;;  %v246_v38 = vmax.f32 %v230_v30, 0.0 }
  0xd5   :  { %v225_v39 = vadd.f32 3.0, %v171_v31  ;;  %v233_v40 = vadd.f32 3.0, %v203_v32  ;;  %v163_v41 = vadd.f32 %v545_v14, %v162_v33  ;;  %v195_v42 = vadd.f32 %v545_v14, %v194_v34  ;;  %v458_v43 = vpop.f32.mrf.mxu0  ;;  %v466_v44 = vpop.f32.mrf.mxu1 }
  0xd6   :  { %v272_v45 = vmul.f32 %v256_v35, %v168_v17  ;;  %v280_v46 = vmul.f32 %v264_v36, %v200_v18  ;;  %v254_v47 = vmin.f32 %v238_v37, 6.0  ;;  %v262_v48 = vmin.f32 %v246_v38, 6.0 }
  0xd7   :  { %v241_v49 = vmax.f32 %v225_v39, 0.0  ;;  %v249_v50 = vmax.f32 %v233_v40, 0.0  ;;  %v223_v51 = vadd.f32 3.0, %v163_v41  ;;  %v231_v52 = vadd.f32 3.0, %v195_v42  ;;  %v175_v57 = vpop.f32.mrf.mxu0  ;;  %v207_v58 = vpop.f32.mrf.mxu1 }
  0xd8   :  { %v288_v53 = vmul.f32 0.16666667, %v272_v45  ;;  %v296_v54 = vmul.f32 0.16666667, %v280_v46  ;;  %v270_v55 = vmul.f32 %v254_v47, %v160_v23  ;;  %v278_v56 = vmul.f32 %v262_v48, %v192_v24 }
  0xd9   :  { %v257_v59 = vmin.f32 %v241_v49, 6.0  ;;  %v265_v60 = vmin.f32 %v249_v50, 6.0  ;;  %v239_v61 = vmax.f32 %v223_v51, 0.0  ;;  %v247_v62 = vmax.f32 %v231_v52, 0.0  ;;  %v459_v11 = vpop.f32.mrf.mxu0  ;;  %v467_v12 = vpop.f32.mrf.mxu1 }
  0xda   :  { %v424_v63 = vpack.c.bf16 %v288_v53, %v288_v53  ;;  %v432_v0 = vpack.c.bf16 %v296_v54, %v296_v54  ;;  %v286_v1 = vmul.f32 0.16666667, %v270_v55  ;;  %v294_v2 = vmul.f32 0.16666667, %v278_v56 }
  0xdb   :  { %v273_v3 = vmul.f32 %v257_v59, %v171_v31  ;;  %v281_v4 = vmul.f32 %v265_v60, %v203_v32  ;;  %v255_v5 = vmin.f32 %v239_v61, 6.0  ;;  %v263_v6 = vmin.f32 %v247_v62, 6.0  ;;  %v178_v30 = vpop.f32.mrf.mxu0  ;;  %v210_v31 = vpop.f32.mrf.mxu1 }
  0xdc   :  { %369 = vst.msk [vmem:[%s630_s3 + $0x8] sm:$0xf] %vm366_vm3, %v424_v63  ;;  %377 = vst.msk [vmem:[%s630_s3 + $0x28] sm:$0xf] %vm366_vm3, %v432_v0  ;;  %v422_v7 = vpack.c.bf16 %v286_v1, %v286_v1  ;;  %v430_v8 = vpack.c.bf16 %v294_v2, %v294_v2  ;;  %v184_v9 = vadd.f32 %v458_v43, %v545_v14 }
  0xdd   :  { %v216_v10 = vadd.f32 %v466_v44, %v545_v14  ;;  %v289_v13 = vmul.f32 0.16666667, %v273_v3  ;;  %v297_v15 = vmul.f32 0.16666667, %v281_v4  ;;  %v271_v16 = vmul.f32 %v255_v5, %v163_v41 }
  0xde   :  { %v279_v17 = vmul.f32 %v263_v6, %v195_v42  ;;  %367 = vst.msk [vmem:[%s630_s3] sm:$0xf] %vm366_vm3, %v422_v7  ;;  %375 = vst.msk [vmem:[%s630_s3 + $0x20] sm:$0xf] %vm366_vm3, %v430_v8  ;;  %v228_v18 = vadd.f32 3.0, %v184_v9  ;;  %v176_v20 = vadd.f32 %v545_v14, %v175_v57  ;;  %v208_v21 = vadd.f32 %v545_v14, %v207_v58 }
  0xdf   :  { %v236_v19 = vadd.f32 3.0, %v216_v10  ;;  %v425_v22 = vpack.c.bf16 %v289_v13, %v289_v13  ;;  %v433_v23 = vpack.c.bf16 %v297_v15, %v297_v15  ;;  %v287_v24 = vmul.f32 0.16666667, %v271_v16 }
  0xe0   :  { %v295_v25 = vmul.f32 0.16666667, %v279_v17  ;;  %v244_v26 = vmax.f32 %v228_v18, 0.0  ;;  %v226_v28 = vadd.f32 3.0, %v176_v20  ;;  %v234_v29 = vadd.f32 3.0, %v208_v21 }
  0xe1   :  { %v252_v27 = vmax.f32 %v236_v19, 0.0  ;;  %370 = vst.msk [vmem:[%s630_s3 + $0xc] sm:$0xf] %vm366_vm3, %v425_v22  ;;  %378 = vst.msk [vmem:[%s630_s3 + $0x2c] sm:$0xf] %vm366_vm3, %v433_v23  ;;  %v423_v32 = vpack.c.bf16 %v287_v24, %v287_v24  ;;  %v187_v34 = vadd.f32 %v459_v11, %v545_v14  ;;  %v219_v35 = vadd.f32 %v467_v12, %v545_v14 }
  0xe2   :  { %v431_v33 = vpack.c.bf16 %v295_v25, %v295_v25  ;;  %v260_v36 = vmin.f32 %v244_v26, 6.0  ;;  %v242_v38 = vmax.f32 %v226_v28, 0.0  ;;  %v250_v39 = vmax.f32 %v234_v29, 0.0 }
  0xe3   :  { %v268_v37 = vmin.f32 %v252_v27, 6.0  ;;  %368 = vst.msk [vmem:[%s630_s3 + $0x4] sm:$0xf] %vm366_vm3, %v423_v32  ;;  %v229_v40 = vadd.f32 3.0, %v187_v34  ;;  %v237_v41 = vadd.f32 3.0, %v219_v35  ;;  %v179_v42 = vadd.f32 %v545_v14, %v178_v30 }
  0xe4   :  { %376 = vst.msk [vmem:[%s630_s3 + $0x24] sm:$0xf] %vm366_vm3, %v431_v33  ;;  %v211_v43 = vadd.f32 %v545_v14, %v210_v31  ;;  %v276_v44 = vmul.f32 %v260_v36, %v184_v9  ;;  %v258_v46 = vmin.f32 %v242_v38, 6.0  ;;  %v266_v47 = vmin.f32 %v250_v39, 6.0 }
  0xe5   :  { %v284_v45 = vmul.f32 %v268_v37, %v216_v10  ;;  %v245_v48 = vmax.f32 %v229_v40, 0.0  ;;  %v253_v49 = vmax.f32 %v237_v41, 0.0  ;;  %v227_v50 = vadd.f32 3.0, %v179_v42 }
  0xe6   :  { %v235_v51 = vadd.f32 3.0, %v211_v43  ;;  %v292_v52 = vmul.f32 0.16666667, %v276_v44  ;;  %v274_v54 = vmul.f32 %v258_v46, %v176_v20  ;;  %v282_v55 = vmul.f32 %v266_v47, %v208_v21 }
  0xe7   :  { %v300_v53 = vmul.f32 0.16666667, %v284_v45  ;;  %v261_v56 = vmin.f32 %v245_v48, 6.0  ;;  %v269_v57 = vmin.f32 %v253_v49, 6.0  ;;  %v243_v58 = vmax.f32 %v227_v50, 0.0 }
  0xe8   :  { %v251_v59 = vmax.f32 %v235_v51, 0.0  ;;  %v428_v60 = vpack.c.bf16 %v292_v52, %v292_v52  ;;  %v290_v62 = vmul.f32 0.16666667, %v274_v54  ;;  %v298_v14 = vmul.f32 0.16666667, %v282_v55 }
  0xe9   :  { %v436_v61 = vpack.c.bf16 %v300_v53, %v300_v53  ;;  %v277_v63 = vmul.f32 %v261_v56, %v187_v34  ;;  %v285_v0 = vmul.f32 %v269_v57, %v219_v35  ;;  %v259_v1 = vmin.f32 %v243_v58, 6.0 }
  0xea   :  { %v267_v2 = vmin.f32 %v251_v59, 6.0  ;;  %373 = vst.msk [vmem:[%s630_s3 + $0x18] sm:$0xf] %vm366_vm3, %v428_v60  ;;  %v426_v3 = vpack.c.bf16 %v290_v62, %v290_v62  ;;  %v434_v4 = vpack.c.bf16 %v298_v14, %v298_v14 }
  0xeb   :  { %381 = vst.msk [vmem:[%s630_s3 + $0x38] sm:$0xf] %vm366_vm3, %v436_v61  ;;  %v293_v5 = vmul.f32 0.16666667, %v277_v63  ;;  %v301_v6 = vmul.f32 0.16666667, %v285_v0  ;;  %v275_v7 = vmul.f32 %v259_v1, %v179_v42 }
  0xec   :  { %v283_v8 = vmul.f32 %v267_v2, %v211_v43  ;;  %371 = vst.msk [vmem:[%s630_s3 + $0x10] sm:$0xf] %vm366_vm3, %v426_v3  ;;  %379 = vst.msk [vmem:[%s630_s3 + $0x30] sm:$0xf] %vm366_vm3, %v434_v4 }
  0xed   :  { %v429_v9 = vpack.c.bf16 %v293_v5, %v293_v5  ;;  %v437_v10 = vpack.c.bf16 %v301_v6, %v301_v6  ;;  %v291_v11 = vmul.f32 0.16666667, %v275_v7 }
  0xee   :  { %v299_v12 = vmul.f32 0.16666667, %v283_v8 }
  0xef   :  { %374 = vst.msk [vmem:[%s630_s3 + $0x1c] sm:$0xf] %vm366_vm3, %v429_v9  ;;  %382 = vst.msk [vmem:[%s630_s3 + $0x3c] sm:$0xf] %vm366_vm3, %v437_v10  ;;  %v427_v13 = vpack.c.bf16 %v291_v11, %v291_v11 }
  0xf0   :  { %v435_v15 = vpack.c.bf16 %v299_v12, %v299_v12 }
  0xf1   :  { %372 = vst.msk [vmem:[%s630_s3 + $0x14] sm:$0xf] %vm366_vm3, %v427_v13 }
  0xf2   :  { %380 = vst.msk [vmem:[%s630_s3 + $0x34] sm:$0xf] %vm366_vm3, %v435_v15 }

// kernel: mobilenet_v3_forward.12
= control target key start
LH: loop header
LB: loop body
LE: loop exit
PB: predicated region body
PF: predicated region fallthrough
CT: control target
= control target key end

     0   :  { %vm86_vm0 = vcmask 130048   ;;  %vm288_vm1 = vcmask 519168   ;;  %s537_s1 = inlined_call_operand.vmem [shape: bf16[16,64], index: 1, kind: input, shape index: {}]   ;;  %s538_s0 = inlined_call_operand.vmem [shape: bf16[128,16], index: 0, kind: input, shape index: {}]   ;;  %s539_s2 = inlined_call_operand.vmem [shape: f32[1,64], index: 2, kind: input, shape index: {}]   ;;  %s540_s3 = inlined_call_operand.vmem [shape: bf16[128,64], index: 3, kind: output, shape index: {}]  }
   0x1   :  { %v388_v0 = vld [vmem:[%s537_s1] sm:$0xff]   ;;  %v391_v3 = vld [vmem:[%s538_s0 + $0x8] sm:$0xff]   ;;  %v393_v5 = vld [vmem:[%s538_s0 + $0x10] sm:$0xff]  }
   0x2   :  { %v389_v1 = vld [vmem:[%s538_s0] sm:$0xff]   ;;  %368 = vmatprep.subr.bf16.mxu0 %v388_v0  ;;  %386 = vmatprep.subr.bf16.mxu1 %v388_v0  ;;  %v392_v4 = vld [vmem:[%s538_s0 + $0x28] sm:$0xff]   ;;  %v394_v6 = vld [vmem:[%s538_s0 + $0x30] sm:$0xff]  }
   0x3   :  { %v390_v2 = vld [vmem:[%s538_s0 + $0x20] sm:$0xff]   ;;  %369 = vmatpush3.bf16.msra.mxu0 %v388_v0  ;;  %387 = vmatpush3.bf16.msra.mxu1 %v388_v0  ;;  %v395_v7 = vld [vmem:[%s538_s0 + $0x18] sm:$0xff]  }
   0x4   :  { %370 = vmatprep.mubr.msk.bf16.mxu0 %vm86_vm0, %v389_v1  ;;  %378 = vmatprep.mubr.msk.bf16.mxu1 %vm86_vm0, %v390_v2  ;;  %v396_v8 = vld [vmem:[%s538_s0 + $0x38] sm:$0xff]   ;;  %v455_v9 = vld [vmem:[%s539_s2] ss:$0 sm:$0xff] }
   0x6   :  { %371 = vmatmul.mubr.msk.bf16.vlgmr.msra.gmra.mxu0 %vm86_vm0, %v391_v3  ;;  %379 = vmatmul.mubr.msk.bf16.vlgmr.msra.gmra.mxu1 %vm86_vm0, %v392_v4 }
   0x7   :  { %374 = vmatprep.mubr.msk.bf16.mxu0 %vm86_vm0, %v393_v5  ;;  %382 = vmatprep.mubr.msk.bf16.mxu1 %vm86_vm0, %v394_v6 }
   0xe   :  { %375 = vmatmul.mubr.msk.bf16.gmra.mxu0 %vm86_vm0, %v395_v7  ;;  %383 = vmatmul.mubr.msk.bf16.gmra.mxu1 %vm86_vm0, %v396_v8 }
  0xc6   :  { %v372_v10 = vpop.f32.mrf.mxu0  ;;  %v380_v11 = vpop.f32.mrf.mxu1 }
  0xc7   :  { %v154_v12 = vadd.f32 %v372_v10, %v455_v9  ;;  %v186_v13 = vadd.f32 %v380_v11, %v455_v9 }
  0xc8   :  { %v145_v14 = vpop.f32.mrf.mxu0  ;;  %v177_v15 = vpop.f32.mrf.mxu1 }
  0xc9   :  { %v210_v16 = vmax.f32 %v154_v12, 0.0  ;;  %v218_v17 = vmax.f32 %v186_v13, 0.0  ;;  %v146_v18 = vadd.f32 %v455_v9, %v145_v14  ;;  %v178_v19 = vadd.f32 %v455_v9, %v177_v15 }
  0xca   :  { %v373_v20 = vpop.f32.mrf.mxu0  ;;  %v381_v21 = vpop.f32.mrf.mxu1 }
  0xcb   :  { %v345_v22 = vpack.c.bf16 %v210_v16, %v210_v16  ;;  %v353_v23 = vpack.c.bf16 %v218_v17, %v218_v17  ;;  %v208_v24 = vmax.f32 %v146_v18, 0.0  ;;  %v216_v25 = vmax.f32 %v178_v19, 0.0 }
  0xcc   :  { %v157_v26 = vadd.f32 %v373_v20, %v455_v9  ;;  %v189_v27 = vadd.f32 %v381_v21, %v455_v9  ;;  %v148_v28 = vpop.f32.mrf.mxu0  ;;  %v180_v29 = vpop.f32.mrf.mxu1 }
  0xcd   :  { %291 = vst.msk [vmem:[%s540_s3 + $0x8] sm:$0xf] %vm288_vm1, %v345_v22  ;;  %299 = vst.msk [vmem:[%s540_s3 + $0x28] sm:$0xf] %vm288_vm1, %v353_v23  ;;  %v343_v30 = vpack.c.bf16 %v208_v24, %v208_v24  ;;  %v351_v31 = vpack.c.bf16 %v216_v25, %v216_v25  ;;  %v149_v32 = vadd.f32 %v455_v9, %v148_v28 }
  0xce   :  { %v181_v33 = vadd.f32 %v455_v9, %v180_v29  ;;  %v211_v34 = vmax.f32 %v157_v26, 0.0  ;;  %v219_v35 = vmax.f32 %v189_v27, 0.0  ;;  %v376_v36 = vpop.f32.mrf.mxu0  ;;  %v384_v37 = vpop.f32.mrf.mxu1 }
  0xcf   :  { %289 = vst.msk [vmem:[%s540_s3] sm:$0xf] %vm288_vm1, %v343_v30  ;;  %297 = vst.msk [vmem:[%s540_s3 + $0x20] sm:$0xf] %vm288_vm1, %v351_v31  ;;  %v209_v38 = vmax.f32 %v149_v32, 0.0  ;;  %v170_v40 = vadd.f32 %v376_v36, %v455_v9  ;;  %v202_v41 = vadd.f32 %v384_v37, %v455_v9 }
  0xd0   :  { %v217_v39 = vmax.f32 %v181_v33, 0.0  ;;  %v346_v42 = vpack.c.bf16 %v211_v34, %v211_v34  ;;  %v354_v43 = vpack.c.bf16 %v219_v35, %v219_v35  ;;  %v161_v44 = vpop.f32.mrf.mxu0  ;;  %v193_v45 = vpop.f32.mrf.mxu1 }
  0xd1   :  { %v344_v46 = vpack.c.bf16 %v209_v38, %v209_v38  ;;  %v214_v48 = vmax.f32 %v170_v40, 0.0  ;;  %v222_v49 = vmax.f32 %v202_v41, 0.0  ;;  %v162_v50 = vadd.f32 %v455_v9, %v161_v44 }
  0xd2   :  { %v352_v47 = vpack.c.bf16 %v217_v39, %v217_v39  ;;  %292 = vst.msk [vmem:[%s540_s3 + $0xc] sm:$0xf] %vm288_vm1, %v346_v42  ;;  %300 = vst.msk [vmem:[%s540_s3 + $0x2c] sm:$0xf] %vm288_vm1, %v354_v43  ;;  %v194_v51 = vadd.f32 %v455_v9, %v193_v45  ;;  %v377_v52 = vpop.f32.mrf.mxu0  ;;  %v385_v53 = vpop.f32.mrf.mxu1 }
  0xd3   :  { %290 = vst.msk [vmem:[%s540_s3 + $0x4] sm:$0xf] %vm288_vm1, %v344_v46  ;;  %v349_v54 = vpack.c.bf16 %v214_v48, %v214_v48  ;;  %v357_v55 = vpack.c.bf16 %v222_v49, %v222_v49  ;;  %v173_v56 = vadd.f32 %v377_v52, %v455_v9  ;;  %v205_v57 = vadd.f32 %v385_v53, %v455_v9 }
  0xd4   :  { %298 = vst.msk [vmem:[%s540_s3 + $0x24] sm:$0xf] %vm288_vm1, %v352_v47  ;;  %v212_v58 = vmax.f32 %v162_v50, 0.0  ;;  %v220_v59 = vmax.f32 %v194_v51, 0.0  ;;  %v164_v60 = vpop.f32.mrf.mxu0  ;;  %v196_v61 = vpop.f32.mrf.mxu1 }
  0xd5   :  { %295 = vst.msk [vmem:[%s540_s3 + $0x18] sm:$0xf] %vm288_vm1, %v349_v54  ;;  %303 = vst.msk [vmem:[%s540_s3 + $0x38] sm:$0xf] %vm288_vm1, %v357_v55  ;;  %v215_v62 = vmax.f32 %v173_v56, 0.0  ;;  %v223_v63 = vmax.f32 %v205_v57, 0.0  ;;  %v165_v0 = vadd.f32 %v455_v9, %v164_v60  ;;  %v197_v1 = vadd.f32 %v455_v9, %v196_v61 }
  0xd6   :  { %v347_v2 = vpack.c.bf16 %v212_v58, %v212_v58  ;;  %v355_v3 = vpack.c.bf16 %v220_v59, %v220_v59 }
  0xd7   :  { %v350_v4 = vpack.c.bf16 %v215_v62, %v215_v62  ;;  %v358_v5 = vpack.c.bf16 %v223_v63, %v223_v63  ;;  %v213_v6 = vmax.f32 %v165_v0, 0.0  ;;  %v221_v7 = vmax.f32 %v197_v1, 0.0 }
  0xd8   :  { %293 = vst.msk [vmem:[%s540_s3 + $0x10] sm:$0xf] %vm288_vm1, %v347_v2  ;;  %301 = vst.msk [vmem:[%s540_s3 + $0x30] sm:$0xf] %vm288_vm1, %v355_v3 }
  0xd9   :  { %296 = vst.msk [vmem:[%s540_s3 + $0x1c] sm:$0xf] %vm288_vm1, %v350_v4  ;;  %304 = vst.msk [vmem:[%s540_s3 + $0x3c] sm:$0xf] %vm288_vm1, %v358_v5  ;;  %v348_v8 = vpack.c.bf16 %v213_v6, %v213_v6  ;;  %v356_v9 = vpack.c.bf16 %v221_v7, %v221_v7 }
  0xdb   :  { %294 = vst.msk [vmem:[%s540_s3 + $0x14] sm:$0xf] %vm288_vm1, %v348_v8  ;;  %302 = vst.msk [vmem:[%s540_s3 + $0x34] sm:$0xf] %vm288_vm1, %v356_v9 }

// kernel: mobilenet_v3_forward.11
= control target key start
LH: loop header
LB: loop body
LE: loop exit
PB: predicated region body
PF: predicated region fallthrough
CT: control target
= control target key end

     0   :  { %s1355_s18 = smov 0   ;;  %s1894_s0 = inlined_call_operand.vmem [shape: bf16[2,8,8,16], index: 0, kind: input, shape index: {}]   ;;  %s1895_s1 = inlined_call_operand.vmem [shape: f32[3,3,16], index: 1, kind: input, shape index: {}]   ;;  %s1896_s2 = inlined_call_operand.vmem [shape: f32[1,16], index: 2, kind: input, shape index: {}, may-alias: {2,4}]   ;;  %s1897_s3 = inlined_call_operand.vmem [shape: bf16[16,16], index: 3, kind: input, shape index: {}]   ;;  %s1898_s4 = inlined_call_operand.vmem [shape: f32[1,16], index: 4, kind: input, shape index: {}, may-alias: {2,4}]   ;;  %s1899_s5 = inlined_call_operand.vmem [shape: bf16[2,8,8,16], index: 5, kind: output, shape index: {}]  }
   0x1 LB: > { %s1219_s19 = sadd.s32 4294967295, %s1322_s18   ;;  %p1223_p0 = scmp.ge.s32.totalorder %s1322_s18, 1  ;;  %s1322_s18 = sphi %s1355_s18, %s15_s18  }
   0x2   : > { %p187_p1 = scmp.lt.s32.totalorder %s1322_s18, 3 }
   0x4   : > { %p188_p2 = pnand %p1223_p0, %p187_p1 }
   0x5   : > { %p215_p3 = scmp.lt.s32.totalorder (!%p188_p2), %s1219_s19, 1 }
   0x6   : > { %191 = sbr.rel (%p188_p2) target bundleno = 352 (0x160), region = 40 }
   0xb   : > { %v1304_v0 = vld [vmem:[%s1897_s3] sm:$0xff]   ;;  %vm242_vm0 = vcmask 125952   ;;  %vm244_vm1 = vcmask 122880   ;;  %s1905_s19 = smov (!%p215_p3, %s1219_s19), 1  ;;  %v1324_v1 = vmov 0   ;;  %vm825_vm6 = vcmask 1045504  }
   0xc   : > { %1283 = vmatprep.subr.bf16.mxu0 %v1304_v0  ;;  %1293 = vmatprep.subr.bf16.mxu1 %v1304_v0  ;;  %243 = vst.msk [vmem:[#allocation2] sm:$0xf] %vm242_vm0, %v1324_v1  ;;  %246 = vst.msk [vmem:[#allocation2 + $0x8] sm:$0xf] %vm242_vm0, %v1324_v1  ;;  %s1268_s22 = sshll.u32 %s1905_s19, 5  ;;  %vm573_vm7 = vcmask 1046528  }
   0xd   : > { %245 = vst.msk [vmem:[#allocation2 + $0x4] sm:$0x1] %vm244_vm1, %v1324_v1  ;;  %247 = vst.msk [vmem:[#allocation2 + $0xc] sm:$0x1] %vm244_vm1, %v1324_v1  ;;  %1284 = vmatpush3.bf16.msra.mxu0 %v1304_v0  ;;  %1294 = vmatpush3.bf16.msra.mxu1 %v1304_v0  ;;  %s1394_s25 = scalar_lea.vmem %s1894_s0, %s1268_s22  ;;  %vm378_vm2 = vsmask.f32 7938  ;;  %s1868_s29 = scalar_lea.vmem %s1899_s5, %s1268_s22 }
   0xe   : > { %248 = vst.msk [vmem:[#allocation2 + $0x10] sm:$0xf] %vm242_vm0, %v1324_v1  ;;  %250 = vst.msk [vmem:[#allocation2 + $0x18] sm:$0xf] %vm242_vm0, %v1324_v1  ;;  %v226_v2 = vld [vmem:[%s1394_s25] sm:$0xf] }
   0xf   : > { %249 = vst.msk [vmem:[#allocation2 + $0x14] sm:$0x1] %vm244_vm1, %v1324_v1  ;;  %251 = vst.msk [vmem:[#allocation2 + $0x1c] sm:$0x1] %vm244_vm1, %v1324_v1  ;;  %v227_v3 = vld [vmem:[%s1394_s25 + $0x4] sm:$0xf]  ;;  %v1270_v5 = vcombine.low %v226_v2, %v226_v2 }
  0x10   : > { %252 = vst.msk [vmem:[#allocation2 + $0x20] sm:$0xf] %vm242_vm0, %v1324_v1  ;;  %254 = vst.msk [vmem:[#allocation2 + $0x28] sm:$0xf] %vm242_vm0, %v1324_v1  ;;  %v228_v4 = vld [vmem:[%s1394_s25 + $0x8] sm:$0xf]  ;;  %v1271_v6 = vcombine.low %v227_v3, %v227_v3 }
  0x11   : > { %253 = vst.msk [vmem:[#allocation2 + $0x24] sm:$0x1] %vm244_vm1, %v1324_v1  ;;  %255 = vst.msk [vmem:[#allocation2 + $0x2c] sm:$0x1] %vm244_vm1, %v1324_v1  ;;  %v1272_v7 = vcombine.low %v228_v4, %v228_v4  ;;  %v229_v8 = vld [vmem:[%s1394_s25 + $0xc] sm:$0xf] }
  0x12   : > { %256 = vst.msk [vmem:[#allocation2 + $0x30] sm:$0xf] %vm242_vm0, %v1324_v1  ;;  %258 = vst.msk [vmem:[#allocation2 + $0x38] sm:$0xf] %vm242_vm0, %v1324_v1  ;;  %vm384_vm3 = vsmask.f32 256  ;;  %v1273_v10 = vcombine.low %v229_v8, %v229_v8 }
  0x13   : > { %257 = vst.msk [vmem:[#allocation2 + $0x34] sm:$0x1] %vm244_vm1, %v1324_v1  ;;  %259 = vst.msk [vmem:[#allocation2 + $0x3c] sm:$0x1] %vm244_vm1, %v1324_v1  ;;  %v230_v9 = vld [vmem:[%s1394_s25 + $0x10] sm:$0xf] }
  0x14   : > { %260 = vst.msk [vmem:[#allocation2 + $0x40] sm:$0xf] %vm242_vm0, %v1324_v1  ;;  %262 = vst.msk [vmem:[#allocation2 + $0x48] sm:$0xf] %vm242_vm0, %v1324_v1  ;;  %v297_v11 = vshrl.u32 %v1270_v5, 16  ;;  %v300_v12 = vshll.u32 %v1270_v5, 16  ;;  %v1274_v31 = vcombine.low %v230_v9, %v230_v9 }
  0x15   : > { %261 = vst.msk [vmem:[#allocation2 + $0x44] sm:$0x1] %vm244_vm1, %v1324_v1  ;;  %263 = vst.msk [vmem:[#allocation2 + $0x4c] sm:$0x1] %vm244_vm1, %v1324_v1  ;;  %v305_v13 = vshrl.u32 %v1271_v6, 16  ;;  %v308_v14 = vshll.u32 %v1271_v6, 16 }
  0x16   : > { %v231_v15 = vld [vmem:[%s1394_s25 + $0x14] sm:$0xf]  ;;  %v313_v16 = vshrl.u32 %v1272_v7, 16  ;;  %v316_v17 = vshll.u32 %v1272_v7, 16  ;;  %v380_v18 = vld [vmem:[#allocation2 + $0x8] sm:$0xf]  ;;  %vm1404_vm4 = vmand %vm242_vm0, %vm378_vm2 }
  0x17   : > { %v386_v19 = vld [vmem:[#allocation2 + $0xc] sm:$0x1]  ;;  %v299_v20 = vrot.slane %v297_v11, 7  ;;  %v307_v21 = vrot.slane %v305_v13, 7  ;;  %v389_v23 = vld [vmem:[#allocation2 + $0x10] sm:$0xf]  ;;  %vm1420_vm5 = vmand %vm244_vm1, %vm384_vm3  ;;  %v1424_v32 = vcombine.low %v231_v15, %v231_v15 }
  0x18   : > { %v392_v24 = vld [vmem:[#allocation2 + $0x14] sm:$0x1]  ;;  %v1411_v25 = vld [vmem:[%s1895_s1 + $0x1] ss:$0 sm:$0xff]  ;;  %v1416_v26 = vld [vmem:[%s1895_s1 + $0x2] ss:$0 sm:$0xff] }
  0x19   : > { %v315_v27 = vrot.slane %v313_v16, 7  ;;  %v395_v29 = vld [vmem:[#allocation2 + $0x18] sm:$0xf]  ;;  %v516_v30 = vld [vmem:[#allocation2 + $0x4] sm:$0x1]  ;;  %v321_v33 = vshrl.u32 %v1273_v10, 16  ;;  %v302_v34 = vor.u32 %v300_v12, %v299_v20  ;;  %v310_v36 = vor.u32 %v308_v14, %v307_v21 }
  0x1a   : > { %v303_v35 = vrot.slane %v299_v20, 4  ;;  %v311_v37 = vrot.slane %v307_v21, 4  ;;  %v398_v38 = vld [vmem:[#allocation2 + $0x1c] sm:$0x1]  ;;  %v768_v39 = vld [vmem:[#allocation2] sm:$0xe]  ;;  %v526_v42 = vunpack.c.l.bf16 %v516_v30 }
  0x1b   : > { %v318_v40 = vor.u32 %v316_v17, %v315_v27  ;;  %v319_v41 = vrot.slane %v315_v27, 4  ;;  %v778_v43 = vunpack.c.l.bf16 %v768_v39  ;;  %v381_v44 = vsel %vm1404_vm4, %v302_v34, %v380_v18  ;;  %v1435_v48 = vld [vmem:[%s1394_s25 + $0x18] sm:$0xf]  ;;  %v401_v61 = vld [vmem:[#allocation2 + $0x20] sm:$0xf] }
  0x1c   : > { %v387_v45 = vsel %vm1420_vm5, %v303_v35, %v386_v19  ;;  %v390_v46 = vsel %vm1404_vm4, %v310_v36, %v389_v23  ;;  %v393_v47 = vsel %vm1420_vm5, %v311_v37, %v392_v24  ;;  %382 = vst [vmem:[#allocation2 + $0x8] sm:$0xf] %v381_v44  ;;  %v1442_v51 = vmul.f32 %v1411_v25, %v526_v42  ;;  %v404_v2 = vld [vmem:[#allocation2 + $0x24] sm:$0x1]  ;;  %v407_v5 = vld [vmem:[#allocation2 + $0x28] sm:$0xf] }
  0x1d   : > { %388 = vst [vmem:[#allocation2 + $0xc] sm:$0x1] %v387_v45  ;;  %391 = vst [vmem:[#allocation2 + $0x10] sm:$0xf] %v390_v46  ;;  %v396_v49 = vsel %vm1404_vm4, %v318_v40, %v395_v29  ;;  %v399_v50 = vsel %vm1420_vm5, %v319_v41, %v398_v38  ;;  %v793_v52 = vmul.f32 %v1416_v26, %v778_v43  ;;  %v323_v54 = vrot.slane %v321_v33, 7 }
  0x1e   : > { %394 = vst [vmem:[#allocation2 + $0x14] sm:$0x1] %v393_v47  ;;  %397 = vst [vmem:[#allocation2 + $0x18] sm:$0xf] %v396_v49  ;;  %v794_v53 = vmul.f32 %v1416_v26, %v526_v42  ;;  %v324_v55 = vshll.u32 %v1273_v10, 16  ;;  %v329_v56 = vshrl.u32 %v1274_v31, 16  ;;  %v1448_v58 = vcombine.low %v1435_v48, %v1435_v48 }
  0x1f   : > { %400 = vst [vmem:[#allocation2 + $0x1c] sm:$0x1] %v399_v50  ;;  %v826_v57 = vrot.slane %v793_v52, 2  ;;  %v332_v59 = vshll.u32 %v1274_v31, 16  ;;  %v337_v60 = vshrl.u32 %v1424_v32, 16  ;;  %v327_v0 = vrot.slane %v323_v54, 4 }
  0x20   : > { %v827_v62 = vrot.slane %v794_v53, 2  ;;  %v326_v63 = vor.u32 %v324_v55, %v323_v54  ;;  %v331_v1 = vrot.slane %v329_v56, 7  ;;  %v340_v4 = vshll.u32 %v1424_v32, 16  ;;  %v410_v6 = vld [vmem:[#allocation2 + $0x2c] sm:$0x1] }
  0x21   : > { %v1451_v3 = vrot.slane %v337_v60, 7  ;;  %v1457_v7 = vld [vmem:[%s1895_s1] ss:$0 sm:$0xff]  ;;  %v1462_v8 = vld [vmem:[%s1895_s1 + $0x4] ss:$0 sm:$0xff]  ;;  %v575_v9 = vrot.slane %v1442_v51, 1  ;;  %v405_v17 = vsel %vm1420_vm5, %v327_v0, %v404_v2 }
  0x22   : > { %v334_v10 = vor.u32 %v332_v59, %v331_v1  ;;  %v335_v11 = vrot.slane %v331_v1, 4  ;;  %v402_v12 = vsel %vm1404_vm4, %v326_v63, %v401_v61  ;;  %v1470_v13 = vld [vmem:[%s1895_s1 + $0x8] ss:$0 sm:$0xff]  ;;  %v345_v15 = vshrl.u32 %v1448_v58, 16  ;;  %406 = vst [vmem:[#allocation2 + $0x24] sm:$0x1] %v405_v17 }
  0x23   : > { %v343_v14 = vrot.slane %v1451_v3, 4  ;;  %v348_v16 = vshll.u32 %v1448_v58, 16  ;;  %403 = vst [vmem:[#allocation2 + $0x20] sm:$0xf] %v402_v12  ;;  %v431_v18 = vld [vmem:[#allocation2] ss:$8 sps:$4 sm:$0xff]   ;;  %v1478_v21 = vsel %vm825_vm6, %v826_v57, %v827_v62  ;;  %v1481_v23 = vor.u32 %v340_v4, %v1451_v3 }
  0x24   : > { %v517_v19 = vld [vmem:[#allocation2 + $0xc] sm:$0x1]  ;;  %v408_v24 = vsel %vm1404_vm4, %v334_v10, %v407_v5  ;;  %v411_v27 = vsel %vm1420_vm5, %v335_v11, %v410_v6  ;;  %v441_v30 = vunpack.c.l.bf16 %v431_v18  ;;  %v442_v31 = vunpack.c.h.bf16 %v431_v18  ;;  %v769_v35 = vld [vmem:[#allocation2 + $0x8] sm:$0xe]  ;;  %v1498_v39 = vld [vmem:[%s1895_s1 + $0x5] ss:$0 sm:$0xff] }
  0x25   : > { %v518_v20 = vld [vmem:[#allocation2 + $0x14] sm:$0x1]  ;;  %v433_v29 = vld [vmem:[#allocation2 + $0x10] ss:$8 sps:$4 sm:$0xff]   ;;  %v527_v33 = vunpack.c.l.bf16 %v517_v19  ;;  %409 = vst [vmem:[#allocation2 + $0x28] sm:$0xf] %v408_v24  ;;  %v779_v40 = vunpack.c.l.bf16 %v769_v35 }
  0x26   : > { %v519_v32 = vld [vmem:[#allocation2 + $0x1c] sm:$0x1]  ;;  %v1487_v34 = vunpack.c.l.bf16 %v518_v20  ;;  %412 = vst [vmem:[#allocation2 + $0x2c] sm:$0x1] %v411_v27  ;;  %v1489_v36 = vunpack.c.l.bf16 %v433_v29  ;;  %v1491_v37 = vunpack.c.h.bf16 %v433_v29  ;;  %v456_v41 = vmul.f32 %v1457_v7, %v441_v30  ;;  %v1519_v59 = vld [vmem:[%s1895_s1 + $0x9] ss:$0 sm:$0xff] }
  0x27   : > { %v1493_v38 = vunpack.c.l.bf16 %v519_v32  ;;  %v457_v42 = vmul.f32 %v1457_v7, %v442_v31  ;;  %v478_v43 = vmul.f32 %v1462_v8, %v442_v31  ;;  %v541_v44 = vmul.f32 %v1411_v25, %v441_v30  ;;  %v770_v12 = vld [vmem:[#allocation2 + $0x10] sm:$0xe]  ;;  %v1538_v30 = vld [vmem:[%s1895_s1 + $0x6] ss:$0 sm:$0xff] }
  0x28   : > { %v479_v45 = vmul.f32 %v1462_v8, %v1489_v36  ;;  %v500_v46 = vmul.f32 %v1470_v13, %v1489_v36  ;;  %v501_v47 = vmul.f32 %v1470_v13, %v1491_v37  ;;  %v543_v49 = vmul.f32 %v1411_v25, %v442_v31 }
  0x29   : > { %v486_v50 = vadd.f32 %v478_v43, %v456_v41  ;;  %v544_v51 = vmul.f32 %v1411_v25, %v527_v33  ;;  %v574_v52 = vrot.slane %v541_v44, 1  ;;  %v619_v53 = vmul.f32 %v1498_v39, %v442_v31  ;;  %v1541_v31 = vld [vmem:[%s1394_s25 + $0x1c] sm:$0xf] }
  0x2a   : > { %v487_v54 = vadd.f32 %v479_v45, %v457_v42  ;;  %v577_v55 = vrot.slane %v543_v49, 1  ;;  %v620_v56 = vmul.f32 %v1498_v39, %v527_v33  ;;  %v621_v57 = vmul.f32 %v1498_v39, %v1489_v36  ;;  %v771_v42 = vld [vmem:[#allocation2 + $0x18] sm:$0xe] }
  0x2b   : > { %v508_v60 = vadd.f32 %v500_v46, %v486_v50  ;;  %v576_v61 = vsel %vm573_vm7, %v574_v52, %v575_v9  ;;  %v578_v62 = vrot.slane %v544_v51, 1  ;;  %v622_v63 = vmul.f32 %v1498_v39, %v1487_v34  ;;  %v1553_v52 = vld [vmem:[%s1895_s1 + $0xa] ss:$0 sm:$0xff] }
  0x2c   : > { %v509_v0 = vadd.f32 %v501_v47, %v487_v54  ;;  %v651_v1 = vrot.slane %v619_v53, 1  ;;  %v652_v2 = vrot.slane %v620_v56, 1  ;;  %v654_v4 = vrot.slane %v621_v57, 1 }
  0x2d   : > { %v579_v5 = vsel %vm573_vm7, %v577_v55, %v578_v62  ;;  %v606_v6 = vadd.f32 %v576_v61, %v508_v60  ;;  %v655_v10 = vrot.slane %v622_v63, 1  ;;  %v696_v11 = vmul.f32 %v1519_v59, %v1489_v36 }
  0x2e   : > { %v607_v17 = vadd.f32 %v579_v5, %v509_v0  ;;  %v653_v9 = vsel %vm573_vm7, %v651_v1, %v652_v2  ;;  %v697_v18 = vmul.f32 %v1519_v59, %v1487_v34  ;;  %v698_v19 = vmul.f32 %v1519_v59, %v1491_v37 }
  0x2f   : > { %v656_v20 = vsel %vm573_vm7, %v654_v4, %v655_v10  ;;  %v683_v24 = vadd.f32 %v653_v9, %v606_v6  ;;  %v699_v27 = vmul.f32 %v1519_v59, %v1493_v38  ;;  %v728_v29 = vrot.slane %v696_v11, 1 }
  0x30   : > { %v684_v32 = vadd.f32 %v656_v20, %v607_v17  ;;  %v729_v35 = vrot.slane %v697_v18, 1  ;;  %v731_v41 = vrot.slane %v698_v19, 1  ;;  %v780_v43 = vunpack.c.l.bf16 %v770_v12  ;;  %v413_v12 = vld [vmem:[#allocation2 + $0x30] sm:$0xf]  ;;  %v416_v17 = vld [vmem:[#allocation2 + $0x34] sm:$0x1] }
  0x31   : > { %v732_v44 = vrot.slane %v699_v27, 1  ;;  %v795_v45 = vmul.f32 %v1416_v26, %v779_v40  ;;  %v796_v46 = vmul.f32 %v1416_v26, %v527_v33  ;;  %v347_v47 = vrot.slane %v345_v15, 7  ;;  %v435_v27 = vld [vmem:[#allocation2 + $0x20] ss:$8 sps:$4 sm:$0xff]  }
  0x32   : > { %v730_v49 = vsel %vm573_vm7, %v728_v29, %v729_v35  ;;  %v871_v50 = vmul.f32 %v1538_v30, %v779_v40  ;;  %v872_v51 = vmul.f32 %v1538_v30, %v527_v33  ;;  %v1557_v53 = vcombine.low %v1541_v31, %v1541_v31 }
  0x33   : > { %v733_v54 = vsel %vm573_vm7, %v731_v41, %v732_v44  ;;  %v760_v55 = vadd.f32 %v730_v49, %v683_v24  ;;  %v1560_v56 = vunpack.c.l.bf16 %v771_v42  ;;  %v829_v15 = vrot.slane %v795_v45, 2  ;;  %v419_v24 = vld [vmem:[#allocation2 + $0x38] sm:$0xf]  ;;  %v422_v42 = vld [vmem:[#allocation2 + $0x3c] sm:$0x1] }
  0x34   : > { %v761_v57 = vadd.f32 %v733_v54, %v684_v32  ;;  %v830_v60 = vrot.slane %v796_v46, 2  ;;  %v873_v40 = vmul.f32 %v1538_v30, %v780_v43  ;;  %v874_v33 = vmul.f32 %v1538_v30, %v1487_v34  ;;  %v520_v44 = vld [vmem:[#allocation2 + $0x24] sm:$0x1]  ;;  %v1582_v46 = vld [vmem:[%s1896_s2] ss:$0 sm:$0xff] }
  0x35   : > { %v858_v61 = vadd.f32 %v1478_v21, %v760_v55  ;;  %v903_v62 = vrot.slane %v871_v50, 2  ;;  %v904_v63 = vrot.slane %v872_v51, 2  ;;  %v948_v0 = vmul.f32 %v1553_v52, %v780_v43 }
  0x36   : > { %v831_v1 = vsel %vm825_vm6, %v829_v15, %v830_v60  ;;  %v906_v2 = vrot.slane %v873_v40, 2  ;;  %v907_v4 = vrot.slane %v874_v33, 2  ;;  %v949_v5 = vmul.f32 %v1553_v52, %v1487_v34 }
  0x37   : > { %v859_v6 = vadd.f32 %v831_v1, %v761_v57  ;;  %v905_v10 = vsel %vm825_vm6, %v903_v62, %v904_v63  ;;  %v950_v11 = vmul.f32 %v1553_v52, %v1560_v56  ;;  %v951_v21 = vmul.f32 %v1553_v52, %v1493_v38 }
  0x38   : > { %v908_v9 = vsel %vm825_vm6, %v906_v2, %v907_v4  ;;  %v935_v18 = vadd.f32 %v905_v10, %v858_v61  ;;  %v980_v19 = vrot.slane %v948_v0, 2  ;;  %v981_v20 = vrot.slane %v949_v5, 2  ;;  %v772_v0 = vld [vmem:[#allocation2 + $0x20] sm:$0xe] }
  0x39   : > { %v936_v29 = vadd.f32 %v908_v9, %v859_v6  ;;  %v983_v32 = vrot.slane %v950_v11, 2  ;;  %v984_v35 = vrot.slane %v951_v21, 2  ;;  %vm1062_vm8 = vcmask 130048  }
  0x3a   : > { %v350_v41 = vor.u32 %v348_v16, %v347_v47  ;;  %v982_v45 = vsel %vm825_vm6, %v980_v19, %v981_v20  ;;  %v351_v49 = vrot.slane %v347_v47, 4  ;;  %v414_v50 = vsel %vm1404_vm4, %v1481_v23, %v413_v12  ;;  %v521_v16 = vld [vmem:[#allocation2 + $0x2c] sm:$0x1]  ;;  %v773_v12 = vld [vmem:[#allocation2 + $0x28] sm:$0xe] }
  0x3b   : > { %v417_v58 = vsel %vm1420_vm5, %v343_v14, %v416_v17  ;;  %v985_v51 = vsel %vm825_vm6, %v983_v32, %v984_v35  ;;  %v1012_v54 = vadd.f32 %v982_v45, %v935_v18  ;;  %415 = vst [vmem:[#allocation2 + $0x30] sm:$0xf] %v414_v50  ;;  %v1594_v15 = vunpack.c.l.bf16 %v435_v27 }
  0x3c   : > { %418 = vst [vmem:[#allocation2 + $0x34] sm:$0x1] %v417_v58  ;;  %v420_v55 = vsel %vm1404_vm4, %v350_v41, %v419_v24  ;;  %v1013_v47 = vadd.f32 %v985_v51, %v936_v29  ;;  %v423_v23 = vsel %vm1420_vm5, %v351_v49, %v422_v42  ;;  %v1598_v3 = vunpack.c.h.bf16 %v435_v27 }
  0x3d   : > { %421 = vst [vmem:[#allocation2 + $0x38] sm:$0xf] %v420_v55  ;;  %v1600_v57 = vunpack.c.l.bf16 %v520_v44  ;;  %v1603_v14 = vmul.f32 %v1416_v26, %v780_v43  ;;  %v1027_v60 = vadd.f32 %v1582_v46, %v1012_v54  ;;  %424 = vst [vmem:[#allocation2 + $0x3c] sm:$0x1] %v423_v23  ;;  %v1606_v40 = vunpack.c.l.bf16 %v521_v16 }
  0x3e   : > { %v549_v33 = vmul.f32 %v1411_v25, %v1594_v15  ;;  %v1028_v61 = vadd.f32 %v1582_v46, %v1013_v47  ;;  %v460_v62 = vmul.f32 %v1457_v7, %v1594_v15  ;;  %v482_v63 = vmul.f32 %v1462_v8, %v1598_v3 }
  0x3f   : > { %v550_v43 = vmul.f32 %v1411_v25, %v1600_v57  ;;  %v1035_v1 = vmax.f32 %v1027_v60, 0.0  ;;  %v551_v2 = vmul.f32 %v1411_v25, %v1598_v3  ;;  %v552_v4 = vmul.f32 %v1411_v25, %v1606_v40 }
  0x40   : > { %v586_v5 = vrot.slane %v549_v33, 1  ;;  %v1623_v6 = vmul.f32 %v1416_v26, %v1560_v56  ;;  %v1036_v10 = vmax.f32 %v1028_v61, 0.0  ;;  %v627_v21 = vmul.f32 %v1498_v39, %v1598_v3 }
  0x41   : > { %v587_v11 = vrot.slane %v550_v43, 1  ;;  %v589_v17 = vrot.slane %v551_v2, 1  ;;  %v590_v9 = vrot.slane %v552_v4, 1  ;;  %v628_v18 = vmul.f32 %v1498_v39, %v1606_v40 }
  0x42   : > { %v1629_v19 = vunpack.c.l.bf16 %v772_v0  ;;  %v1043_v20 = vpack.c.bf16 %v1036_v10, %v1035_v1  ;;  %v461_v24 = vmul.f32 %v1457_v7, %v1598_v3  ;;  %v490_v27 = vadd.f32 %v482_v63, %v460_v62  ;;  %v774_v2 = vld [vmem:[#allocation2 + $0x30] sm:$0xe] }
  0x43   : > { %v522_v29 = vld [vmem:[#allocation2 + $0x34] sm:$0x1]  ;;  %v663_v32 = vrot.slane %v627_v21, 1  ;;  %v588_v42 = vsel %vm573_vm7, %v586_v5, %v587_v11  ;;  %v664_v44 = vrot.slane %v628_v18, 1  ;;  %v1636_v45 = vunpack.c.l.bf16 %v773_v12 }
  0x44   : > { %v437_v35 = vld [vmem:[#allocation2 + $0x30] ss:$8 sps:$4 sm:$0xff]   ;;  %v1633_v41 = vunpack.c.l.bf16 %v522_v29  ;;  %1285 = vmatprep.mubr.msk.bf16.mxu0 %vm1062_vm8, %v1043_v20  ;;  %v523_v58 = vld [vmem:[#allocation2 + $0x3c] sm:$0x1]  ;;  %v591_v16 = vsel %vm573_vm7, %v589_v17, %v590_v9  ;;  %v801_v51 = vmul.f32 %v1416_v26, %v1629_v19  ;;  %v802_v18 = vmul.f32 %v1416_v26, %v1600_v57 }
  0x45   : > { %v1639_v49 = vunpack.c.l.bf16 %v437_v35  ;;  %v1641_v50 = vunpack.c.h.bf16 %v437_v35  ;;  %v1646_v54 = vunpack.c.l.bf16 %v523_v58  ;;  %v665_v47 = vsel %vm573_vm7, %v663_v32, %v664_v44  ;;  %v775_v21 = vld [vmem:[#allocation2 + $0x38] sm:$0xe] }
  0x46   : > { %v630_v55 = vmul.f32 %v1498_v39, %v1633_v41  ;;  %v705_v23 = vmul.f32 %v1519_v59, %v1633_v41  ;;  %v1669_v32 = vunpack.c.l.bf16 %v774_v2  ;;  %v803_v35 = vmul.f32 %v1416_v26, %v1636_v45 }
  0x47   : > { %v483_v60 = vmul.f32 %v1462_v8, %v1639_v49  ;;  %v504_v33 = vmul.f32 %v1470_v13, %v1639_v49  ;;  %v505_v61 = vmul.f32 %v1470_v13, %v1641_v50  ;;  %v629_v62 = vmul.f32 %v1498_v39, %v1639_v49 }
  0x48   : > { %v667_v63 = vrot.slane %v630_v55, 1  ;;  %v704_v43 = vmul.f32 %v1519_v59, %v1639_v49  ;;  %v706_v0 = vmul.f32 %v1519_v59, %v1641_v50  ;;  %v707_v1 = vmul.f32 %v1519_v59, %v1646_v54 }
  0x49   : > { %v491_v4 = vadd.f32 %v483_v60, %v461_v24  ;;  %v512_v5 = vadd.f32 %v504_v33, %v490_v27  ;;  %v666_v10 = vrot.slane %v629_v62, 1  ;;  %v741_v11 = vrot.slane %v705_v23, 1 }
  0x4a   : > { %v740_v12 = vrot.slane %v704_v43, 1  ;;  %v743_v17 = vrot.slane %v706_v0, 1  ;;  %v744_v9 = vrot.slane %v707_v1, 1  ;;  %v1675_v27 = vunpack.c.l.bf16 %v775_v21 }
  0x4b   : > { %v513_v20 = vadd.f32 %v505_v61, %v491_v4  ;;  %v610_v29 = vadd.f32 %v588_v42, %v512_v5  ;;  %v668_v44 = vsel %vm573_vm7, %v666_v10, %v667_v63  ;;  %v804_v58 = vmul.f32 %v1416_v26, %v1606_v40 }
  0x4c   : > { %v742_v24 = vsel %vm573_vm7, %v740_v12, %v741_v11  ;;  %v745_v60 = vsel %vm573_vm7, %v743_v17, %v744_v9  ;;  %v838_v33 = vrot.slane %v801_v51, 2  ;;  %v839_v42 = vrot.slane %v802_v18, 2 }
  0x4d   : > { %v611_v55 = vadd.f32 %v591_v16, %v513_v20  ;;  %v687_v23 = vadd.f32 %v665_v47, %v610_v29  ;;  %v841_v61 = vrot.slane %v803_v35, 2  ;;  %v842_v62 = vrot.slane %v804_v58, 2 }
  0x4e   : > { %v879_v43 = vmul.f32 %v1538_v30, %v1636_v45  ;;  %v880_v1 = vmul.f32 %v1538_v30, %v1606_v40  ;;  %v881_v2 = vmul.f32 %v1538_v30, %v1669_v32  ;;  %v840_v16 = vsel %vm825_vm6, %v838_v33, %v839_v42 }
  0x4f   : > { %v688_v0 = vadd.f32 %v668_v44, %v611_v55  ;;  %v764_v63 = vadd.f32 %v742_v24, %v687_v23  ;;  %v843_v47 = vsel %vm825_vm6, %v841_v61, %v842_v62  ;;  %v882_v51 = vmul.f32 %v1538_v30, %v1633_v41 }
  0x50   : > { %v915_v4 = vrot.slane %v879_v43, 2  ;;  %v916_v11 = vrot.slane %v880_v1, 2  ;;  %v918_v21 = vrot.slane %v881_v2, 2  ;;  %v956_v17 = vmul.f32 %v1553_v52, %v1669_v32 }
  0x51   : > { %v765_v5 = vadd.f32 %v745_v60, %v688_v0  ;;  %v862_v10 = vadd.f32 %v840_v16, %v764_v63  ;;  %v919_v12 = vrot.slane %v882_v51, 2  ;;  %v957_v9 = vmul.f32 %v1553_v52, %v1633_v41 }
  0x52   : > { %v958_v18 = vmul.f32 %v1553_v52, %v1675_v27  ;;  %v917_v29 = vsel %vm825_vm6, %v915_v4, %v916_v11  ;;  %v959_v35 = vmul.f32 %v1553_v52, %v1646_v54  ;;  %v458_v44 = vmul.f32 %v1457_v7, %v1489_v36 }
  0x53   : > { %v863_v20 = vadd.f32 %v843_v47, %v765_v5  ;;  %v920_v24 = vsel %vm825_vm6, %v918_v21, %v919_v12  ;;  %v939_v58 = vadd.f32 %v917_v29, %v862_v10  ;;  %v992_v55 = vrot.slane %v956_v17, 2 }
  0x54   : > { %v993_v23 = vrot.slane %v957_v9, 2  ;;  %v995_v33 = vrot.slane %v958_v18, 2  ;;  %v996_v42 = vrot.slane %v959_v35, 2  ;;  %v459_v61 = vmul.f32 %v1457_v7, %v1491_v37 }
  0x55   : > { %v940_v60 = vadd.f32 %v920_v24, %v863_v20  ;;  %v480_v43 = vmul.f32 %v1462_v8, %v1491_v37  ;;  %v481_v0 = vmul.f32 %v1462_v8, %v1594_v15  ;;  %v502_v63 = vmul.f32 %v1470_v13, %v1594_v15 }
  0x56   : > { %v994_v62 = vsel %vm825_vm6, %v992_v55, %v993_v23  ;;  %v997_v1 = vsel %vm825_vm6, %v995_v33, %v996_v42  ;;  %v503_v16 = vmul.f32 %v1470_v13, %v1598_v3  ;;  %v545_v47 = vmul.f32 %v1411_v25, %v1489_v36 }
  0x57   : > { %v1016_v2 = vadd.f32 %v994_v62, %v939_v58  ;;  %v1017_v51 = vadd.f32 %v997_v1, %v940_v60  ;;  %v488_v4 = vadd.f32 %v480_v43, %v458_v44  ;;  %v489_v5 = vadd.f32 %v481_v0, %v459_v61 }
  0x58   : > { %v546_v10 = vmul.f32 %v1411_v25, %v1487_v34  ;;  %v547_v21 = vmul.f32 %v1411_v25, %v1491_v37  ;;  %v548_v12 = vmul.f32 %v1411_v25, %v1493_v38  ;;  %v580_v17 = vrot.slane %v545_v47, 1 }
  0x59   : > { %v1031_v11 = vadd.f32 %v1582_v46, %v1016_v2  ;;  %v1032_v9 = vadd.f32 %v1582_v46, %v1017_v51  ;;  %v510_v18 = vadd.f32 %v502_v63, %v488_v4  ;;  %v511_v20 = vadd.f32 %v503_v16, %v489_v5 }
  0x5a   : > { %v581_v36 = vrot.slane %v546_v10, 1  ;;  %v583_v35 = vrot.slane %v547_v21, 1  ;;  %v584_v44 = vrot.slane %v548_v12, 1  ;;  %v623_v24 = vmul.f32 %v1498_v39, %v1491_v37 }
  0x5b   : > { %v1039_v29 = vmax.f32 %v1031_v11, 0.0  ;;  %v1040_v58 = vmax.f32 %v1032_v9, 0.0  ;;  %v624_v23 = vmul.f32 %v1498_v39, %v1493_v38  ;;  %v625_v60 = vmul.f32 %v1498_v39, %v1594_v15 }
  0x5c   : > { %v582_v55 = vsel %vm573_vm7, %v580_v17, %v581_v36  ;;  %v585_v33 = vsel %vm573_vm7, %v583_v35, %v584_v44  ;;  %v626_v61 = vmul.f32 %v1498_v39, %v1600_v57  ;;  %v657_v62 = vrot.slane %v623_v24, 1 }
  0x5d   : > { %v608_v42 = vadd.f32 %v582_v55, %v510_v18  ;;  %v1045_v43 = vpack.c.bf16 %v1040_v58, %v1039_v29  ;;  %v609_v0 = vadd.f32 %v585_v33, %v511_v20  ;;  %v658_v63 = vrot.slane %v624_v23, 1 }
  0x5e   : > { %v660_v37 = vrot.slane %v625_v60, 1  ;;  %v661_v1 = vrot.slane %v626_v61, 1  ;;  %v700_v2 = vmul.f32 %v1519_v59, %v1594_v15  ;;  %v701_v16 = vmul.f32 %v1519_v59, %v1600_v57 }
  0x5f   : > { %v702_v47 = vmul.f32 %v1519_v59, %v1598_v3  ;;  %1289 = vmatprep.mubr.msk.bf16.mxu1 %vm1062_vm8, %v1045_v43  ;;  %v659_v51 = vsel %vm573_vm7, %v657_v62, %v658_v63  ;;  %v703_v4 = vmul.f32 %v1519_v59, %v1606_v40  ;;  %v798_v5 = vmul.f32 %v1416_v26, %v1487_v34 }
  0x60   : > { %v800_v10 = vmul.f32 %v1416_v26, %v1493_v38  ;;  %v662_v15 = vsel %vm573_vm7, %v660_v37, %v661_v1  ;;  %v685_v11 = vadd.f32 %v659_v51, %v608_v42  ;;  %v734_v21 = vrot.slane %v700_v2, 1 }
  0x61   : > { %v735_v12 = vrot.slane %v701_v16, 1  ;;  %v686_v17 = vadd.f32 %v662_v15, %v609_v0  ;;  %v737_v3 = vrot.slane %v702_v47, 1  ;;  %v738_v9 = vrot.slane %v703_v4, 1  ;;  %v1773_v4 = vld [vmem:[#allocation2 + $0x4c] sm:$0x1] }
  0x62   : > { %v832_v18 = vrot.slane %v1603_v14, 2  ;;  %v833_v36 = vrot.slane %v798_v5, 2  ;;  %v835_v29 = vrot.slane %v1623_v6, 2  ;;  %v836_v35 = vrot.slane %v800_v10, 2 }
  0x63   : > { %v736_v20 = vsel %vm573_vm7, %v734_v21, %v735_v12  ;;  %v739_v34 = vsel %vm573_vm7, %v737_v3, %v738_v9  ;;  %v875_v24 = vmul.f32 %v1538_v30, %v1560_v56  ;;  %v876_v58 = vmul.f32 %v1538_v30, %v1493_v38  ;;  %v425_v12 = vld [vmem:[#allocation2 + $0x40] sm:$0xf] }
  0x64   : > { %v762_v44 = vadd.f32 %v736_v20, %v685_v11  ;;  %v763_v55 = vadd.f32 %v739_v34, %v686_v17  ;;  %v834_v23 = vsel %vm825_vm6, %v832_v18, %v833_v36  ;;  %v837_v14 = vsel %vm825_vm6, %v835_v29, %v836_v35  ;;  %v428_v17 = vld [vmem:[#allocation2 + $0x44] sm:$0x1] }
  0x65   : > { %v877_v60 = vmul.f32 %v1538_v30, %v1629_v19  ;;  %v878_v6 = vmul.f32 %v1538_v30, %v1600_v57  ;;  %v909_v42 = vrot.slane %v875_v24, 2  ;;  %v910_v61 = vrot.slane %v876_v58, 2 }
  0x66   : > { %v860_v33 = vadd.f32 %v834_v23, %v762_v44  ;;  %v861_v62 = vadd.f32 %v837_v14, %v763_v55  ;;  %v952_v56 = vmul.f32 %v1553_v52, %v1629_v19  ;;  %v953_v38 = vmul.f32 %v1553_v52, %v1600_v57 }
  0x67   : > { %v912_v43 = vrot.slane %v877_v60, 2  ;;  %v911_v0 = vsel %vm825_vm6, %v909_v42, %v910_v61  ;;  %v913_v63 = vrot.slane %v878_v6, 2  ;;  %v954_v37 = vmul.f32 %v1553_v52, %v1636_v45 }
  0x68   : > { %v955_v1 = vmul.f32 %v1553_v52, %v1606_v40  ;;  %v937_v2 = vadd.f32 %v911_v0, %v860_v33  ;;  %v986_v16 = vrot.slane %v952_v56, 2  ;;  %v987_v47 = vrot.slane %v953_v38, 2 }
  0x69   : > { %v353_v51 = vshrl.u32 %v1557_v53, 16  ;;  %v914_v19 = vsel %vm825_vm6, %v912_v43, %v913_v63  ;;  %v989_v5 = vrot.slane %v954_v37, 2  ;;  %v356_v10 = vshll.u32 %v1557_v53, 16 }
  0x6a   : > { %v990_v57 = vrot.slane %v955_v1, 2  ;;  %v938_v15 = vadd.f32 %v914_v19, %v861_v62  ;;  %v988_v11 = vsel %vm825_vm6, %v986_v16, %v987_v47  ;;  %v535_v3 = vunpack.c.l.bf16 %v1773_v4  ;;  %v777_v62 = vld [vmem:[#allocation2 + $0x48] sm:$0xe] }
  0x6b   : > { %v355_v45 = vrot.slane %v353_v51, 7  ;;  %v1014_v40 = vadd.f32 %v988_v11, %v937_v2  ;;  %v553_v36 = vmul.f32 %v1411_v25, %v1639_v49  ;;  %v1784_v53 = vmul.f32 %v1416_v26, %v1669_v32 }
  0x6c   : > { %v991_v21 = vsel %vm825_vm6, %v989_v5, %v990_v57  ;;  %v554_v35 = vmul.f32 %v1411_v25, %v1633_v41  ;;  %v555_v34 = vmul.f32 %v1411_v25, %v1641_v50  ;;  %v556_v32 = vmul.f32 %v1411_v25, %v1646_v54 }
  0x6d   : > { %v1015_v9 = vadd.f32 %v991_v21, %v938_v15  ;;  %v358_v18 = vor.u32 %v356_v10, %v355_v45  ;;  %v359_v20 = vrot.slane %v355_v45, 4  ;;  %v1029_v29 = vadd.f32 %v1582_v46, %v1014_v40 }
  0x6e   : > { %v1800_v55 = vmul.f32 %v1416_v26, %v1675_v27  ;;  %v462_v14 = vmul.f32 %v1457_v7, %v1639_v49  ;;  %v484_v22 = vmul.f32 %v1462_v8, %v1641_v50  ;;  %v592_v33 = vrot.slane %v553_v36, 1 }
  0x6f   : > { %v1030_v44 = vadd.f32 %v1582_v46, %v1015_v9  ;;  %v426_v24 = vsel %vm1404_vm4, %v358_v18, %v425_v12  ;;  %v429_v58 = vsel %vm1420_vm5, %v359_v20, %v428_v17  ;;  %v1037_v23 = vmax.f32 %v1029_v29, 0.0 }
  0x70   : > { %427 = vst [vmem:[#allocation2 + $0x40] sm:$0xf] %v426_v24  ;;  %430 = vst [vmem:[#allocation2 + $0x44] sm:$0x1] %v429_v58  ;;  %v631_v28 = vmul.f32 %v1498_v39, %v1641_v50  ;;  %v632_v25 = vmul.f32 %v1498_v39, %v1646_v54  ;;  %v593_v6 = vrot.slane %v554_v35, 1  ;;  %v595_v42 = vrot.slane %v555_v34, 1 }
  0x71   : > { %v1038_v60 = vmax.f32 %v1030_v44, 0.0  ;;  %v711_v61 = vmul.f32 %v1519_v59, %v535_v3  ;;  %v806_v49 = vmul.f32 %v1416_v26, %v1633_v41  ;;  %v596_v56 = vrot.slane %v556_v32, 1 }
  0x72   : > { %v669_v38 = vrot.slane %v631_v28, 1  ;;  %v670_v0 = vrot.slane %v632_v25, 1  ;;  %v463_v63 = vmul.f32 %v1457_v7, %v1641_v50  ;;  %v787_v37 = vunpack.c.l.bf16 %v777_v62 }
  0x73   : > { %v1044_v43 = vpack.c.bf16 %v1038_v60, %v1037_v23  ;;  %v808_v1 = vmul.f32 %v1416_v26, %v1646_v54  ;;  %v750_v2 = vrot.slane %v711_v61, 1  ;;  %v844_v16 = vrot.slane %v1784_v53, 2 }
  0x74   : > { %v845_v47 = vrot.slane %v806_v49, 2  ;;  %v847_v51 = vrot.slane %v1800_v55, 2  ;;  %v492_v19 = vadd.f32 %v484_v22, %v462_v14  ;;  %v594_v57 = vsel %vm573_vm7, %v592_v33, %v593_v6 }
  0x75   : > { %1286 = vmatmul.mubr.msk.bf16.vlgmr.msra.gmra.mxu0 %vm1062_vm8, %v1044_v43  ;;  %v597_v10 = vsel %vm573_vm7, %v595_v42, %v596_v56  ;;  %v671_v15 = vsel %vm573_vm7, %v669_v38, %v670_v0  ;;  %v848_v21 = vrot.slane %v808_v1, 2  ;;  %v883_v40 = vmul.f32 %v1538_v30, %v1675_v27 }
  0x76   : > { %v884_v12 = vmul.f32 %v1538_v30, %v1646_v54  ;;  %v962_v17 = vmul.f32 %v1553_v52, %v787_v37  ;;  %v846_v6 = vsel %vm825_vm6, %v844_v16, %v845_v47 }
  0x77   : > { %v439_v41 = vld [vmem:[#allocation2 + $0x40] ss:$8 sps:$4 sm:$0xff]   ;;  %v524_v5 = vld [vmem:[#allocation2 + $0x44] sm:$0x1]  ;;  %v921_v60 = vrot.slane %v883_v40, 2  ;;  %v849_v43 = vsel %vm825_vm6, %v847_v51, %v848_v21 }
  0x78   : > { %v776_v7 = vld [vmem:[#allocation2 + $0x40] sm:$0xe]  ;;  %v449_v50 = vunpack.c.l.bf16 %v439_v41  ;;  %v450_v11 = vunpack.c.h.bf16 %v439_v41  ;;  %v534_v45 = vunpack.c.l.bf16 %v524_v5  ;;  %v922_v33 = vrot.slane %v884_v12, 2 }
  0x79   : > { %v786_v26 = vunpack.c.l.bf16 %v776_v7 }
  0x7a   : > { %v485_v9 = vmul.f32 %v1462_v8, %v449_v50  ;;  %v506_v18 = vmul.f32 %v1470_v13, %v449_v50  ;;  %v507_v20 = vmul.f32 %v1470_v13, %v450_v11  ;;  %v633_v36 = vmul.f32 %v1498_v39, %v449_v50 }
  0x7b   : > { %v634_v53 = vmul.f32 %v1498_v39, %v534_v45  ;;  %v708_v29 = vmul.f32 %v1519_v59, %v449_v50  ;;  %v709_v35 = vmul.f32 %v1519_v59, %v534_v45  ;;  %v710_v27 = vmul.f32 %v1519_v59, %v450_v11 }
  0x7c   : > { %v493_v34 = vadd.f32 %v485_v9, %v463_v63  ;;  %v514_v54 = vadd.f32 %v506_v18, %v492_v19  ;;  %v672_v44 = vrot.slane %v633_v36, 1  ;;  %v885_v24 = vmul.f32 %v1538_v30, %v786_v26  ;;  %v1312_v36 = vld [vmem:[%s1394_s25 + $0xc] sm:$0xf] }
  0x7d   : > { %v673_v8 = vrot.slane %v634_v53, 1  ;;  %v746_v58 = vrot.slane %v708_v29, 1  ;;  %v747_v32 = vrot.slane %v709_v35, 1  ;;  %v749_v55 = vrot.slane %v710_v27, 1 }
  0x7e   : > { %v515_v13 = vadd.f32 %v507_v20, %v493_v34  ;;  %v612_v23 = vadd.f32 %v594_v57, %v514_v54  ;;  %v886_v14 = vmul.f32 %v1538_v30, %v534_v45  ;;  %v963_v39 = vmul.f32 %v1553_v52, %v535_v3  ;;  %v1313_v54 = vld [vmem:[%s1394_s25 + $0x4] sm:$0xf] }
  0x7f   : > { %v674_v22 = vsel %vm573_vm7, %v672_v44, %v673_v8  ;;  %v748_v59 = vsel %vm573_vm7, %v746_v58, %v747_v32  ;;  %v960_v42 = vmul.f32 %v1553_v52, %v786_v26  ;;  %v751_v61 = vsel %vm573_vm7, %v749_v55, %v750_v2  ;;  %v1310_v26 = vld [vmem:[%s1394_s25 + $0x8] sm:$0xf] }
  0x80   : > { %v613_v28 = vadd.f32 %v597_v10, %v515_v13  ;;  %v689_v25 = vadd.f32 %v671_v15, %v612_v23  ;;  %v924_v62 = vrot.slane %v885_v24, 2  ;;  %v925_v30 = vrot.slane %v886_v14, 2 }
  0x81   : > { %v961_v4 = vmul.f32 %v1553_v52, %v534_v45  ;;  %v998_v56 = vrot.slane %v960_v42, 2  ;;  %v923_v38 = vsel %vm825_vm6, %v921_v60, %v922_v33  ;;  %v1001_v63 = vrot.slane %v962_v17, 2  ;;  %v1260_v45 = vld [vmem:[%s1898_s4] ss:$0 sm:$0xff] }
  0x82   : > { %v690_v49 = vadd.f32 %v674_v22, %v613_v28  ;;  %v766_v3 = vadd.f32 %v748_v59, %v689_v25  ;;  %v1002_v37 = vrot.slane %v963_v39, 2  ;;  %v926_v47 = vsel %vm825_vm6, %v924_v62, %v925_v30  ;;  %v1311_v17 = vld [vmem:[%s1394_s25] sm:$0xf]  ;;  %v1314_v59 = vld [vmem:[%s1394_s25 + $0x10] sm:$0xf] }
  0x83   : > { %v999_v0 = vrot.slane %v961_v4, 2  ;;  %v236_v21 = vunpack.c.l.bf16 %v1310_v26  ;;  %v234_v9 = vunpack.c.l.bf16 %v1311_v17  ;;  %v237_v53 = vunpack.c.l.bf16 %v1312_v36  ;;  %v1315_v4 = vld [vmem:[%s1394_s25 + $0x14] sm:$0xf] }
  0x84   : > { %v767_v1 = vadd.f32 %v751_v61, %v690_v49  ;;  %v864_v16 = vadd.f32 %v846_v6, %v766_v3  ;;  %v1003_v52 = vsel %vm825_vm6, %v1001_v63, %v1002_v37  ;;  %v235_v44 = vunpack.c.l.bf16 %v1313_v54 }
  0x85   : > { %v1000_v2 = vsel %vm825_vm6, %v998_v56, %v999_v0  ;;  %v240_v14 = vunpack.c.l.bf16 %v1435_v48  ;;  %v238_v60 = vunpack.c.l.bf16 %v1314_v59  ;;  %v241_v6 = vunpack.c.l.bf16 %v1541_v31 }
  0x86   : > { %v865_v41 = vadd.f32 %v849_v43, %v767_v1  ;;  %v941_v19 = vadd.f32 %v923_v38, %v864_v16  ;;  %v239_v49 = vunpack.c.l.bf16 %v1315_v4 }
  0x88   : > { %v942_v5 = vadd.f32 %v926_v47, %v865_v41  ;;  %v1018_v51 = vadd.f32 %v1000_v2, %v941_v19 }
  0x8a   : > { %v1019_v57 = vadd.f32 %v1003_v52, %v942_v5  ;;  %v1033_v10 = vadd.f32 %v1582_v46, %v1018_v51 }
  0x8c   : > { %v1034_v15 = vadd.f32 %v1582_v46, %v1019_v57  ;;  %v1041_v7 = vmax.f32 %v1033_v10, 0.0 }
  0x8e   : > { %v1042_v50 = vmax.f32 %v1034_v15, 0.0 }
  0x90   : > { %v1046_v11 = vpack.c.bf16 %v1042_v50, %v1041_v7 }
  0x92   : > { %1290 = vmatmul.mubr.msk.bf16.vlgmr.msra.gmra.mxu1 %vm1062_vm8, %v1046_v11 }
 0x135   : > { %v1287_v40 = vpop.f32.mrf.mxu0 }
 0x136   : > { %v1118_v12 = vadd.f32 %v1287_v40, %v1260_v45 }
 0x137   : > { %v1109_v18 = vpop.f32.mrf.mxu0 }
 0x138   : > { %v1142_v20 = vadd.f32 %v1118_v12, %v236_v21  ;;  %v1110_v46 = vadd.f32 %v1260_v45, %v1109_v18 }
 0x139   : > { %v1288_v29 = vpop.f32.mrf.mxu0 }
 0x13a   : > { %v1150_v35 = vpack.c.bf16 %v1142_v20, %v1142_v20  ;;  %v1140_v27 = vadd.f32 %v1110_v46, %v234_v9  ;;  %v1121_v34 = vadd.f32 %v1288_v29, %v1260_v45 }
 0x13b   : > { %v1112_v24 = vpop.f32.mrf.mxu0 }
 0x13c   : > { %1158 = vst.msk [vmem:[%s1868_s29 + $0x8] sm:$0xf] %vm242_vm0, %v1150_v35  ;;  %v1148_v8 = vpack.c.bf16 %v1140_v27, %v1140_v27  ;;  %v1143_v58 = vadd.f32 %v1121_v34, %v237_v53  ;;  %v1113_v32 = vadd.f32 %v1260_v45, %v1112_v24 }
 0x13e   : > { %1156 = vst.msk [vmem:[%s1868_s29] sm:$0xf] %vm242_vm0, %v1148_v8  ;;  %v1151_v55 = vpack.c.bf16 %v1143_v58, %v1143_v58  ;;  %v1141_v13 = vadd.f32 %v1113_v32, %v235_v44 }
 0x140   : > { %1159 = vst.msk [vmem:[%s1868_s29 + $0xc] sm:$0xf] %vm242_vm0, %v1151_v55  ;;  %v1149_v23 = vpack.c.bf16 %v1141_v13, %v1141_v13 }
 0x142   : > { %1157 = vst.msk [vmem:[%s1868_s29 + $0x4] sm:$0xf] %vm242_vm0, %v1149_v23 }
 0x152   : > { %v1291_v39 = vpop.f32.mrf.mxu1 }
 0x153   : > { %v1134_v22 = vadd.f32 %v1291_v39, %v1260_v45 }
 0x154   : > { %v1125_v33 = vpop.f32.mrf.mxu1 }
 0x155   : > { %v1146_v28 = vadd.f32 %v1134_v22, %v240_v14  ;;  %v1126_v25 = vadd.f32 %v1260_v45, %v1125_v33 }
 0x156   : > { %v1292_v42 = vpop.f32.mrf.mxu1 }
 0x157   : > { %v1154_v61 = vpack.c.bf16 %v1146_v28, %v1146_v28  ;;  %v1144_v62 = vadd.f32 %v1126_v25, %v238_v60  ;;  %v1137_v30 = vadd.f32 %v1292_v42, %v1260_v45 }
 0x158   : > { %v1128_v48 = vpop.f32.mrf.mxu1 }
 0x159   : > { %1162 = vst.msk [vmem:[%s1868_s29 + $0x18] sm:$0xf] %vm242_vm0, %v1154_v61  ;;  %v1152_v3 = vpack.c.bf16 %v1144_v62, %v1144_v62  ;;  %v1147_v43 = vadd.f32 %v1137_v30, %v241_v6  ;;  %v1129_v56 = vadd.f32 %v1260_v45, %v1128_v48 }
 0x15b   : > { %1160 = vst.msk [vmem:[%s1868_s29 + $0x10] sm:$0xf] %vm242_vm0, %v1152_v3  ;;  %v1155_v38 = vpack.c.bf16 %v1147_v43, %v1147_v43  ;;  %v1145_v0 = vadd.f32 %v1129_v56, %v239_v49 }
 0x15d   : > { %1163 = vst.msk [vmem:[%s1868_s29 + $0x1c] sm:$0xf] %vm242_vm0, %v1155_v38  ;;  %v1153_v31 = vpack.c.bf16 %v1145_v0, %v1145_v0 }
 0x15f   : > { %1161 = vst.msk [vmem:[%s1868_s29 + $0x14] sm:$0xf] %vm242_vm0, %v1153_v31 }
 0x160 PF: > { %s15_s18 = sadd.s32 1, %s1322_s18  }
 0x161   : > { %p12_p4 = scmp.ge.s32.totalorder %s15_s18, 4  }
 0x163   :  { %14 = sbr.rel (!%p12_p4) target bundleno = 1 (0x1), region = 73 }

// kernel: mobilenet_v3_forward.15
= control target key start
LH: loop header
LB: loop body
LE: loop exit
PB: predicated region body
PF: predicated region fallthrough
CT: control target
= control target key end

     0   :  { %vm55_vm0 = vcmask 1043456   ;;  %vm48_vm1 = vcmask 195584   ;;  %vm144_vm2 = vcmask 781312   ;;  %s232_s1 = inlined_call_operand.vmem [shape: bf16[24,96], index: 1, kind: input, shape index: {}]   ;;  %s233_s0 = inlined_call_operand.vmem [shape: bf16[32,24], index: 0, kind: input, shape index: {}]   ;;  %s234_s2 = inlined_call_operand.vmem [shape: f32[1,96], index: 2, kind: input, shape index: {}]   ;;  %s235_s3 = inlined_call_operand.vmem [shape: bf16[32,96], index: 3, kind: output, shape index: {}]  }
   0x1   :  { %v181_v0 = vld [vmem:[%s232_s1 + $0x8] ss:$0 sps:$4 sm:$0xff]   ;;  %v182_v1 = vld [vmem:[%s232_s1] sm:$0xff]  }
   0x2   :  { %180 = vmatprep.subr.msk.bf16.mxu0 %vm55_vm0, %v181_v0  ;;  %v57_v2 = vsel %vm55_vm0, %v181_v0, 0  ;;  %v183_v3 = vld [vmem:[%s233_s0] sm:$0xff]   ;;  %v184_v4 = vld [vmem:[%s233_s0 + $0x8] sm:$0xff]  }
   0x3   :  { %173 = vmatpush3.bf16.msra.mxu0 %v57_v2  ;;  %176 = vmatprep.mubr.msk.bf16.mxu0 %vm48_vm1, %v183_v3  ;;  %v153_v5 = vld [vmem:[%s234_s2] ss:$0 sm:$0xff] }
   0x4   :  { %174 = vmatprep.subr.bf16.mxu0 %v182_v1 }
   0x7   :  { %175 = vmatpush3.bf16.msra.mxu0 %v182_v1 }
   0xa   :  { %177 = vmatmul.mubr.msk.bf16.vlgmr.msra.gmra.mxu0 %vm48_vm1, %v184_v4 }
  0xca   :  { %v178_v6 = vpop.f32.mrf.mxu0 }
  0xcb   :  { %v102_v7 = vadd.f32 %v178_v6, %v153_v5 }
  0xcc   :  { %v93_v8 = vpop.f32.mrf.mxu0 }
  0xcd   :  { %v110_v9 = vadd.f32 3.0, %v102_v7  ;;  %v94_v10 = vadd.f32 %v153_v5, %v93_v8 }
  0xce   :  { %v179_v11 = vpop.f32.mrf.mxu0 }
  0xcf   :  { %v114_v12 = vmax.f32 %v110_v9, 0.0  ;;  %v108_v13 = vadd.f32 3.0, %v94_v10  ;;  %v105_v14 = vadd.f32 %v179_v11, %v153_v5 }
  0xd0   :  { %v96_v15 = vpop.f32.mrf.mxu0 }
  0xd1   :  { %v118_v16 = vmin.f32 %v114_v12, 6.0  ;;  %v112_v17 = vmax.f32 %v108_v13, 0.0  ;;  %v111_v18 = vadd.f32 3.0, %v105_v14  ;;  %v97_v19 = vadd.f32 %v153_v5, %v96_v15 }
  0xd3   :  { %v122_v20 = vmul.f32 %v118_v16, %v102_v7  ;;  %v116_v21 = vmin.f32 %v112_v17, 6.0  ;;  %v115_v22 = vmax.f32 %v111_v18, 0.0  ;;  %v109_v23 = vadd.f32 3.0, %v97_v19 }
  0xd5   :  { %v126_v24 = vmul.f32 0.16666667, %v122_v20  ;;  %v120_v25 = vmul.f32 %v116_v21, %v94_v10  ;;  %v119_v26 = vmin.f32 %v115_v22, 6.0  ;;  %v113_v27 = vmax.f32 %v109_v23, 0.0 }
  0xd7   :  { %v166_v28 = vpack.c.bf16 %v126_v24, %v126_v24  ;;  %v124_v29 = vmul.f32 0.16666667, %v120_v25  ;;  %v123_v30 = vmul.f32 %v119_v26, %v105_v14  ;;  %v117_v31 = vmin.f32 %v113_v27, 6.0 }
  0xd9   :  { %147 = vst.msk [vmem:[%s235_s3 + $0x8] sm:$0xf] %vm144_vm2, %v166_v28  ;;  %v164_v32 = vpack.c.bf16 %v124_v29, %v124_v29  ;;  %v127_v33 = vmul.f32 0.16666667, %v123_v30  ;;  %v121_v34 = vmul.f32 %v117_v31, %v97_v19 }
  0xdb   :  { %145 = vst.msk [vmem:[%s235_s3] sm:$0xf] %vm144_vm2, %v164_v32  ;;  %v167_v35 = vpack.c.bf16 %v127_v33, %v127_v33  ;;  %v125_v36 = vmul.f32 0.16666667, %v121_v34 }
  0xdd   :  { %148 = vst.msk [vmem:[%s235_s3 + $0xc] sm:$0xf] %vm144_vm2, %v167_v35  ;;  %v165_v37 = vpack.c.bf16 %v125_v36, %v125_v36 }
  0xdf   :  { %146 = vst.msk [vmem:[%s235_s3 + $0x4] sm:$0xf] %vm144_vm2, %v165_v37 }

// kernel: mobilenet_v3_forward.14
= control target key start
LH: loop header
LB: loop body
LE: loop exit
PB: predicated region body
PF: predicated region fallthrough
CT: control target
= control target key end

     0   :  { %s1028_s24 = smov 0   ;;  %s1203_s0 = inlined_call_operand.vmem [shape: bf16[2,4,4,24], index: 0, kind: input, shape index: {}]   ;;  %s1204_s1 = inlined_call_operand.vmem [shape: bf16[24,72], index: 1, kind: input, shape index: {}]   ;;  %s1205_s2 = inlined_call_operand.vmem [shape: f32[1,72], index: 2, kind: input, shape index: {}, may-alias: {2,4}]   ;;  %s1206_s3 = inlined_call_operand.vmem [shape: f32[3,3,72], index: 3, kind: input, shape index: {}]   ;;  %s1207_s4 = inlined_call_operand.vmem [shape: f32[1,72], index: 4, kind: input, shape index: {}, may-alias: {2,4}]   ;;  %s1208_s5 = inlined_call_operand.vmem [shape: bf16[72,24], index: 5, kind: input, shape index: {}]   ;;  %s1209_s6 = inlined_call_operand.vmem [shape: f32[1,24], index: 6, kind: input, shape index: {}]   ;;  %s1210_s7 = inlined_call_operand.vmem [shape: bf16[2,4,4,24], index: 7, kind: output, shape index: {}]  }
   0x1 LB: > { %s878_s25 = sadd.s32 4294967295, %s982_s24   ;;  %p882_p0 = scmp.ge.s32.totalorder %s982_s24, 1  ;;  %s982_s24 = sphi %s1028_s24, %s17_s24  }
   0x2   : > { %p237_p1 = scmp.lt.s32.totalorder %s982_s24, 3 }
   0x4   : > { %p238_p2 = pnand %p882_p0, %p237_p1 }
   0x5   : > { %p269_p3 = scmp.lt.s32.totalorder (!%p238_p2), %s878_s25, 1 }
   0x6   : > { %241 = sbr.rel (%p238_p2) target bundleno = 479 (0x1df), region = 48 }
   0xb   : > { %v969_v0 = vld [vmem:[%s1204_s1 + $0x8] ss:$0 sps:$4 sm:$0xff]   ;;  %vm328_vm0 = vcmask 1043456   ;;  %v303_v1 = vlaneseq  ;;  %v984_v2 = vmov 0.0   ;;  %vm985_vm1 = vmmov 0   ;;  %v970_v4 = vld [vmem:[%s1204_s1] sm:$0xff]  }
   0xc   : > { %935 = vmatprep.subr.bf16.mxu0 %v984_v2  ;;  %943 = vmatprep.subr.bf16.mxu1 %v984_v2  ;;  %v330_v3 = vsel %vm328_vm0, %v969_v0, 0  ;;  %v986_v5 = vmov 1983009808   ;;  %s1214_s25 = smov (!%p269_p3, %s878_s25), 1  ;;  %vm324_vm2 = vcmask 195584   ;;  %vm375_vm3 = vcmask 583680  }
   0xd   : > { %939 = vmatprep.mubr.msk.bf16.mxu0 %vm985_vm1, %v984_v2  ;;  %953 = vmatprep.mubr.msk.bf16.mxu1 %vm985_vm1, %v984_v2  ;;  %v301_v6 = vunpack.c.l.s4 %v986_v5  ;;  %v304_v7 = vshrl.u32 %v303_v1, 7  ;;  %s920_s30 = sshll.u32 %s1214_s25, 3  ;;  %v987_v19 = vmov 0   ;;  %v971_v20 = vld [vmem:[%s1208_s5 + $0x20] ss:$0 sps:$4 sm:$0xff]   ;;  %v972_v22 = vld [vmem:[%s1208_s5 + $0x18] sm:$0xff]  }
   0xe   : > { %936 = vmatpush3.bf16.msra.mxu0 %v330_v3  ;;  %s273_s10 = scalar_lea.vmem %s1203_s0, %s920_s30  ;;  %376 = vst.msk [vmem:[#allocation2] sm:$0x7] %vm375_vm3, %v987_v19  ;;  %377 = vst.msk [vmem:[#allocation2 + $0x4] sm:$0x7] %vm375_vm3, %v987_v19  ;;  %v751_v21 = vsel %vm328_vm0, %v971_v20, 0  ;;  %v973_v23 = vld [vmem:[%s1208_s5 + $0x10] sm:$0xff]   ;;  %s278_s29 = scalar_lea.vmem %s1210_s7, %s920_s30 }
   0xf   : > { %937 = vmatprep.subr.bf16.mxu0 %v984_v2  ;;  %v302_v8 = vunpack.c.0.s8 %v301_v6  ;;  %v1051_v10 = vld [vmem:[%s273_s10] sm:$0x3]  ;;  %v1053_v11 = vld [vmem:[%s273_s10 + $0x2] sm:$0x3]  ;;  %v1055_v12 = vld [vmem:[%s273_s10 + $0x4] sm:$0x3]  ;;  %944 = vmatpush3.bf16.msra.mxu1 %v751_v21 }
  0x10   : > { %v1057_v13 = vld [vmem:[%s273_s10 + $0x6] sm:$0x3]  ;;  %v298_v14 = vcombine.low %v1051_v10, %v1053_v11  ;;  %378 = vst.msk [vmem:[#allocation2 + $0x8] sm:$0x7] %vm375_vm3, %v987_v19  ;;  %381 = vst.msk [vmem:[#allocation2 + $0x14] sm:$0x7] %vm375_vm3, %v987_v19  ;;  %945 = vmatprep.subr.bf16.mxu1 %v984_v2 }
  0x11   : > { %v305_v9 = vsub.s32 %v302_v8, %v304_v7  ;;  %v299_v15 = vcombine.low %v1055_v12, %v1057_v13  ;;  %379 = vst.msk [vmem:[#allocation2 + $0xc] sm:$0x7] %vm375_vm3, %v987_v19  ;;  %380 = vst.msk [vmem:[#allocation2 + $0x10] sm:$0x7] %vm375_vm3, %v987_v19  ;;  %v974_v24 = vld [vmem:[%s1208_s5 + $0x8] sm:$0xff]   ;;  %v975_v25 = vld [vmem:[%s1208_s5] sm:$0xff]  }
  0x12   : > { %938 = vmatpush3.bf16.msra.mxu0 %v970_v4  ;;  %v887_v26 = vld [vmem:[%s1205_s2] ss:$0 sm:$0xff]  ;;  %vm438_vm4 = vsmask.f32 2306  ;;  %v1105_v7 = vld [vmem:[%s1206_s3 + $0x9] ss:$0 sm:$0xff] }
  0x13   : > { %v306_v16 = vrot.slane %v298_v14, %v305_v9  ;;  %v313_v17 = vrot.slane %v299_v15, %v305_v9  ;;  %946 = vmatpush3.bf16.msra.mxu1 %v972_v22  ;;  %vm1089_vm5 = vmand %vm375_vm3, %vm438_vm4  ;;  %v1110_v8 = vld [vmem:[%s1206_s3 + $0x2] ss:$0 sm:$0xff]  ;;  %v1124_v21 = vld [vmem:[%s1206_s3 + $0xa] ss:$0 sm:$0xff]  ;;  %vm746_vm6 = vcmask 588800   ;;  %vm818_vm7 = vcmask 189440  }
  0x14   : > { %947 = vmatprep.subr.bf16.mxu1 %v984_v2 }
  0x15   : > { %v314_v18 = vcombine.low %v306_v16, %v313_v17  ;;  %v505_v39 = vld [vmem:[#allocation2] sm:$0x7]  ;;  %v440_v47 = vld [vmem:[#allocation2 + $0x4] sm:$0x7] }
  0x16   : > { %v592_v45 = vld [vmem:[#allocation2] sm:$0x6]  ;;  %v511_v56 = vunpack.c.l.bf16 %v505_v39 }
  0x17   : > { %940 = vmatmul.mubr.msk.bf16.vlgmr.msra.gmra.mxu0 %vm324_vm2, %v314_v18  ;;  %948 = vmatpush3.bf16.msra.mxu1 %v973_v23  ;;  %v510_v40 = vld [vmem:[#allocation2 + $0x14] sm:$0x7]  ;;  %v443_v54 = vld [vmem:[#allocation2 + $0x8] sm:$0x7]  ;;  %v598_v58 = vunpack.c.l.bf16 %v592_v45  ;;  %v452_v1 = vld [vmem:[#allocation2] sm:$0x3] }
  0x18   : > { %949 = vmatprep.subr.bf16.mxu1 %v984_v2  ;;  %v597_v53 = vld [vmem:[#allocation2 + $0x14] sm:$0x6]  ;;  %v516_v57 = vunpack.c.l.bf16 %v510_v40  ;;  %v446_v62 = vld [vmem:[#allocation2 + $0xc] sm:$0x7]  ;;  %v449_v14 = vld [vmem:[#allocation2 + $0x10] sm:$0x7]  ;;  %v458_v20 = vunpack.c.l.bf16 %v452_v1 }
  0x19   : > { %v603_v3 = vunpack.c.l.bf16 %v597_v53  ;;  %v457_v15 = vld [vmem:[#allocation2 + $0x14] sm:$0x3]  ;;  %v1119_v18 = vmul.f32 %v1110_v8, %v598_v58  ;;  %v895_v23 = vld [vmem:[%s1206_s3] ss:$0 sm:$0xff] }
  0x1a   : > { %v1116_v17 = vmul.f32 %v1105_v7, %v516_v57 }
  0x1b   : > { %950 = vmatpush3.bf16.msra.mxu1 %v974_v24  ;;  %v1132_v24 = vmul.f32 %v1124_v21, %v603_v3 }
  0x1c   : > { %951 = vmatprep.subr.bf16.mxu1 %v984_v2  ;;  %v1098_v2 = vld [vmem:[%s1206_s3 + $0x1] ss:$0 sm:$0xff] }
  0x1d   : > { %v1113_v16 = vmul.f32 %v1098_v2, %v511_v56  ;;  %v670_v40 = vrot.slane %v1132_v24, 2  ;;  %v911_v24 = vld [vmem:[%s1209_s6] ss:$0 sm:$0xff] }
  0x1f   : > { %952 = vmatpush3.bf16.msra.mxu1 %v975_v25 }
  0xd7   : > { %v366_v27 = vpop.f32.mrf.mxu0 }
  0xd8   : > { %v367_v28 = vadd.f32 %v887_v26, %v366_v27  ;;  %v897_v27 = vld [vmem:[%s1206_s3 + $0x4] ss:$0 sm:$0xff] }
  0xd9   : > { %v941_v29 = vpop.f32.mrf.mxu0 }
  0xda   : > { %v373_v30 = vmax.f32 %v367_v28, 0.0  ;;  %v530_v28 = vrot.slane %v1113_v16, 1  ;;  %v583_v29 = vrot.slane %v1116_v17, 1 }
  0xdb   : > { %v369_v31 = vpop.f32.mrf.mxu0 }
  0xdc   : > { %v384_v32 = vcombine.high %v373_v30, %v373_v30  ;;  %v922_v33 = vpack.c.bf16 %v373_v30, %v373_v30  ;;  %v370_v34 = vadd.f32 %v887_v26, %v369_v31  ;;  %v463_v26 = vunpack.c.l.bf16 %v457_v15 }
  0xdd   : > { %v942_v35 = vpop.f32.mrf.mxu0  ;;  %v617_v30 = vrot.slane %v1119_v18, 2 }
  0xde   : > { %v923_v36 = vpack.c.bf16 %v384_v32, %v384_v32  ;;  %v405_v37 = vshrl.u32 %v922_v33, 16  ;;  %v374_v38 = vmax.f32 %v370_v34, 0.0  ;;  %v408_v42 = vshll.u32 %v922_v33, 16 }
  0xdf   : > { %v469_v32 = vmul.f32 %v895_v23, %v458_v20 }
  0xe0   : > { %v407_v41 = vrot.slane %v405_v37, 7  ;;  %v412_v43 = vshrl.u32 %v923_v36, 16  ;;  %v385_v44 = vcombine.high %v374_v38, %v374_v38  ;;  %v924_v48 = vpack.c.bf16 %v374_v38, %v374_v38  ;;  %v902_v38 = vld [vmem:[%s1206_s3 + $0x5] ss:$0 sm:$0xff] }
  0xe1   : > { %v415_v51 = vshll.u32 %v923_v36, 16  ;;  %v899_v36 = vld [vmem:[%s1206_s3 + $0x8] ss:$0 sm:$0xff] }
  0xe2   : > { %v410_v49 = vor.u32 %v408_v42, %v407_v41  ;;  %v414_v50 = vrot.slane %v412_v43, 7  ;;  %v925_v52 = vpack.c.bf16 %v385_v44, %v385_v44  ;;  %v419_v55 = vshrl.u32 %v924_v48, 16 }
  0xe3   : > { %v422_v0 = vshll.u32 %v924_v48, 16  ;;  %v500_v42 = vmul.f32 %v899_v36, %v463_v26 }
  0xe4   : > { %v417_v59 = vor.u32 %v415_v51, %v414_v50  ;;  %v441_v60 = vsel %vm1089_vm5, %v410_v49, %v440_v47  ;;  %v426_v61 = vshrl.u32 %v925_v52, 16  ;;  %v421_v63 = vrot.slane %v419_v55, 7 }
  0xe5   : > { %442 = vst [vmem:[#allocation2 + $0x4] sm:$0x7] %v441_v60  ;;  %v429_v6 = vshll.u32 %v925_v52, 16 }
  0xe6   : > { %v444_v4 = vsel %vm1089_vm5, %v417_v59, %v443_v54  ;;  %v428_v5 = vrot.slane %v426_v61, 7  ;;  %v424_v9 = vor.u32 %v422_v0, %v421_v63 }
  0xe7   : > { %445 = vst [vmem:[#allocation2 + $0x8] sm:$0x7] %v444_v4 }
  0xe8   : > { %v431_v19 = vor.u32 %v429_v6, %v428_v5  ;;  %v447_v22 = vsel %vm1089_vm5, %v424_v9, %v446_v62 }
  0xe9   : > { %448 = vst [vmem:[#allocation2 + $0xc] sm:$0x7] %v447_v22 }
  0xea   : > { %v450_v25 = vsel %vm1089_vm5, %v431_v19, %v449_v14 }
  0xeb   : > { %451 = vst [vmem:[#allocation2 + $0x10] sm:$0x7] %v450_v25 }
  0xec   : > { %v453_v31 = vld [vmem:[#allocation2 + $0x4] sm:$0x3] }
  0xed   : > { %v506_v33 = vld [vmem:[#allocation2 + $0x4] sm:$0x7]  ;;  %v459_v35 = vunpack.c.l.bf16 %v453_v31 }
  0xee   : > { %v1142_v34 = vld [vmem:[#allocation2 + $0x4] sm:$0x6]  ;;  %v512_v37 = vunpack.c.l.bf16 %v506_v33  ;;  %v454_v41 = vld [vmem:[#allocation2 + $0x8] sm:$0x3] }
  0xef   : > { %v599_v39 = vunpack.c.l.bf16 %v1142_v34  ;;  %v507_v43 = vld [vmem:[#allocation2 + $0x8] sm:$0x7]  ;;  %v460_v45 = vunpack.c.l.bf16 %v454_v41  ;;  %v470_v46 = vmul.f32 %v895_v23, %v459_v35  ;;  %v483_v47 = vmul.f32 %v897_v27, %v459_v35 }
  0xf0   : > { %v594_v44 = vld [vmem:[#allocation2 + $0x8] sm:$0x6]  ;;  %v513_v48 = vunpack.c.l.bf16 %v507_v43  ;;  %v523_v49 = vmul.f32 %v1098_v2, %v512_v37  ;;  %v547_v50 = vmul.f32 %v902_v38, %v512_v37  ;;  %v455_v53 = vld [vmem:[#allocation2 + $0xc] sm:$0x3] }
  0xf1   : > { %v1153_v51 = vunpack.c.l.bf16 %v594_v44  ;;  %v1158_v52 = vmul.f32 %v1110_v8, %v599_v39  ;;  %v471_v54 = vmul.f32 %v895_v23, %v460_v45  ;;  %v484_v55 = vmul.f32 %v897_v27, %v460_v45  ;;  %v508_v58 = vld [vmem:[#allocation2 + $0xc] sm:$0x7] }
  0xf2   : > { %v487_v56 = vadd.f32 %v483_v47, %v469_v32  ;;  %v497_v57 = vmul.f32 %v899_v36, %v460_v45  ;;  %v456_v59 = vld [vmem:[#allocation2 + $0x10] sm:$0x3]  ;;  %v461_v60 = vunpack.c.l.bf16 %v455_v53  ;;  %v514_v62 = vunpack.c.l.bf16 %v508_v58 }
  0xf3   : > { %v509_v61 = vld [vmem:[#allocation2 + $0x10] sm:$0x7]  ;;  %v524_v63 = vmul.f32 %v1098_v2, %v513_v48  ;;  %v531_v0 = vrot.slane %v523_v49, 1  ;;  %v462_v1 = vunpack.c.l.bf16 %v456_v59  ;;  %v488_v3 = vadd.f32 %v484_v55, %v470_v46  ;;  %v595_v46 = vld [vmem:[#allocation2 + $0xc] sm:$0x6] }
  0xf4   : > { %v501_v4 = vadd.f32 %v497_v57, %v487_v56  ;;  %v515_v5 = vunpack.c.l.bf16 %v509_v61  ;;  %v472_v6 = vmul.f32 %v895_v23, %v461_v60  ;;  %v485_v9 = vmul.f32 %v897_v27, %v461_v60  ;;  %v596_v47 = vld [vmem:[#allocation2 + $0x10] sm:$0x6] }
  0xf5   : > { %v498_v14 = vmul.f32 %v899_v36, %v461_v60  ;;  %v525_v15 = vmul.f32 %v1098_v2, %v514_v62  ;;  %v486_v16 = vmul.f32 %v897_v27, %v462_v1  ;;  %v499_v19 = vmul.f32 %v899_v36, %v462_v1 }
  0xf6   : > { %v532_v20 = vrot.slane %v524_v63, 1  ;;  %v538_v22 = vadd.f32 %v530_v28, %v501_v4  ;;  %v489_v25 = vadd.f32 %v485_v9, %v471_v54  ;;  %v548_v32 = vmul.f32 %v902_v38, %v513_v48 }
  0xf7   : > { %v502_v26 = vadd.f32 %v498_v14, %v488_v3  ;;  %v533_v31 = vrot.slane %v525_v15, 1  ;;  %v490_v33 = vadd.f32 %v486_v16, %v472_v6  ;;  %v549_v35 = vmul.f32 %v902_v38, %v514_v62 }
  0xf8   : > { %v550_v37 = vmul.f32 %v902_v38, %v515_v5  ;;  %v555_v41 = vrot.slane %v547_v50, 1  ;;  %v503_v43 = vadd.f32 %v499_v19, %v489_v25  ;;  %v556_v45 = vrot.slane %v548_v32, 1 }
  0xf9   : > { %v539_v44 = vadd.f32 %v531_v0, %v502_v26  ;;  %v572_v23 = vmul.f32 %v1105_v7, %v513_v48  ;;  %v504_v2 = vadd.f32 %v500_v42, %v490_v33  ;;  %v557_v27 = vrot.slane %v549_v35, 1  ;;  %v907_v48 = vld [vmem:[%s1206_s3 + $0x6] ss:$0 sm:$0xff] }
  0xfa   : > { %v558_v36 = vrot.slane %v550_v37, 1  ;;  %v563_v49 = vadd.f32 %v555_v41, %v538_v22  ;;  %v540_v28 = vadd.f32 %v532_v20, %v503_v43  ;;  %v573_v54 = vmul.f32 %v1105_v7, %v514_v62  ;;  %v910_v37 = vld [vmem:[%s1207_s4] ss:$0 sm:$0xff] }
  0xfb   : > { %v564_v53 = vadd.f32 %v556_v45, %v539_v44  ;;  %v574_v55 = vmul.f32 %v1105_v7, %v515_v5  ;;  %v541_v56 = vadd.f32 %v533_v31, %v504_v2  ;;  %v580_v38 = vrot.slane %v572_v23, 1 }
  0xfc   : > { %v601_v50 = vunpack.c.l.bf16 %v595_v46  ;;  %v602_v57 = vunpack.c.l.bf16 %v596_v47  ;;  %v565_v58 = vadd.f32 %v557_v27, %v540_v28  ;;  %v581_v59 = vrot.slane %v573_v54, 1 }
  0xfd   : > { %v582_v42 = vrot.slane %v574_v55, 1  ;;  %v611_v60 = vmul.f32 %v1110_v8, %v1153_v51  ;;  %v566_v61 = vadd.f32 %v558_v36, %v541_v56  ;;  %v588_v63 = vadd.f32 %v580_v38, %v563_v49 }
  0xfe   : > { %v612_v62 = vmul.f32 %v1110_v8, %v601_v50  ;;  %v618_v7 = vrot.slane %v1158_v52, 2  ;;  %v589_v0 = vadd.f32 %v581_v59, %v564_v53  ;;  %v634_v4 = vmul.f32 %v907_v48, %v599_v39 }
  0xff   : > { %v590_v1 = vadd.f32 %v582_v42, %v565_v58  ;;  %v619_v3 = vrot.slane %v611_v60, 2  ;;  %v591_v5 = vadd.f32 %v583_v29, %v566_v61  ;;  %v625_v9 = vadd.f32 %v617_v30, %v588_v63 }
 0x100   : > { %v620_v6 = vrot.slane %v612_v62, 2  ;;  %v635_v14 = vmul.f32 %v907_v48, %v1153_v51  ;;  %v626_v15 = vadd.f32 %v618_v7, %v589_v0  ;;  %v636_v8 = vmul.f32 %v907_v48, %v601_v50 }
 0x101   : > { %v627_v16 = vadd.f32 %v619_v3, %v590_v1  ;;  %v637_v19 = vmul.f32 %v907_v48, %v602_v57  ;;  %v642_v20 = vrot.slane %v634_v4, 2  ;;  %v659_v34 = vmul.f32 %v1124_v21, %v1153_v51 }
 0x102   : > { %v628_v52 = vadd.f32 %v620_v6, %v591_v5  ;;  %v643_v22 = vrot.slane %v635_v14, 2  ;;  %v644_v39 = vrot.slane %v636_v8, 2  ;;  %v660_v17 = vmul.f32 %v1124_v21, %v601_v50 }
 0x103   : > { %v645_v25 = vrot.slane %v637_v19, 2  ;;  %v661_v29 = vmul.f32 %v1124_v21, %v602_v57  ;;  %v650_v18 = vadd.f32 %v642_v20, %v625_v9  ;;  %v667_v26 = vrot.slane %v659_v34, 2 }
 0x104   : > { %v651_v30 = vadd.f32 %v643_v22, %v626_v15  ;;  %v652_v31 = vadd.f32 %v644_v39, %v627_v16  ;;  %v668_v33 = vrot.slane %v660_v17, 2  ;;  %v794_v54 = vunpack.c.l.bf16 %v1051_v10 }
 0x105   : > { %v653_v32 = vadd.f32 %v645_v25, %v628_v52  ;;  %v669_v35 = vrot.slane %v661_v29, 2  ;;  %v675_v41 = vadd.f32 %v667_v26, %v650_v18  ;;  %v795_v55 = vunpack.c.l.bf16 %v1053_v11 }
 0x106   : > { %v676_v43 = vadd.f32 %v668_v33, %v651_v30  ;;  %v796_v56 = vunpack.c.l.bf16 %v1055_v12  ;;  %v797_v38 = vunpack.c.l.bf16 %v1057_v13 }
 0x107   : > { %v677_v51 = vadd.f32 %v669_v35, %v652_v31  ;;  %v678_v44 = vadd.f32 %v670_v40, %v653_v32  ;;  %v686_v45 = vadd.f32 %v910_v37, %v675_v41  ;;  %v802_v40 = vcombine.low %v794_v54, %v795_v55 }
 0x108   : > { %v687_v23 = vadd.f32 %v910_v37, %v676_v43  ;;  %v803_v59 = vcombine.low %v796_v56, %v797_v38 }
 0x109   : > { %v688_v21 = vadd.f32 %v910_v37, %v677_v51  ;;  %v689_v46 = vadd.f32 %v910_v37, %v678_v44  ;;  %v690_v47 = vmax.f32 %v686_v45, 0.0 }
 0x10a   : > { %v691_v2 = vmax.f32 %v687_v23, 0.0 }
 0x10b   : > { %v692_v27 = vmax.f32 %v688_v21, 0.0  ;;  %v693_v36 = vmax.f32 %v689_v46, 0.0 }
 0x10c   : > { %v698_v49 = vcombine.low %v690_v47, %v691_v2 }
 0x10d   : > { %v699_v28 = vcombine.low %v692_v27, %v693_v36 }
 0x10f   : > { %v702_v53 = vpack.c.bf16 %v699_v28, %v698_v49 }
 0x111   : > { %954 = vmatmul.mubr.msk.bf16.vlgmr.msra.gmra.mxu1 %vm746_vm6, %v702_v53 }
 0x1d1   : > { %v787_v50 = vpop.f32.mrf.mxu1 }
 0x1d2   : > { %v788_v57 = vadd.f32 %v911_v24, %v787_v50 }
 0x1d3   : > { %v955_v48 = vpop.f32.mrf.mxu1 }
 0x1d4   : > { %v806_v58 = vadd.f32 %v802_v40, %v788_v57 }
 0x1d5   : > { %v790_v10 = vpop.f32.mrf.mxu1 }
 0x1d6   : > { %v810_v11 = vcombine.high %v806_v58, %v806_v58  ;;  %v814_v42 = vpack.c.bf16 %v806_v58, %v806_v58  ;;  %v791_v60 = vadd.f32 %v911_v24, %v790_v10 }
 0x1d7   : > { %v956_v61 = vpop.f32.mrf.mxu1 }
 0x1d8   : > { %v815_v63 = vpack.c.bf16 %v810_v11, %v810_v11  ;;  %819 = vst.msk [vmem:[%s278_s29] sm:$0x3] %vm818_vm7, %v814_v42  ;;  %v807_v12 = vadd.f32 %v803_v59, %v791_v60 }
 0x1da   : > { %820 = vst.msk [vmem:[%s278_s29 + $0x2] sm:$0x3] %vm818_vm7, %v815_v63  ;;  %v811_v13 = vcombine.high %v807_v12, %v807_v12  ;;  %v816_v62 = vpack.c.bf16 %v807_v12, %v807_v12 }
 0x1dc   : > { %v817_v7 = vpack.c.bf16 %v811_v13, %v811_v13  ;;  %821 = vst.msk [vmem:[%s278_s29 + $0x4] sm:$0x3] %vm818_vm7, %v816_v62 }
 0x1de   : > { %822 = vst.msk [vmem:[%s278_s29 + $0x6] sm:$0x3] %vm818_vm7, %v817_v7 }
 0x1df PF: > { %s17_s24 = sadd.s32 1, %s982_s24  }
 0x1e0   : > { %p14_p4 = scmp.ge.s32.totalorder %s17_s24, 4  }
 0x1e2   :  { %16 = sbr.rel (!%p14_p4) target bundleno = 1 (0x1), region = 81 }

// kernel: mobilenet_v3_forward.13
= control target key start
LH: loop header
LB: loop body
LE: loop exit
PB: predicated region body
PF: predicated region fallthrough
CT: control target
= control target key end

     0   :  { %s913_s27 = smov 0   ;;  %s1017_s0 = inlined_call_operand.vmem [shape: bf16[2,5,5,64], index: 0, kind: input, shape index: {}]   ;;  %s1018_s1 = inlined_call_operand.vmem [shape: bf16[2,5,5,64], index: 1, kind: input, shape index: {}]   ;;  %s1019_s2 = inlined_call_operand.vmem [shape: bf16[2,5,5,64], index: 2, kind: input, shape index: {}]   ;;  %s1020_s3 = inlined_call_operand.vmem [shape: bf16[2,5,5,64], index: 3, kind: input, shape index: {}]   ;;  %s1021_s4 = inlined_call_operand.vmem [shape: f32[3,3,64], index: 4, kind: input, shape index: {}]   ;;  %s1022_s5 = inlined_call_operand.vmem [shape: f32[1,64], index: 5, kind: input, shape index: {}]   ;;  %s1023_s6 = inlined_call_operand.vmem [shape: bf16[64,24], index: 6, kind: input, shape index: {}]   ;;  %s1024_s7 = inlined_call_operand.vmem [shape: f32[1,24], index: 7, kind: input, shape index: {}]   ;;  %s1025_s8 = inlined_call_operand.vmem [shape: bf16[2,4,4,24], index: 8, kind: output, shape index: {}]  }
   0x1 LB: > { %s790_s28 = sadd.s32 4294967295, %s864_s27   ;;  %p794_p0 = scmp.ge.s32.totalorder %s864_s27, 1  ;;  %s864_s27 = sphi %s913_s27, %s18_s27  }
   0x2   : > { %p292_p1 = scmp.lt.s32.totalorder %s864_s27, 3 }
   0x4   : > { %p293_p2 = pnand %p794_p0, %p292_p1 }
   0x5   : > { %p341_p3 = scmp.lt.s32.totalorder (!%p293_p2), %s790_s28, 1 }
   0x6   : > { %296 = sbr.rel (%p293_p2) target bundleno = 258 (0x102), region = 52 }
   0xb   : > { %v854_v0 = vld [vmem:[%s1023_s6 + $0x18] sm:$0xff]   ;;  %v866_v1 = vmov 0.0   ;;  %v855_v2 = vld [vmem:[%s1023_s6 + $0x10] sm:$0xff]   ;;  %vm867_vm0 = vmmov 0   ;;  %s1027_s28 = smov (!%p341_p3, %s790_s28), 1  ;;  %v856_v3 = vld [vmem:[%s1023_s6 + $0x8] sm:$0xff]  }
   0xc   : > { %831 = vmatprep.subr.bf16.mxu0 %v866_v1  ;;  %839 = vmatprep.mubr.msk.bf16.mxu0 %vm867_vm0, %v866_v1  ;;  %s843_s13 = smul.u32 20, %s1027_s28  ;;  %v857_v4 = vld [vmem:[%s1023_s6] sm:$0xff]   ;;  %v805_v10 = vld [vmem:[%s1021_s4 + $0x8] ss:$0 sm:$0xff]  ;;  %vm639_vm1 = vcmask 523264   ;;  %vm694_vm2 = vcmask 189440  }
   0xd   : > { %832 = vmatpush3.bf16.msra.mxu0 %v854_v0  ;;  %v801_v5 = vld [vmem:[%s1021_s4] ss:$0 sm:$0xff]  ;;  %v803_v6 = vld [vmem:[%s1021_s4 + $0x4] ss:$0 sm:$0xff]  ;;  %v806_v56 = vld [vmem:[%s1021_s4 + $0x1] ss:$0 sm:$0xff] }
   0xe   : > { %833 = vmatprep.subr.bf16.mxu0 %v866_v1  ;;  %s939_s18 = scalar_lea.vmem %s1017_s0, %s843_s13  ;;  %s950_s25 = scalar_lea.vmem %s1019_s2, %s843_s13  ;;  %v808_v61 = vld [vmem:[%s1021_s4 + $0x5] ss:$0 sm:$0xff] }
   0xf   : > { %v367_v7 = vld [vmem:[%s939_s18] sm:$0x3]  ;;  %v368_v8 = vld [vmem:[%s939_s18 + $0x4] sm:$0x3]  ;;  %v369_v9 = vld [vmem:[%s939_s18 + $0x8] sm:$0x3]  ;;  %s961_s10 = scalar_lea.vmem %s1018_s1, %s843_s13  ;;  %s360_s14 = scalar_lea.vmem %s1020_s3, %s843_s13 }
  0x10   : > { %v370_v11 = vld [vmem:[%s939_s18 + $0xc] sm:$0x3]  ;;  %v371_v12 = vld [vmem:[%s939_s18 + $0x10] sm:$0x3]  ;;  %v372_v13 = vunpack.c.l.bf16 %v367_v7  ;;  %v373_v14 = vunpack.c.l.bf16 %v368_v8  ;;  %v374_v15 = vunpack.c.l.bf16 %v369_v9  ;;  %v377_v16 = vld [vmem:[%s950_s25] sm:$0x3] }
  0x11   : > { %834 = vmatpush3.bf16.msra.mxu0 %v855_v2  ;;  %v375_v17 = vunpack.c.l.bf16 %v370_v11  ;;  %v376_v18 = vunpack.c.l.bf16 %v371_v12  ;;  %v378_v19 = vld [vmem:[%s950_s25 + $0x4] sm:$0x3]  ;;  %v379_v20 = vld [vmem:[%s950_s25 + $0x8] sm:$0x3]  ;;  %v380_v21 = vld [vmem:[%s950_s25 + $0xc] sm:$0x3]  ;;  %v381_v22 = vunpack.c.l.bf16 %v377_v16 }
  0x12   : > { %835 = vmatprep.subr.bf16.mxu0 %v866_v1  ;;  %v382_v23 = vunpack.c.l.bf16 %v378_v19  ;;  %v383_v24 = vunpack.c.l.bf16 %v379_v20  ;;  %v384_v25 = vunpack.c.l.bf16 %v380_v21  ;;  %v390_v26 = vmul.f32 %v801_v5, %v372_v13  ;;  %v426_v31 = vld [vmem:[%s961_s10] sm:$0x3]  ;;  %v427_v36 = vld [vmem:[%s961_s10 + $0x4] sm:$0x3]  ;;  %v428_v37 = vld [vmem:[%s961_s10 + $0x8] sm:$0x3] }
  0x13   : > { %v391_v27 = vmul.f32 %v801_v5, %v373_v14  ;;  %v392_v28 = vmul.f32 %v801_v5, %v374_v15  ;;  %v393_v29 = vmul.f32 %v801_v5, %v375_v17  ;;  %v404_v30 = vmul.f32 %v803_v6, %v381_v22  ;;  %v429_v38 = vld [vmem:[%s961_s10 + $0xc] sm:$0x3]  ;;  %v430_v43 = vld [vmem:[%s961_s10 + $0x10] sm:$0x3]  ;;  %v436_v44 = vld [vmem:[%s360_s14] sm:$0x3] }
  0x14   : > { %v405_v32 = vmul.f32 %v803_v6, %v382_v23  ;;  %v406_v33 = vmul.f32 %v803_v6, %v383_v24  ;;  %v407_v34 = vmul.f32 %v803_v6, %v384_v25  ;;  %v418_v35 = vmul.f32 %v805_v10, %v373_v14  ;;  %v437_v49 = vld [vmem:[%s360_s14 + $0x4] sm:$0x3]  ;;  %v438_v50 = vld [vmem:[%s360_s14 + $0x8] sm:$0x3]  ;;  %v439_v51 = vld [vmem:[%s360_s14 + $0xc] sm:$0x3] }
  0x15   : > { %836 = vmatpush3.bf16.msra.mxu0 %v856_v3  ;;  %v408_v39 = vadd.f32 %v404_v30, %v390_v26  ;;  %v419_v40 = vmul.f32 %v805_v10, %v374_v15  ;;  %v420_v41 = vmul.f32 %v805_v10, %v375_v17  ;;  %v421_v42 = vmul.f32 %v805_v10, %v376_v18  ;;  %v810_v6 = vld [vmem:[%s1021_s4 + $0x9] ss:$0 sm:$0xff]  ;;  %v483_v11 = vld [vmem:[%s939_s18] sm:$0x7]  ;;  %v484_v16 = vld [vmem:[%s939_s18 + $0x4] sm:$0x7] }
  0x16   : > { %837 = vmatprep.subr.bf16.mxu0 %v866_v1  ;;  %v409_v45 = vadd.f32 %v405_v32, %v391_v27  ;;  %v410_v46 = vadd.f32 %v406_v33, %v392_v28  ;;  %v411_v47 = vadd.f32 %v407_v34, %v393_v29  ;;  %v431_v48 = vunpack.c.l.bf16 %v426_v31  ;;  %v485_v17 = vld [vmem:[%s939_s18 + $0x8] sm:$0x7]  ;;  %v486_v18 = vld [vmem:[%s939_s18 + $0xc] sm:$0x7]  ;;  %v487_v23 = vld [vmem:[%s939_s18 + $0x10] sm:$0x7] }
  0x17   : > { %v422_v52 = vadd.f32 %v418_v35, %v408_v39  ;;  %v432_v53 = vunpack.c.l.bf16 %v427_v36  ;;  %v433_v54 = vunpack.c.l.bf16 %v428_v37  ;;  %v434_v55 = vunpack.c.l.bf16 %v429_v38  ;;  %v493_v28 = vld [vmem:[%s950_s25] sm:$0x7]  ;;  %v494_v29 = vld [vmem:[%s950_s25 + $0x4] sm:$0x7]  ;;  %v495_v30 = vld [vmem:[%s950_s25 + $0x8] sm:$0x7] }
  0x18   : > { %v423_v57 = vadd.f32 %v419_v40, %v409_v45  ;;  %v424_v58 = vadd.f32 %v420_v41, %v410_v46  ;;  %v425_v59 = vadd.f32 %v421_v42, %v411_v47  ;;  %v435_v60 = vunpack.c.l.bf16 %v430_v43  ;;  %v496_v35 = vld [vmem:[%s950_s25 + $0xc] sm:$0x7]  ;;  %v811_v36 = vld [vmem:[%s1021_s4 + $0x2] ss:$0 sm:$0xff]  ;;  %v813_v41 = vld [vmem:[%s1021_s4 + $0x6] ss:$0 sm:$0xff] }
  0x19   : > { %838 = vmatpush3.bf16.msra.mxu0 %v857_v4  ;;  %v440_v62 = vunpack.c.l.bf16 %v436_v44  ;;  %v441_v63 = vunpack.c.l.bf16 %v437_v49  ;;  %v442_v0 = vunpack.c.l.bf16 %v438_v50  ;;  %v443_v1 = vunpack.c.l.bf16 %v439_v51  ;;  %s825_s10 = sshll.u32 %s1027_s28, 3 }
  0x1a   : > { %v449_v2 = vmul.f32 %v806_v56, %v431_v48  ;;  %v450_v3 = vmul.f32 %v806_v56, %v432_v53  ;;  %v451_v4 = vmul.f32 %v806_v56, %v433_v54  ;;  %v452_v5 = vmul.f32 %v806_v56, %v434_v55  ;;  %s365_s14 = scalar_lea.vmem %s1025_s8, %s825_s10 }
  0x1b   : > { %v462_v7 = vmul.f32 %v808_v61, %v440_v62  ;;  %v463_v8 = vmul.f32 %v808_v61, %v441_v63  ;;  %v464_v9 = vmul.f32 %v808_v61, %v442_v0  ;;  %v465_v10 = vmul.f32 %v808_v61, %v443_v1 }
  0x1c   : > { %v453_v12 = vadd.f32 %v449_v2, %v422_v52  ;;  %v454_v13 = vadd.f32 %v450_v3, %v423_v57  ;;  %v455_v14 = vadd.f32 %v451_v4, %v424_v58  ;;  %v456_v15 = vadd.f32 %v452_v5, %v425_v59  ;;  %v815_v58 = vld [vmem:[%s1021_s4 + $0xa] ss:$0 sm:$0xff] }
  0x1d   : > { %v475_v19 = vmul.f32 %v810_v6, %v432_v53  ;;  %v476_v20 = vmul.f32 %v810_v6, %v433_v54  ;;  %v477_v21 = vmul.f32 %v810_v6, %v434_v55  ;;  %v478_v22 = vmul.f32 %v810_v6, %v435_v60 }
  0x1e   : > { %v466_v24 = vadd.f32 %v462_v7, %v453_v12  ;;  %v467_v25 = vadd.f32 %v463_v8, %v454_v13  ;;  %v468_v26 = vadd.f32 %v464_v9, %v455_v14  ;;  %v469_v27 = vadd.f32 %v465_v10, %v456_v15 }
  0x1f   : > { %v488_v31 = vunpack.c.l.bf16 %v483_v11  ;;  %v489_v32 = vunpack.c.l.bf16 %v484_v16  ;;  %v490_v33 = vunpack.c.l.bf16 %v485_v17  ;;  %v491_v34 = vunpack.c.l.bf16 %v486_v18  ;;  %v816_v16 = vld [vmem:[%s1022_s5] ss:$0 sm:$0xff] }
  0x20   : > { %v479_v37 = vadd.f32 %v475_v19, %v466_v24  ;;  %v480_v38 = vadd.f32 %v476_v20, %v467_v25  ;;  %v481_v39 = vadd.f32 %v477_v21, %v468_v26  ;;  %v482_v40 = vadd.f32 %v478_v22, %v469_v27 }
  0x21   : > { %v492_v42 = vunpack.c.l.bf16 %v487_v23  ;;  %v497_v43 = vunpack.c.l.bf16 %v493_v28  ;;  %v498_v44 = vunpack.c.l.bf16 %v494_v29  ;;  %v499_v45 = vunpack.c.l.bf16 %v495_v30 }
  0x22   : > { %v500_v46 = vunpack.c.l.bf16 %v496_v35  ;;  %v506_v47 = vmul.f32 %v811_v36, %v488_v31  ;;  %v507_v48 = vmul.f32 %v811_v36, %v489_v32  ;;  %v508_v49 = vmul.f32 %v811_v36, %v490_v33 }
  0x23   : > { %v509_v50 = vmul.f32 %v811_v36, %v491_v34  ;;  %v531_v51 = vmul.f32 %v813_v41, %v497_v43  ;;  %v532_v52 = vmul.f32 %v813_v41, %v498_v44  ;;  %v533_v53 = vmul.f32 %v813_v41, %v499_v45 }
  0x24   : > { %v514_v54 = vrot.slane %v506_v47, 1  ;;  %v515_v55 = vrot.slane %v507_v48, 1  ;;  %v516_v56 = vrot.slane %v508_v49, 1  ;;  %v534_v57 = vmul.f32 %v813_v41, %v500_v46 }
  0x25   : > { %v517_v59 = vrot.slane %v509_v50, 1  ;;  %v539_v60 = vrot.slane %v531_v51, 1  ;;  %v540_v61 = vrot.slane %v532_v52, 1  ;;  %v541_v62 = vrot.slane %v533_v53, 1 }
  0x26   : > { %v522_v63 = vadd.f32 %v514_v54, %v479_v37  ;;  %v523_v0 = vadd.f32 %v515_v55, %v480_v38  ;;  %v524_v1 = vadd.f32 %v516_v56, %v481_v39  ;;  %v542_v2 = vrot.slane %v534_v57, 1 }
  0x27   : > { %v525_v3 = vadd.f32 %v517_v59, %v482_v40  ;;  %v556_v4 = vmul.f32 %v815_v58, %v489_v32  ;;  %v557_v5 = vmul.f32 %v815_v58, %v490_v33  ;;  %v558_v6 = vmul.f32 %v815_v58, %v491_v34  ;;  %v817_v32 = vld [vmem:[%s1024_s7] ss:$0 sm:$0xff] }
  0x28   : > { %v547_v7 = vadd.f32 %v539_v60, %v522_v63  ;;  %v548_v8 = vadd.f32 %v540_v61, %v523_v0  ;;  %v549_v9 = vadd.f32 %v541_v62, %v524_v1  ;;  %v559_v10 = vmul.f32 %v815_v58, %v492_v42 }
  0x29   : > { %v550_v11 = vadd.f32 %v542_v2, %v525_v3  ;;  %v564_v12 = vrot.slane %v556_v4, 1  ;;  %v565_v13 = vrot.slane %v557_v5, 1  ;;  %v566_v14 = vrot.slane %v558_v6, 1 }
  0x2a   : > { %v567_v15 = vrot.slane %v559_v10, 1 }
  0x2b   : > { %v572_v17 = vadd.f32 %v564_v12, %v547_v7  ;;  %v573_v18 = vadd.f32 %v565_v13, %v548_v8  ;;  %v574_v19 = vadd.f32 %v566_v14, %v549_v9 }
  0x2c   : > { %v575_v20 = vadd.f32 %v567_v15, %v550_v11 }
  0x2d   : > { %v583_v21 = vadd.f32 %v816_v16, %v572_v17  ;;  %v584_v22 = vadd.f32 %v816_v16, %v573_v18  ;;  %v585_v23 = vadd.f32 %v816_v16, %v574_v19 }
  0x2e   : > { %v586_v24 = vadd.f32 %v816_v16, %v575_v20 }
  0x2f   : > { %v587_v25 = vmax.f32 %v583_v21, 0.0  ;;  %v588_v26 = vmax.f32 %v584_v22, 0.0  ;;  %v589_v27 = vmax.f32 %v585_v23, 0.0 }
  0x30   : > { %v590_v28 = vmax.f32 %v586_v24, 0.0 }
  0x31   : > { %v595_v29 = vcombine.low %v587_v25, %v588_v26 }
  0x32   : > { %v596_v30 = vcombine.low %v589_v27, %v590_v28 }
  0x34   : > { %v599_v31 = vpack.c.bf16 %v596_v30, %v595_v29 }
  0x36   : > { %840 = vmatmul.mubr.msk.bf16.vlgmr.msra.gmra.mxu0 %vm639_vm1, %v599_v31 }
  0xf6   : > { %v677_v33 = vpop.f32.mrf.mxu0 }
  0xf7   : > { %v678_v34 = vadd.f32 %v817_v32, %v677_v33 }
  0xf8   : > { %v841_v35 = vpop.f32.mrf.mxu0 }
  0xf9   : > { %v686_v36 = vcombine.high %v678_v34, %v678_v34  ;;  %v690_v37 = vpack.c.bf16 %v678_v34, %v678_v34 }
  0xfa   : > { %v680_v38 = vpop.f32.mrf.mxu0 }
  0xfb   : > { %v691_v39 = vpack.c.bf16 %v686_v36, %v686_v36  ;;  %695 = vst.msk [vmem:[%s365_s14] sm:$0x3] %vm694_vm2, %v690_v37  ;;  %v681_v40 = vadd.f32 %v817_v32, %v680_v38 }
  0xfc   : > { %v842_v41 = vpop.f32.mrf.mxu0 }
  0xfd   : > { %696 = vst.msk [vmem:[%s365_s14 + $0x2] sm:$0x3] %vm694_vm2, %v691_v39  ;;  %v687_v42 = vcombine.high %v681_v40, %v681_v40  ;;  %v692_v43 = vpack.c.bf16 %v681_v40, %v681_v40 }
  0xff   : > { %v693_v44 = vpack.c.bf16 %v687_v42, %v687_v42  ;;  %697 = vst.msk [vmem:[%s365_s14 + $0x4] sm:$0x3] %vm694_vm2, %v692_v43 }
 0x101   : > { %698 = vst.msk [vmem:[%s365_s14 + $0x6] sm:$0x3] %vm694_vm2, %v693_v44 }
 0x102 PF: > { %s18_s27 = sadd.s32 1, %s864_s27  }
 0x103   : > { %p15_p4 = scmp.ge.s32.totalorder %s18_s27, 4  }
 0x105   :  { %17 = sbr.rel (!%p15_p4) target bundleno = 1 (0x1), region = 93 }

// kernel: mobilenet_v3_forward.18
= control target key start
LH: loop header
LB: loop body
LE: loop exit
PB: predicated region body
PF: predicated region fallthrough
CT: control target
= control target key end

     0   :  { %s262_s6 = smov 0   ;;  %s283_s0 = inlined_call_operand.vmem [shape: bf16[2,4,240], index: 0, kind: input, shape index: {}]   ;;  %s284_s1 = inlined_call_operand.vmem [shape: bf16[2,1,240], index: 1, kind: output, shape index: {}]  }
   0x1 LB: > { %s222_s7 = sadd.s32 4294967295, %s249_s6   ;;  %p226_p0 = scmp.ge.s32.totalorder %s249_s6, 1  ;;  %s249_s6 = sphi %s262_s6, %s11_s6  }
   0x2   : > { %p87_p1 = scmp.lt.s32.totalorder %s249_s6, 3 }
   0x4   : > { %p88_p2 = pnand %p226_p0, %p87_p1 }
   0x5   : > { %p106_p3 = scmp.lt.s32.totalorder (!%p88_p2), %s222_s7, 1 }
   0x6   : > { %91 = sbr.rel (%p88_p2) target bundleno = 42 (0x2a), region = 24 }
   0xb   : > { %s286_s7 = smov (!%p106_p3, %s222_s7), 1  ;;  %vm120_vm0 = vcmask 1043456   ;;  %vm128_vm1 = vcmask 912384   ;;  %v251_v12 = vmov 1966171168   ;;  %v147_v14 = vlaneseq }
   0xc   : > { %s233_s8 = sshll.u32 %s286_s7, 2  ;;  %v145_v13 = vunpack.c.l.s4 %v251_v12  ;;  %vm159_vm2 = vcmask 1040384   ;;  %vm160_vm3 = vsmask.f32 256  ;;  %s229_s12 = sshll.u32 %s286_s7, 1  ;;  %vm162_vm4 = vcmask 910337  }
   0xd   : > { %s110_s11 = scalar_lea.vmem %s283_s0, %s233_s8  ;;  %v148_v20 = vshrl.u32 %v147_v14, 7  ;;  %vm163_vm5 = vsmask.f32 1280  ;;  %vm161_vm6 = vmand %vm159_vm2, %vm160_vm3  ;;  %s114_s15 = scalar_lea.vmem %s284_s1, %s229_s12 }
   0xe   : > { %v115_v0 = vld [vmem:[%s110_s11] sm:$0xf]  ;;  %v146_v19 = vunpack.c.0.s8 %v145_v13  ;;  %vm164_vm7 = vmand %vm162_vm4, %vm163_vm5 }
   0xf   : > { %v116_v1 = vunpack.c.l.bf16 %v115_v0  ;;  %vm165_vm8 = vmor %vm164_vm7, %vm161_vm6  ;;  %v166_v27 = vld [vmem:[%s114_s15] sm:$0x3] }
  0x10   : > { %v149_v24 = vsub.s32 %v146_v19, %v148_v20 }
  0x11   : > { %v118_v2 = vcombine.high %v116_v1, %v116_v1  ;;  %v121_v3 = vsel %vm120_vm0, %v116_v1, 0.0 }
  0x12   : > { %v122_v4 = vrot.slane %v121_v3, 4 }
  0x13   : > { %v129_v5 = vsel %vm128_vm1, %v118_v2, 0.0 }
  0x14   : > { %v123_v6 = vadd.f32 %v122_v4, %v121_v3  ;;  %v130_v7 = vrot.slane %v129_v5, 4 }
  0x16   : > { %v124_v8 = vrot.slane %v123_v6, 2  ;;  %v131_v9 = vadd.f32 %v130_v7, %v129_v5 }
  0x18   : > { %v125_v10 = vadd.f32 %v124_v8, %v123_v6  ;;  %v132_v11 = vrot.slane %v131_v9, 2 }
  0x1a   : > { %v126_v15 = vrot.slane %v125_v10, 1  ;;  %v133_v16 = vadd.f32 %v132_v11, %v131_v9 }
  0x1c   : > { %v127_v17 = vadd.f32 %v126_v15, %v125_v10  ;;  %v134_v18 = vrot.slane %v133_v16, 1 }
  0x1e   : > { %v135_v21 = vadd.f32 %v134_v18, %v133_v16  ;;  %v137_v22 = vmul.f32 0.25, %v127_v17 }
  0x20   : > { %v138_v23 = vmul.f32 0.25, %v135_v21 }
  0x22   : > { %v230_v25 = vpack.c.bf16 %v138_v23, %v137_v22 }
  0x24   : > { %v150_v26 = vrot.slane %v230_v25, %v149_v24 }
  0x26   : > { %v157_v28 = vrot.slane %v150_v26, %v149_v24 }
  0x28   : > { %v167_v29 = vsel %vm165_vm8, %v157_v28, %v166_v27 }
  0x29   : > { %168 = vst [vmem:[%s114_s15] sm:$0x3] %v167_v29 }
  0x2a PF: > { %s11_s6 = sadd.s32 1, %s249_s6  }
  0x2b   : > { %p8_p4 = scmp.ge.s32.totalorder %s11_s6, 4  }
  0x2d   :  { %10 = sbr.rel (!%p8_p4) target bundleno = 1 (0x1), region = 54 }

// kernel: mobilenet_v3_forward.17
= control target key start
LH: loop header
LB: loop body
LE: loop exit
PB: predicated region body
PF: predicated region fallthrough
CT: control target
= control target key end

     0   :  { %vm62_vm0 = vcmask 1043456   ;;  %v154_v1 = vmov 0   ;;  %vm58_vm1 = vcmask 326656   ;;  %v23_v10 = vlaneseq  ;;  %s202_s1 = inlined_call_operand.vmem [shape: bf16[40,240], index: 1, kind: input, shape index: {}]   ;;  %s203_s0 = inlined_call_operand.vmem [shape: bf16[8,40], index: 0, kind: input, shape index: {}]   ;;  %s204_s2 = inlined_call_operand.vmem [shape: f32[1,240], index: 2, kind: input, shape index: {}]   ;;  %s205_s3 = inlined_call_operand.vmem [shape: bf16[8,240], index: 3, kind: output, shape index: {}]  }
   0x1   :  { %v20_v0 = vld [vmem:[%s202_s1 + $0x20] sm:$0xff]  ;;  %101 = vmatprep.mubr.bf16.mxu0 %v154_v1  ;;  %v148_v4 = vld [vmem:[%s202_s1 + $0x14] ss:$8 sps:$4 sm:$0xff]   ;;  %v150_v6 = vld [vmem:[%s202_s1 + $0x10] ss:$8 sps:$4 sm:$0xff]   ;;  %vm128_vm2 = vcmask 916484  }
   0x2   :  { %v140_v2 = vcombine.high %v20_v0, %v20_v0  ;;  %v139_v3 = vcombine.low %v20_v0, %v20_v0  ;;  %v151_v7 = vld [vmem:[%s202_s1 + $0x4] ss:$8 sps:$4 sm:$0xff]   ;;  %v153_v8 = vld [vmem:[%s202_s1] ss:$8 sps:$4 sm:$0xff]   ;;  %v24_v11 = vshrl.u32 %v23_v10, 7  ;;  %vm129_vm3 = vmor %vm128_vm2, %vm62_vm0 }
   0x3   :  { %v15_v9 = vld [vmem:[%s203_s0] sm:$0xf] }
   0x4   :  { %141 = vmatprep.subr.msk.bf16.mxu0 %vm62_vm0, %v140_v2  ;;  %v64_v5 = vsel %vm62_vm0, %v139_v3, 0  ;;  %v25_v12 = vsub.s32 0, %v24_v11  ;;  %v21_v13 = vld [vmem:[%s204_s2] sm:$0x3]  ;;  %v29_v14 = vsub.s32 1, %v24_v11 }
   0x5   :  { %80 = vmatpush1.bf16.msra.mxu0 %v64_v5 }
   0x6   :  { %81 = vmatprep.subr.bf16.mxu0 %v148_v4  ;;  %v26_v15 = vrot.slane %v21_v13, %v25_v12  ;;  %v30_v16 = vrot.slane %v21_v13, %v29_v14 }
   0x9   :  { %82 = vmatpush1.bf16.msra.mxu0 %v150_v6 }
   0xa   :  { %83 = vmatprep.subr.bf16.mxu0 %v151_v7 }
   0xd   :  { %84 = vmatpush1.bf16.msra.mxu0 %v153_v8 }
  0x10   :  { %142 = vmatmul.mubr.msk.bf16.vlgmr.msra.gmra.mxu0 %vm58_vm1, %v15_v9 }
  0xd0   :  { %v103_v17 = vpop.f32.mrf.mxu0 }
  0xd1   :  { %v104_v18 = vadd.f32 %v103_v17, %v26_v15 }
  0xd2   :  { %v105_v19 = vpop.f32.mrf.mxu0 }
  0xd3   :  { %v110_v20 = vadd.f32 3.0, %v104_v18  ;;  %v106_v21 = vadd.f32 %v105_v19, %v30_v16 }
  0xd4   :  { %v107_v22 = vpop.f32.mrf.mxu0 }
  0xd5   :  { %v112_v23 = vmax.f32 %v110_v20, 0.0  ;;  %v111_v24 = vadd.f32 3.0, %v106_v21 }
  0xd6   :  { %v108_v25 = vpop.f32.mrf.mxu0 }
  0xd7   :  { %v114_v26 = vmin.f32 %v112_v23, 6.0  ;;  %v113_v27 = vmax.f32 %v111_v24, 0.0 }
  0xd9   :  { %v116_v28 = vmul.f32 %v114_v26, %v104_v18  ;;  %v115_v29 = vmin.f32 %v113_v27, 6.0 }
  0xdb   :  { %v117_v30 = vmul.f32 %v115_v29, %v106_v21  ;;  %v118_v31 = vmul.f32 0.16666667, %v116_v28 }
  0xdd   :  { %v119_v32 = vmul.f32 0.16666667, %v117_v30 }
  0xdf   :  { %v144_v33 = vpack.c.bf16 %v119_v32, %v118_v31 }
  0xe1   :  { %130 = vst.msk [vmem:[%s205_s3] sm:$0xff] %vm129_vm3, %v144_v33 }

// kernel: mobilenet_v3_forward.19
= control target key start
LH: loop header
LB: loop body
LE: loop exit
PB: predicated region body
PF: predicated region fallthrough
CT: control target
= control target key end

     0   :  { %v457_v1 = vmov 0   ;;  %v458_v3 = vmov 0.0   ;;  %v72_v6 = vlaneseq  ;;  %v459_v9 = vmov 1966171168   ;;  %s597_s0 = inlined_call_operand.vmem [shape: bf16[2,240], index: 0, kind: input, shape index: {}]   ;;  %s598_s1 = inlined_call_operand.vmem [shape: bf16[240,128], index: 1, kind: input, shape index: {}]   ;;  %s599_s2 = inlined_call_operand.vmem [shape: f32[1,128], index: 2, kind: input, shape index: {}]   ;;  %s600_s3 = inlined_call_operand.vmem [shape: bf16[128,5], index: 3, kind: input, shape index: {}]   ;;  %s601_s4 = inlined_call_operand.vmem [shape: f32[1,5], index: 4, kind: input, shape index: {}]   ;;  %s602_s5 = inlined_call_operand.hbm [shape: f32[2,5], index: 5, kind: output, shape index: {}]  }
   0x1   :  { %v412_v0 = vld [vmem:[%s598_s1 + $0x38] sm:$0xff]   ;;  %178 = vmatprep.subr.bf16.mxu0 %v457_v1  ;;  %v413_v2 = vld [vmem:[%s598_s1 + $0x30] sm:$0xff]   ;;  %387 = vmatprep.subr.bf16.mxu1 %v458_v3  ;;  %v414_v4 = vld [vmem:[%s598_s1 + $0x28] sm:$0xff]   ;;  %v70_v10 = vunpack.c.l.s4 %v459_v9  ;;  %vm174_vm0 = vcmask 916480  }
   0x2   :  { %179 = vmatpush1.bf16.msra.mxu0 %v412_v0  ;;  %v415_v5 = vld [vmem:[%s598_s1 + $0x20] sm:$0xff]   ;;  %v416_v7 = vld [vmem:[%s598_s1 + $0x18] sm:$0xff]   ;;  %v73_v11 = vshrl.u32 %v72_v6, 7  ;;  %v417_v13 = vld [vmem:[%s598_s1 + $0x10] sm:$0xff]  }
   0x3   :  { %180 = vmatprep.subr.bf16.mxu0 %v457_v1  ;;  %v352_v8 = vld.sshfl [vmem:[%s597_s0] sm:$0x11 pattern:$0x75316420]  ;;  %v427_v12 = vld [vmem:[%s600_s3 + $0x38] sm:$0xff]   ;;  %v71_v15 = vunpack.c.0.s8 %v70_v10  ;;  %v428_v16 = vld [vmem:[%s600_s3 + $0x30] sm:$0xff]  }
   0x4   :  { %v68_v14 = vcombine.high %v352_v8, %v352_v8  ;;  %388 = vmatpush3.bf16.msra.mxu1 %v427_v12  ;;  %v418_v17 = vld [vmem:[%s598_s1 + $0x8] sm:$0xff]  }
   0x5   :  { %389 = vmatprep.subr.bf16.mxu1 %v458_v3  ;;  %v74_v18 = vsub.s32 %v71_v15, %v73_v11  ;;  %v429_v19 = vld [vmem:[%s600_s3 + $0x28] sm:$0xff]  }
   0x6   :  { %181 = vmatpush1.bf16.msra.mxu0 %v413_v2 }
   0x7   :  { %182 = vmatprep.subr.bf16.mxu0 %v457_v1  ;;  %v82_v20 = vrot.slane %v68_v14, %v74_v18 }
   0x8   :  { %390 = vmatpush3.bf16.msra.mxu1 %v428_v16 }
   0x9   :  { %391 = vmatprep.subr.bf16.mxu1 %v458_v3 }
   0xa   :  { %183 = vmatpush1.bf16.msra.mxu0 %v414_v4 }
   0xb   :  { %184 = vmatprep.subr.bf16.mxu0 %v457_v1 }
   0xe   :  { %185 = vmatpush1.bf16.msra.mxu0 %v415_v5 }
   0xf   :  { %186 = vmatprep.subr.bf16.mxu0 %v457_v1 }
  0x12   :  { %187 = vmatpush1.bf16.msra.mxu0 %v416_v7 }
  0x13   :  { %188 = vmatprep.subr.bf16.mxu0 %v457_v1 }
  0x16   :  { %189 = vmatpush1.bf16.msra.mxu0 %v417_v13 }
  0x17   :  { %190 = vmatprep.subr.bf16.mxu0 %v457_v1 }
  0x18   :  { %10 = vsyncpa [#allocation3], 0  ;;  %368 = vmatprep.mubr.msk.bf16.mxu0 %vm174_vm0, %v82_v20  ;;  %v419_v21 = vld [vmem:[%s598_s1] sm:$0xff]   ;;  %392 = vmatpush3.bf16.msra.mxu1 %v429_v19  ;;  %v420_v23 = vld [vmem:[%s598_s1 + $0x70] sm:$0xff]   ;;  %v75_v30 = vrot.slane %v352_v8, %v74_v18  ;;  %vm460_vm1 = vmmov 0   ;;  %s461_s16 = smov [#allocation2]  }
  0x19   :  { %v430_v22 = vld [vmem:[%s600_s3 + $0x20] sm:$0xff]   ;;  %393 = vmatprep.subr.bf16.mxu1 %v458_v3  ;;  %v421_v24 = vld [vmem:[%s598_s1 + $0x68] sm:$0xff]   ;;  %v423_v26 = vld [vmem:[%s598_s1 + $0x58] sm:$0xff]   ;;  %403 = vmatprep.mubr.msk.bf16.mxu1 %vm460_vm1, %v458_v3  ;;  %s343_s17 = sshll.u32 %s461_s16, 4  ;;  %vm335_vm2 = vcmask 33792   ;;  %s344_s17 = int_to_ptr.vmem [resolvable:$true] %s343_s17 }
  0x1a   :  { %191 = vmatpush1.bf16.msra.mxu0 %v418_v17  ;;  %v422_v25 = vld [vmem:[%s598_s1 + $0x60] sm:$0xff]   ;;  %v424_v27 = vld [vmem:[%s598_s1 + $0x50] sm:$0xff]   ;;  %v425_v28 = vld [vmem:[%s598_s1 + $0x48] sm:$0xff]   ;;  %p440_p1 = scmp.lt.s32.totalorder %s344_s17, %s344_s17 }
  0x1b   :  { %192 = vmatprep.subr.bf16.mxu0 %v457_v1  ;;  %v426_v29 = vld [vmem:[%s598_s1 + $0x40] sm:$0xff]   ;;  %v431_v31 = vld [vmem:[%s600_s3 + $0x18] sm:$0xff]   ;;  %v432_v32 = vld [vmem:[%s600_s3 + $0x10] sm:$0xff]  }
  0x1c   :  { %394 = vmatpush3.bf16.msra.mxu1 %v430_v22  ;;  %v433_v33 = vld [vmem:[%s600_s3 + $0x8] sm:$0xff]   ;;  %v434_v34 = vld [vmem:[%s600_s3] sm:$0xff]  }
  0x1d   :  { %395 = vmatprep.subr.bf16.mxu1 %v458_v3  ;;  %v351_v35 = vld [vmem:[%s599_s2] ss:$0 sm:$0xff]  ;;  %s435_s2 = scalar_lea.vmem %s344_s17, 32 }
  0x1e   :  { %193 = vmatpush1.bf16.msra.mxu0 %v419_v21  ;;  %v369_v47 = vld [vmem:[%s601_s4] ss:$0 sm:$0xff]  ;;  %p436_p0 = scmp.ne.s32.totalorder %s344_s17, %s435_s2  ;;  %p441_p2 = scmp.lt.s32.totalorder %s435_s2, %s435_s2 }
  0x1f   :  { %196 = vmatprep.subr.bf16.mxu0 %v457_v1 }
  0x20   :  { %396 = vmatpush3.bf16.msra.mxu1 %v431_v31  ;;  %p442_p3 = por %p441_p2, %p440_p1 }
  0x21   :  { %397 = vmatprep.subr.bf16.mxu1 %v458_v3 }
  0x22   :  { %197 = vmatpush2.bf16.msra.mxu0 %v420_v23  ;;  %p443_p4 = pnand %p442_p3, %p436_p0 }
  0x23   :  { %198 = vmatprep.subr.bf16.mxu0 %v457_v1 }
  0x24   :  { %398 = vmatpush3.bf16.msra.mxu1 %v432_v32 }
  0x25   :  { %399 = vmatprep.subr.bf16.mxu1 %v458_v3 }
  0x26   :  { %199 = vmatpush2.bf16.msra.mxu0 %v421_v24 }
  0x27   :  { %200 = vmatprep.subr.bf16.mxu0 %v457_v1 }
  0x28   :  { %400 = vmatpush3.bf16.msra.mxu1 %v433_v33 }
  0x29   :  { %401 = vmatprep.subr.bf16.mxu1 %v458_v3 }
  0x2a   :  { %201 = vmatpush2.bf16.msra.mxu0 %v422_v25 }
  0x2b   :  { %202 = vmatprep.subr.bf16.mxu0 %v457_v1 }
  0x2c   :  { %402 = vmatpush3.bf16.msra.mxu1 %v434_v34 }
  0x2e   :  { %203 = vmatpush2.bf16.msra.mxu0 %v423_v26 }
  0x2f   :  { %204 = vmatprep.subr.bf16.mxu0 %v457_v1 }
  0x32   :  { %205 = vmatpush2.bf16.msra.mxu0 %v424_v27 }
  0x33   :  { %206 = vmatprep.subr.bf16.mxu0 %v457_v1 }
  0x36   :  { %207 = vmatpush2.bf16.msra.mxu0 %v425_v28 }
  0x37   :  { %208 = vmatprep.subr.bf16.mxu0 %v457_v1 }
  0x3a   :  { %209 = vmatpush2.bf16.msra.mxu0 %v426_v29 }
  0x3d   :  { %211 = vmatmul.mubr.bf16.vlgmr.msra.gmra.mxu0 %v75_v30 }
  0xfd   :  { %v212_v36 = vpop.f32.mrf.mxu0 }
  0xfe   :  { %v213_v37 = vadd.f32 %v351_v35, %v212_v36 }
  0xff   :  { %v214_v38 = vpop.f32.mrf.mxu0 }
 0x100   :  { %v218_v39 = vadd.f32 3.0, %v213_v37 }
 0x101   :  { %v215_v40 = vpop.f32.mrf.mxu0 }
 0x102   :  { %v219_v41 = vmax.f32 %v218_v39, 0.0 }
 0x103   :  { %v216_v42 = vpop.f32.mrf.mxu0 }
 0x104   :  { %v220_v43 = vmin.f32 %v219_v41, 6.0 }
 0x106   :  { %v221_v44 = vmul.f32 %v220_v43, %v213_v37 }
 0x108   :  { %v222_v45 = vmul.f32 0.16666667, %v221_v44 }
 0x10a   :  { %v223_v46 = vpack.c.bf16 %v222_v45, %v222_v45 }
 0x10c   :  { %404 = vmatmul.mubr.bf16.vlgmr.msra.gmra.mxu1 %v223_v46 }
 0x1cc   :  { %v329_v48 = vpop.f32.mrf.mxu1 }
 0x1cd   :  { %v330_v49 = vadd.f32 %v369_v47, %v329_v48 }
 0x1ce   :  { %v405_v50 = vpop.f32.mrf.mxu1 }
 0x1cf   :  { %336 = vst.msk [vmem:[#allocation2] sm:$0x3] %vm335_vm2, %v330_v49 }
 0x1d0   :  { %v332_v51 = vpop.f32.mrf.mxu1 }
 0x1d1   :  { %446 = shalt.err (!%p443_p4)
}
 0x1d2   :  { %346 = dma.vmem_to_hbm [thread:$0]  %s344_s17, 32, %s602_s5, [#allocation3]   ;;  %v406_v52 = vpop.f32.mrf.mxu1 }
 0x1d3   :  { %455 = dma.done.wait [#allocation3], 32  }
 0x1d4   :  { %456 = vsyncadd [#allocation3], 4294967264 }
 0x1d5   :  { %350 = vsyncpa [#allocation3], 1 }

// kernel: mobilenet_v3_forward.16
= control target key start
LH: loop header
LB: loop body
LE: loop exit
PB: predicated region body
PF: predicated region fallthrough
CT: control target
= control target key end

     0   :  { %s1219_s27 = smov 0   ;;  %s1401_s0 = inlined_call_operand.vmem [shape: bf16[2,4,4,96], index: 0, kind: input, shape index: {}]   ;;  %s1402_s1 = inlined_call_operand.vmem [shape: bf16[2,4,4,96], index: 1, kind: input, shape index: {}]   ;;  %s1403_s2 = inlined_call_operand.vmem [shape: bf16[2,4,4,96], index: 2, kind: input, shape index: {}]   ;;  %s1404_s3 = inlined_call_operand.vmem [shape: bf16[2,4,4,96], index: 3, kind: input, shape index: {}]   ;;  %s1405_s4 = inlined_call_operand.vmem [shape: f32[5,5,96], index: 4, kind: input, shape index: {}]   ;;  %s1406_s5 = inlined_call_operand.vmem [shape: f32[1,96], index: 5, kind: input, shape index: {}]   ;;  %s1407_s6 = inlined_call_operand.vmem [shape: bf16[96,40], index: 6, kind: input, shape index: {}]   ;;  %s1408_s7 = inlined_call_operand.vmem [shape: f32[1,40], index: 7, kind: input, shape index: {}]   ;;  %s1409_s8 = inlined_call_operand.vmem [shape: bf16[2,2,2,40], index: 8, kind: output, shape index: {}]  }
   0x1 LB: > { %s1019_s28 = sadd.s32 4294967295, %s1169_s27   ;;  %p1023_p0 = scmp.ge.s32.totalorder %s1169_s27, 1  ;;  %s1169_s27 = sphi %s1219_s27, %s18_s27  }
   0x2   : > { %p292_p1 = scmp.lt.s32.totalorder %s1169_s27, 3 }
   0x4   : > { %p293_p2 = pnand %p1023_p0, %p292_p1 }
   0x5   : > { %p340_p3 = scmp.lt.s32.totalorder (!%p293_p2), %s1019_s28, 1 }
   0x6   : > { %296 = sbr.rel (%p293_p2) target bundleno = 288 (0x120), region = 52 }
   0xb   : > { %v1157_v0 = vld [vmem:[%s1407_s6 + $0x28] sm:$0xff]   ;;  %v1171_v1 = vmov 0.0   ;;  %v1158_v2 = vld [vmem:[%s1407_s6 + $0x20] sm:$0xff]   ;;  %vm1172_vm0 = vmmov 0   ;;  %s1411_s28 = smov (!%p340_p3, %s1019_s28), 1  ;;  %v1159_v3 = vld [vmem:[%s1407_s6 + $0x18] sm:$0xff]  }
   0xc   : > { %1130 = vmatprep.subr.bf16.mxu0 %v1171_v1  ;;  %1142 = vmatprep.mubr.msk.bf16.mxu0 %vm1172_vm0, %v1171_v1  ;;  %s1119_s13 = sshll.u32 %s1411_s28, 3  ;;  %v1033_v4 = vld [vmem:[%s1405_s4] ss:$0 sm:$0xff]  ;;  %v1035_v5 = vld [vmem:[%s1405_s4 + $0x8] ss:$0 sm:$0xff]  ;;  %v1160_v16 = vld [vmem:[%s1407_s6 + $0x10] sm:$0xff]  }
   0xd   : > { %1131 = vmatpush3.bf16.msra.mxu0 %v1157_v0  ;;  %s1246_s16 = scalar_lea.vmem %s1401_s0, %s1119_s13  ;;  %v1037_v6 = vld [vmem:[%s1405_s4 + $0x10] ss:$0 sm:$0xff]  ;;  %s1260_s25 = scalar_lea.vmem %s1402_s1, %s1119_s13  ;;  %v1039_v20 = vld [vmem:[%s1405_s4 + $0x18] ss:$0 sm:$0xff]  ;;  %v1041_v35 = vld [vmem:[%s1405_s4 + $0x20] ss:$0 sm:$0xff] }
   0xe   : > { %1132 = vmatprep.subr.bf16.mxu0 %v1171_v1  ;;  %s1265_s30 = scalar_lea.vmem %s1403_s2, %s1119_s13  ;;  %v365_v7 = vld [vmem:[%s1246_s16] sm:$0x1]  ;;  %v366_v8 = vld [vmem:[%s1246_s16 + $0x2] sm:$0x1]  ;;  %v367_v9 = vld [vmem:[%s1246_s16 + $0x4] sm:$0x1]  ;;  %s1273_s11 = scalar_lea.vmem %s1404_s3, %s1119_s13 }
   0xf   : > { %v368_v10 = vld [vmem:[%s1246_s16 + $0x6] sm:$0x1]  ;;  %v369_v11 = vunpack.c.l.bf16 %v365_v7  ;;  %v370_v12 = vunpack.c.l.bf16 %v366_v8  ;;  %v371_v13 = vunpack.c.l.bf16 %v367_v9  ;;  %v373_v14 = vld [vmem:[%s1265_s30] sm:$0x1]  ;;  %v374_v15 = vld [vmem:[%s1265_s30 + $0x2] sm:$0x1] }
  0x10   : > { %v375_v17 = vld [vmem:[%s1265_s30 + $0x4] sm:$0x1]  ;;  %v376_v18 = vunpack.c.l.bf16 %v373_v14  ;;  %v377_v19 = vunpack.c.l.bf16 %v374_v15  ;;  %v372_v21 = vunpack.c.l.bf16 %v368_v10  ;;  %v428_v25 = vld [vmem:[%s1260_s25] sm:$0x1]  ;;  %v429_v26 = vld [vmem:[%s1260_s25 + $0x2] sm:$0x1] }
  0x11   : > { %1133 = vmatpush3.bf16.msra.mxu0 %v1158_v2  ;;  %v378_v22 = vunpack.c.l.bf16 %v375_v17  ;;  %v384_v23 = vmul.f32 %v1033_v4, %v369_v11  ;;  %v385_v24 = vmul.f32 %v1033_v4, %v370_v12  ;;  %v404_v29 = vmul.f32 %v1037_v6, %v370_v12  ;;  %v436_v31 = vld [vmem:[%s1273_s11] sm:$0x1]  ;;  %v437_v32 = vld [vmem:[%s1273_s11 + $0x2] sm:$0x1]  ;;  %v1161_v36 = vld [vmem:[%s1407_s6 + $0x8] sm:$0xff]   ;;  %s1032_s13 = sshll.u32 %s1411_s28, 1 }
  0x12   : > { %1134 = vmatprep.subr.bf16.mxu0 %v1171_v1  ;;  %v394_v27 = vmul.f32 %v1035_v5, %v376_v18  ;;  %v395_v28 = vmul.f32 %v1035_v5, %v377_v19  ;;  %v405_v30 = vmul.f32 %v1037_v6, %v371_v13  ;;  %v414_v33 = vmul.f32 %v1039_v20, %v377_v19  ;;  %v1297_v39 = vld [vmem:[%s1260_s25 + $0x4] sm:$0x1]  ;;  %v1042_v44 = vld [vmem:[%s1405_s4 + $0x1] ss:$0 sm:$0xff]  ;;  %v1044_v50 = vld [vmem:[%s1405_s4 + $0x9] ss:$0 sm:$0xff]  ;;  %s363_s17 = scalar_lea.vmem %s1409_s8, %s1032_s13 }
  0x13   : > { %v415_v34 = vmul.f32 %v1039_v20, %v378_v22  ;;  %v432_v40 = vunpack.c.l.bf16 %v428_v25  ;;  %v433_v41 = vunpack.c.l.bf16 %v429_v26  ;;  %v439_v42 = vunpack.c.l.bf16 %v436_v31  ;;  %v438_v49 = vld [vmem:[%s1273_s11 + $0x4] sm:$0x1]  ;;  %v487_v53 = vld [vmem:[%s1246_s16] sm:$0x3]  ;;  %v488_v54 = vld [vmem:[%s1246_s16 + $0x2] sm:$0x3] }
  0x14   : > { %v396_v37 = vadd.f32 %v394_v27, %v384_v23  ;;  %v397_v38 = vadd.f32 %v395_v28, %v385_v24  ;;  %v440_v43 = vunpack.c.l.bf16 %v437_v32  ;;  %v424_v47 = vmul.f32 %v1041_v35, %v371_v13  ;;  %v1162_v51 = vld [vmem:[%s1407_s6] sm:$0xff]   ;;  %v1046_v2 = vld [vmem:[%s1405_s4 + $0x11] ss:$0 sm:$0xff]  ;;  %v1048_v5 = vld [vmem:[%s1405_s4 + $0x19] ss:$0 sm:$0xff] }
  0x15   : > { %1135 = vmatpush3.bf16.msra.mxu0 %v1159_v3  ;;  %v425_v48 = vmul.f32 %v1041_v35, %v372_v21  ;;  %v434_v52 = vunpack.c.l.bf16 %v1297_v39  ;;  %v431_v57 = vld [vmem:[%s1260_s25 + $0x6] sm:$0x1]  ;;  %v447_v58 = vmul.f32 %v1042_v44, %v432_v40  ;;  %v448_v59 = vmul.f32 %v1042_v44, %v433_v41  ;;  %v495_v60 = vld [vmem:[%s1265_s30] sm:$0x3]  ;;  %v496_v61 = vld [vmem:[%s1265_s30 + $0x2] sm:$0x3] }
  0x16   : > { %1136 = vmatprep.subr.bf16.mxu0 %v1171_v1  ;;  %v406_v45 = vadd.f32 %v404_v29, %v396_v37  ;;  %v407_v46 = vadd.f32 %v405_v30, %v397_v38  ;;  %v441_v62 = vunpack.c.l.bf16 %v438_v49  ;;  %v456_v63 = vmul.f32 %v1044_v50, %v439_v42  ;;  %v489_v6 = vld [vmem:[%s1246_s16 + $0x4] sm:$0x3]  ;;  %v1051_v11 = vld [vmem:[%s1405_s4 + $0x2] ss:$0 sm:$0xff]  ;;  %v1055_v17 = vld [vmem:[%s1405_s4 + $0xa] ss:$0 sm:$0xff] }
  0x17   : > { %v457_v0 = vmul.f32 %v1044_v50, %v440_v43  ;;  %v491_v7 = vunpack.c.l.bf16 %v487_v53  ;;  %v492_v8 = vunpack.c.l.bf16 %v488_v54  ;;  %v435_v9 = vunpack.c.l.bf16 %v431_v57  ;;  %v1050_v20 = vld [vmem:[%s1405_s4 + $0x21] ss:$0 sm:$0xff]  ;;  %v490_v24 = vld [vmem:[%s1246_s16 + $0x6] sm:$0x3]  ;;  %v1059_v27 = vld [vmem:[%s1405_s4 + $0x12] ss:$0 sm:$0xff] }
  0x18   : > { %v416_v55 = vadd.f32 %v414_v33, %v406_v45  ;;  %v417_v56 = vadd.f32 %v415_v34, %v407_v46  ;;  %v498_v10 = vunpack.c.l.bf16 %v495_v60  ;;  %v465_v14 = vmul.f32 %v1046_v2, %v433_v41  ;;  %v1063_v35 = vld [vmem:[%s1405_s4 + $0x1a] ss:$0 sm:$0xff]  ;;  %v586_v39 = vld [vmem:[%s1260_s25] sm:$0x3]  ;;  %v587_v40 = vld [vmem:[%s1260_s25 + $0x2] sm:$0x3] }
  0x19   : > { %1137 = vmatpush3.bf16.msra.mxu0 %v1160_v16  ;;  %v466_v15 = vmul.f32 %v1046_v2, %v434_v52  ;;  %v497_v16 = vld [vmem:[%s1265_s30 + $0x4] sm:$0x3]  ;;  %v474_v18 = vmul.f32 %v1048_v5, %v440_v43  ;;  %v475_v19 = vmul.f32 %v1048_v5, %v441_v62  ;;  %v493_v21 = vunpack.c.l.bf16 %v489_v6  ;;  %v594_v45 = vld [vmem:[%s1273_s11] sm:$0x3]  ;;  %v595_v46 = vld [vmem:[%s1273_s11 + $0x2] sm:$0x3] }
  0x1a   : > { %1138 = vmatprep.subr.bf16.mxu0 %v1171_v1  ;;  %v426_v3 = vadd.f32 %v424_v47, %v416_v55  ;;  %v427_v4 = vadd.f32 %v425_v48, %v417_v56  ;;  %v506_v25 = vmul.f32 %v1051_v11, %v491_v7  ;;  %v507_v26 = vmul.f32 %v1051_v11, %v492_v8  ;;  %v588_v54 = vld [vmem:[%s1260_s25 + $0x4] sm:$0x3] }
  0x1b   : > { %v500_v28 = vunpack.c.l.bf16 %v497_v16  ;;  %v523_v29 = vmul.f32 %v1055_v17, %v498_v10  ;;  %v483_v33 = vmul.f32 %v1050_v20, %v434_v52  ;;  %v484_v34 = vmul.f32 %v1050_v20, %v435_v9  ;;  %v589_v10 = vld [vmem:[%s1260_s25 + $0x6] sm:$0x3]  ;;  %v1082_v20 = vld [vmem:[%s1405_s4 + $0x1b] ss:$0 sm:$0xff] }
  0x1c   : > { %v449_v12 = vadd.f32 %v447_v58, %v426_v3  ;;  %v450_v13 = vadd.f32 %v448_v59, %v427_v4  ;;  %v540_v37 = vmul.f32 %v1059_v27, %v492_v8  ;;  %v541_v38 = vmul.f32 %v1059_v27, %v493_v21  ;;  %v596_v3 = vld [vmem:[%s1273_s11 + $0x4] sm:$0x3]  ;;  %v1074_v4 = vld [vmem:[%s1405_s4 + $0xb] ss:$0 sm:$0xff] }
  0x1d   : > { %1139 = vmatpush3.bf16.msra.mxu0 %v1161_v36  ;;  %v494_v36 = vunpack.c.l.bf16 %v490_v24  ;;  %v1052_v43 = vrot.slane %v506_v25, 9  ;;  %v1053_v44 = vrot.slane %v507_v26, 9  ;;  %v1056_v47 = vrot.slane %v523_v29, 9  ;;  %v1086_v24 = vld [vmem:[%s1405_s4 + $0x23] ss:$0 sm:$0xff] }
  0x1e   : > { %1140 = vmatprep.subr.bf16.mxu0 %v1171_v1  ;;  %v499_v1 = vunpack.c.l.bf16 %v496_v61  ;;  %v458_v22 = vadd.f32 %v456_v63, %v449_v12  ;;  %v459_v23 = vadd.f32 %v457_v0, %v450_v13  ;;  %v558_v50 = vmul.f32 %v1063_v35, %v500_v28  ;;  %v1070_v61 = vld [vmem:[%s1405_s4 + $0x3] ss:$0 sm:$0xff]  ;;  %v1078_v12 = vld [vmem:[%s1405_s4 + $0x13] ss:$0 sm:$0xff]  ;;  %v685_v25 = vld [vmem:[%s1246_s16] sm:$0x2] }
  0x1f   : > { %v590_v55 = vunpack.c.l.bf16 %v586_v39  ;;  %v591_v56 = vunpack.c.l.bf16 %v587_v40  ;;  %v1060_v57 = vrot.slane %v540_v37, 9  ;;  %v1061_v58 = vrot.slane %v541_v38, 9  ;;  %v686_v26 = vld [vmem:[%s1246_s16 + $0x2] sm:$0x2]  ;;  %v687_v39 = vld [vmem:[%s1246_s16 + $0x4] sm:$0x2] }
  0x20   : > { %v524_v30 = vmul.f32 %v1055_v17, %v499_v1  ;;  %v467_v31 = vadd.f32 %v465_v14, %v458_v22  ;;  %v468_v32 = vadd.f32 %v466_v15, %v459_v23  ;;  %v557_v49 = vmul.f32 %v1063_v35, %v499_v1 }
  0x21   : > { %1141 = vmatpush3.bf16.msra.mxu0 %v1162_v51  ;;  %v1067_v51 = vld [vmem:[%s1405_s4 + $0x22] ss:$0 sm:$0xff]  ;;  %v597_v59 = vunpack.c.l.bf16 %v594_v45  ;;  %v598_v60 = vunpack.c.l.bf16 %v595_v46  ;;  %v1065_v6 = vrot.slane %v558_v50, 9  ;;  %v592_v7 = vunpack.c.l.bf16 %v588_v54  ;;  %v1089_v46 = vld [vmem:[%s1405_s4 + $0x4] ss:$0 sm:$0xff] }
  0x22   : > { %v476_v41 = vadd.f32 %v474_v18, %v467_v31  ;;  %v477_v42 = vadd.f32 %v475_v19, %v468_v32  ;;  %v1057_v48 = vrot.slane %v524_v30, 9  ;;  %v574_v0 = vmul.f32 %v1067_v51, %v493_v21  ;;  %v693_v31 = vld [vmem:[%s1265_s30] sm:$0x2]  ;;  %v694_v32 = vld [vmem:[%s1265_s30 + $0x2] sm:$0x2] }
  0x23   : > { %v575_v2 = vmul.f32 %v1067_v51, %v494_v36  ;;  %v1064_v5 = vrot.slane %v557_v49, 9  ;;  %v605_v1 = vmul.f32 %v1070_v61, %v590_v55  ;;  %v606_v11 = vmul.f32 %v1070_v61, %v591_v56  ;;  %v1093_v51 = vld [vmem:[%s1405_s4 + $0xc] ss:$0 sm:$0xff]  ;;  %v695_v55 = vld [vmem:[%s1265_s30 + $0x4] sm:$0x2] }
  0x24   : > { %v485_v52 = vadd.f32 %v483_v33, %v476_v41  ;;  %v486_v53 = vadd.f32 %v484_v34, %v477_v42  ;;  %v599_v13 = vunpack.c.l.bf16 %v596_v3  ;;  %v622_v14 = vmul.f32 %v1074_v4, %v597_v59  ;;  %v1097_v61 = vld [vmem:[%s1405_s4 + $0x14] ss:$0 sm:$0xff] }
  0x25   : > { %v623_v15 = vmul.f32 %v1074_v4, %v598_v60  ;;  %v1068_v18 = vrot.slane %v574_v0, 9  ;;  %v1069_v19 = vrot.slane %v575_v2, 9  ;;  %v593_v21 = vunpack.c.l.bf16 %v589_v10 }
  0x26   : > { %v516_v62 = vadd.f32 %v1052_v43, %v485_v52  ;;  %v517_v63 = vadd.f32 %v1053_v44, %v486_v53  ;;  %v639_v22 = vmul.f32 %v1078_v12, %v591_v56  ;;  %v640_v23 = vmul.f32 %v1078_v12, %v592_v7 }
  0x27   : > { %v1071_v29 = vrot.slane %v605_v1, 9  ;;  %v1072_v30 = vrot.slane %v606_v11, 9  ;;  %v1075_v33 = vrot.slane %v622_v14, 9  ;;  %v1076_v34 = vrot.slane %v623_v15, 9  ;;  %v1105_v15 = vld [vmem:[%s1405_s4 + $0x24] ss:$0 sm:$0xff] }
  0x28   : > { %v533_v8 = vadd.f32 %v1056_v47, %v516_v62  ;;  %v534_v9 = vadd.f32 %v1057_v48, %v517_v63  ;;  %v656_v35 = vmul.f32 %v1082_v20, %v598_v60  ;;  %v657_v36 = vmul.f32 %v1082_v20, %v599_v13 }
  0x29   : > { %v689_v40 = vunpack.c.l.bf16 %v685_v25  ;;  %v690_v41 = vunpack.c.l.bf16 %v686_v26  ;;  %v1079_v42 = vrot.slane %v639_v22, 9  ;;  %v673_v43 = vmul.f32 %v1086_v24, %v592_v7 }
  0x2a   : > { %v550_v16 = vadd.f32 %v1060_v57, %v533_v8  ;;  %v551_v17 = vadd.f32 %v1061_v58, %v534_v9  ;;  %v696_v44 = vunpack.c.l.bf16 %v693_v31  ;;  %v697_v45 = vunpack.c.l.bf16 %v694_v32  ;;  %v688_v58 = vld [vmem:[%s1246_s16 + $0x6] sm:$0x2]  ;;  %v1101_v9 = vld [vmem:[%s1405_s4 + $0x1c] ss:$0 sm:$0xff] }
  0x2b   : > { %v1080_v49 = vrot.slane %v640_v23, 9  ;;  %v674_v50 = vmul.f32 %v1086_v24, %v593_v21  ;;  %v1083_v52 = vrot.slane %v656_v35, 9  ;;  %v1084_v53 = vrot.slane %v657_v36, 9  ;;  %v1108_v36 = vld [vmem:[%s1406_s5] ss:$0 sm:$0xff] }
  0x2c   : > { %v567_v27 = vadd.f32 %v1064_v5, %v550_v16  ;;  %v568_v28 = vadd.f32 %v1065_v6, %v551_v17  ;;  %v691_v54 = vunpack.c.l.bf16 %v687_v39  ;;  %v704_v59 = vmul.f32 %v1089_v46, %v689_v40 }
  0x2d   : > { %v705_v60 = vmul.f32 %v1089_v46, %v690_v41  ;;  %v1087_v62 = vrot.slane %v673_v43, 9  ;;  %v721_v63 = vmul.f32 %v1093_v51, %v696_v44  ;;  %v722_v0 = vmul.f32 %v1093_v51, %v697_v45 }
  0x2e   : > { %v584_v37 = vadd.f32 %v1068_v18, %v567_v27  ;;  %v585_v38 = vadd.f32 %v1069_v19, %v568_v28  ;;  %v1088_v4 = vrot.slane %v674_v50, 9  ;;  %v698_v5 = vunpack.c.l.bf16 %v695_v55 }
  0x2f   : > { %v692_v6 = vunpack.c.l.bf16 %v688_v58  ;;  %v738_v7 = vmul.f32 %v1097_v61, %v690_v41  ;;  %v739_v8 = vmul.f32 %v1097_v61, %v691_v54  ;;  %v1090_v11 = vrot.slane %v704_v59, 10 }
  0x30   : > { %v615_v47 = vadd.f32 %v1071_v29, %v584_v37  ;;  %v616_v48 = vadd.f32 %v1072_v30, %v585_v38  ;;  %v1091_v12 = vrot.slane %v705_v60, 10  ;;  %v1094_v13 = vrot.slane %v721_v63, 10  ;;  %v1109_v60 = vld [vmem:[%s1408_s7] ss:$0 sm:$0xff] }
  0x31   : > { %v1095_v14 = vrot.slane %v722_v0, 10  ;;  %v755_v18 = vmul.f32 %v1101_v9, %v697_v45  ;;  %v756_v19 = vmul.f32 %v1101_v9, %v698_v5  ;;  %v1098_v20 = vrot.slane %v738_v7, 10 }
  0x32   : > { %v632_v56 = vadd.f32 %v1075_v33, %v615_v47  ;;  %v633_v57 = vadd.f32 %v1076_v34, %v616_v48  ;;  %v1099_v21 = vrot.slane %v739_v8, 10  ;;  %v772_v24 = vmul.f32 %v1105_v15, %v691_v54 }
  0x33   : > { %v773_v25 = vmul.f32 %v1105_v15, %v692_v6  ;;  %v1102_v28 = vrot.slane %v755_v18, 10  ;;  %v1103_v29 = vrot.slane %v756_v19, 10  ;;  %v1173_v43 = vmov 1983009808  }
  0x34   : > { %v649_v2 = vadd.f32 %v1079_v42, %v632_v56  ;;  %v650_v3 = vadd.f32 %v1080_v49, %v633_v57  ;;  %v1106_v32 = vrot.slane %v772_v24, 10  ;;  %v807_v44 = vunpack.c.l.s4 %v1173_v43 }
  0x35   : > { %v1107_v33 = vrot.slane %v773_v25, 10  ;;  %v809_v45 = vlaneseq  ;;  %vm870_vm1 = vcmask 785408   ;;  %vm927_vm2 = vcmask 319488  }
  0x36   : > { %v666_v10 = vadd.f32 %v1083_v52, %v649_v2  ;;  %v667_v1 = vadd.f32 %v1084_v53, %v650_v3  ;;  %v808_v50 = vunpack.c.0.s8 %v807_v44 }
  0x37   : > { %v810_v51 = vshrl.u32 %v809_v45, 7 }
  0x38   : > { %v683_v16 = vadd.f32 %v1087_v62, %v666_v10  ;;  %v684_v17 = vadd.f32 %v1088_v4, %v667_v1 }
  0x39   : > { %v811_v56 = vsub.s32 %v808_v50, %v810_v51 }
  0x3a   : > { %v714_v22 = vadd.f32 %v1090_v11, %v683_v16  ;;  %v715_v23 = vadd.f32 %v1091_v12, %v684_v17 }
  0x3c   : > { %v731_v26 = vadd.f32 %v1094_v13, %v714_v22  ;;  %v732_v27 = vadd.f32 %v1095_v14, %v715_v23 }
  0x3e   : > { %v748_v30 = vadd.f32 %v1098_v20, %v731_v26  ;;  %v749_v31 = vadd.f32 %v1099_v21, %v732_v27 }
  0x40   : > { %v765_v34 = vadd.f32 %v1102_v28, %v748_v30  ;;  %v766_v35 = vadd.f32 %v1103_v29, %v749_v31 }
  0x42   : > { %v782_v37 = vadd.f32 %v1106_v32, %v765_v34  ;;  %v783_v38 = vadd.f32 %v1107_v33, %v766_v35 }
  0x44   : > { %v791_v39 = vadd.f32 %v1108_v36, %v782_v37  ;;  %v792_v40 = vadd.f32 %v1108_v36, %v783_v38 }
  0x46   : > { %v793_v41 = vadd.f32 3.0, %v791_v39  ;;  %v794_v42 = vadd.f32 3.0, %v792_v40 }
  0x48   : > { %v795_v46 = vmax.f32 %v793_v41, 0.0  ;;  %v796_v47 = vmax.f32 %v794_v42, 0.0 }
  0x4a   : > { %v797_v48 = vmin.f32 %v795_v46, 6.0  ;;  %v798_v49 = vmin.f32 %v796_v47, 6.0 }
  0x4c   : > { %v799_v52 = vmul.f32 %v797_v48, %v791_v39  ;;  %v800_v53 = vmul.f32 %v798_v49, %v792_v40 }
  0x4e   : > { %v801_v54 = vmul.f32 0.16666667, %v799_v52  ;;  %v802_v55 = vmul.f32 0.16666667, %v800_v53 }
  0x50   : > { %v805_v57 = vcombine.low %v801_v54, %v802_v55 }
  0x52   : > { %v812_v58 = vrot.slane %v805_v57, %v811_v56 }
  0x54   : > { %v814_v59 = vpack.c.bf16 %v812_v58, %v812_v58 }
  0x56   : > { %1143 = vmatmul.mubr.msk.bf16.vlgmr.msra.gmra.mxu0 %vm870_vm1, %v814_v59 }
 0x116   : > { %v908_v61 = vpop.f32.mrf.mxu0 }
 0x117   : > { %v909_v62 = vadd.f32 %v1109_v60, %v908_v61 }
 0x118   : > { %v1144_v63 = vpop.f32.mrf.mxu0 }
 0x119   : > { %v921_v0 = vrot.slane %v909_v62, %v811_v56 }
 0x11a   : > { %v911_v2 = vpop.f32.mrf.mxu0 }
 0x11b   : > { %v922_v3 = vcombine.high %v921_v0, %v921_v0  ;;  %v925_v4 = vpack.c.bf16 %v921_v0, %v921_v0 }
 0x11c   : > { %v1145_v5 = vpop.f32.mrf.mxu0 }
 0x11d   : > { %v926_v6 = vpack.c.bf16 %v922_v3, %v922_v3  ;;  %928 = vst.msk [vmem:[%s363_s17] sm:$0x1] %vm927_vm2, %v925_v4 }
 0x11f   : > { %929 = vst.msk [vmem:[%s363_s17 + $0x1] sm:$0x1] %vm927_vm2, %v926_v6 }
 0x120 PF: > { %s18_s27 = sadd.s32 1, %s1169_s27  }
 0x121   : > { %p15_p4 = scmp.ge.s32.totalorder %s18_s27, 4  }
 0x123   :  { %17 = sbr.rel (!%p15_p4) target bundleno = 1 (0x1), region = 95 }

</bundles_post_ra>
